<compile_context>
chip_gen: v6e
topology: v6e:2x2x1
jax: 0.10.0
libtpu: 0.0.40
codegen_flags: <defaults>
</compile_context>

<pallas_src>
import jax
import jax.numpy as jnp
from jax.experimental import pallas as pl
from jax.experimental.pallas import tpu as pltpu


# ---------------------------------------------------------------------------
# Fused kernel factory: bidirectional LSTM recurrence (both sentences merged
# per direction) + masked mean pooling + fc1/relu + fc2/sigmoid.
# ---------------------------------------------------------------------------
def _make_kernel(T_real, Tc, tileB, needs_bwd_guard):
    B2 = 2 * tileB  # [sentence-1 rows ; sentence-2 rows] of this batch tile

    def kernel(gf_ref, gb_ref, whhf_ref, whhb_ref, bf_ref, bb_ref,
               lens_ref, inv_ref, w1_ref, b1_ref, w2_ref, b2_ref,
               out_ref, hf, cf, sf, hb, cb, sb):
        k = pl.program_id(1)
        nK = pl.num_programs(1)
        G = gf_ref.shape[-1]
        H = G // 4

        # Reset carries at the start of every batch tile's T-sweep.
        @pl.when(k == 0)
        def _():
            zero = jnp.zeros((B2, H), jnp.float32)
            hf[...] = zero
            cf[...] = zero
            sf[...] = zero
            hb[...] = zero
            cb[...] = zero
            sb[...] = zero

        whh_f = whhf_ref[...]                       # (H, 4H) f32, loop-invariant
        whh_b = whhb_ref[...]
        bias_f = bf_ref[...]                        # (1, 4H) f32
        bias_b = bb_ref[...]
        lens = lens_ref[...]                        # (B2, 1) int32

        t0_f = k * Tc                               # global t offset, fwd chunk
        t0_b = (nK - 1 - k) * Tc                    # global t offset, bwd chunk

        def cell(pre, c):
            # pre: (B2, 4H) f32, gate order (i, f, o, g)
            acts = jax.nn.sigmoid(pre[:, :3 * H])   # one sigmoid over i|f|o
            i_g = acts[:, 0 * H:1 * H]
            f_g = acts[:, 1 * H:2 * H]
            o_g = acts[:, 2 * H:3 * H]
            g_g = jnp.tanh(pre[:, 3 * H:])
            c_new = f_g * c + i_g * g_g
            h_new = o_g * jnp.tanh(c_new)
            return h_new, c_new

        def body(s, carry):
            h_f, c_f, h_b, c_b = carry

            # ---- forward direction (both sentences in one GEMM) ----
            t_f = t0_f + s
            pre_f = (gf_ref[s].astype(jnp.float32) + bias_f
                     + jnp.dot(h_f, whh_f, preferred_element_type=jnp.float32))
            h_f, c_f = cell(pre_f, c_f)
            sf[...] = sf[...] + h_f * (t_f < lens).astype(jnp.float32)

            # ---- backward direction (reads its chunk back-to-front) ----
            s_b = Tc - 1 - s
            t_b = t0_b + s_b
            pre_b = (gb_ref[s_b].astype(jnp.float32) + bias_b
                     + jnp.dot(h_b, whh_b, preferred_element_type=jnp.float32))
            h_b_new, c_b_new = cell(pre_b, c_b)
            if needs_bwd_guard:
                # T was padded: padded (t >= T_real) steps are a no-op so the
                # backward recurrence effectively starts at t = T_real - 1.
                valid = t_b < T_real
                h_b_new = jnp.where(valid, h_b_new, h_b)
                c_b_new = jnp.where(valid, c_b_new, c_b)
            h_b, c_b = h_b_new, c_b_new
            sb[...] = sb[...] + h_b * (t_b < lens).astype(jnp.float32)

            return h_f, c_f, h_b, c_b

        carry0 = (hf[...], cf[...], hb[...], cb[...])
        h_f, c_f, h_b, c_b = jax.lax.fori_loop(
            0, Tc, body, carry0, unroll=min(Tc, 8))
        hf[...] = h_f
        cf[...] = c_f
        hb[...] = h_b
        cb[...] = c_b

        # Pooling + fc head once per batch tile, after the last T-chunk
        # (forward has seen chunks 0..nK-1, backward nK-1..0 -> both complete).
        @pl.when(k == nK - 1)
        def _():
            inv = inv_ref[...]                      # (B2, 1) precomputed 1/len
            m_f = sf[...] * inv                     # (B2, H)
            m_b = sb[...] * inv
            m1f, m2f = m_f[:tileB], m_f[tileB:]
            m1b, m2b = m_b[:tileB], m_b[tileB:]
            # cat([m1f, m1b, m2f, m2b]) @ W1 == sum of split matmuls (no concat).
            w1 = w1_ref[...]                        # (4H, Hout) f32
            hid = (jnp.dot(m1f, w1[0 * H:1 * H], preferred_element_type=jnp.float32)
                   + jnp.dot(m1b, w1[1 * H:2 * H], preferred_element_type=jnp.float32)
                   + jnp.dot(m2f, w1[2 * H:3 * H], preferred_element_type=jnp.float32)
                   + jnp.dot(m2b, w1[3 * H:4 * H], preferred_element_type=jnp.float32)
                   + b1_ref[...])
            hid = jnp.maximum(hid, 0.0)             # relu(fc1)
            logit = jnp.dot(hid, w2_ref[...],
                            preferred_element_type=jnp.float32) + b2_ref[...]
            out_ref[...] = jax.nn.sigmoid(logit)    # (tileB, 1)

    return kernel


# ---------------------------------------------------------------------------
# Parameter init (deterministic, mimics PyTorch default inits)
# ---------------------------------------------------------------------------
def init_params(key, vocab_size, embedding_size, hidden_size, bidirectional=True):
    E, H = embedding_size, hidden_size
    lstm_size = 2 * H if bidirectional else H
    ks = jax.random.split(key, 16)
    k_lstm = 1.0 / jnp.sqrt(H)
    k_fc1 = 1.0 / jnp.sqrt(2 * lstm_size)
    k_fc2 = 1.0 / jnp.sqrt(H)

    emb = jax.random.normal(ks[0], (vocab_size, E), jnp.float32)
    emb = emb.at[0].set(0.0)  # padding_idx=0

    def u(k, shape, lim):
        return jax.random.uniform(k, shape, jnp.float32, -lim, lim)

    params = {
        "embedding": emb,
        # forward direction (PyTorch shapes: (4H, E), (4H, H), (4H,))
        "wih_f": u(ks[1], (4 * H, E), k_lstm),
        "whh_f": u(ks[2], (4 * H, H), k_lstm),
        "bih_f": u(ks[3], (4 * H,), k_lstm),
        "bhh_f": u(ks[4], (4 * H,), k_lstm),
        # backward direction
        "wih_b": u(ks[5], (4 * H, E), k_lstm),
        "whh_b": u(ks[6], (4 * H, H), k_lstm),
        "bih_b": u(ks[7], (4 * H,), k_lstm),
        "bhh_b": u(ks[8], (4 * H,), k_lstm),
        # fc1: Linear(2 * lstm_size -> H), fc2: Linear(H -> 1)
        "fc1_w": u(ks[9], (H, 2 * lstm_size), k_fc1),
        "fc1_b": u(ks[10], (H,), k_fc1),
        "fc2_w": u(ks[11], (1, H), k_fc2),
        "fc2_b": u(ks[12], (1,), k_fc2),
    }
    return params


# ---------------------------------------------------------------------------
# Forward pass wrapper (embedding gather, gate reorder, hoisted input GEMMs,
# batch/T padding, single pipelined pallas_call)
# ---------------------------------------------------------------------------
def wic_lstm_forward(params, X1, X2, X1_lengths, X2_lengths):
    emb = params["embedding"]
    H = params["whh_f"].shape[1]
    G = 4 * H
    B, T = X1.shape

    # Time-major embedding gather (avoids transposing the big gate tensors).
    e1 = emb[X1.T]                                  # (T, B, E)
    e2 = emb[X2.T]
    # self.dropout(...) -> identity (inference)

    # Pad batch to a multiple of 16 (bf16 sublane packing); pad rows -> len 0.
    Bp = max(16, ((B + 15) // 16) * 16)
    pad_b = Bp - B
    if pad_b:
        e1 = jnp.pad(e1, ((0, 0), (0, pad_b), (0, 0)))
        e2 = jnp.pad(e2, ((0, 0), (0, pad_b), (0, 0)))

    # Batch tiling ("parallel" grid axis; lets v7x's 2 TCs split the batch).
    tileB = Bp if Bp <= 128 else 16                 # 16 divides Bp always
    nB = Bp // tileB
    B2 = 2 * tileB

    def arrange_batch(a1, a2):
        # (..., Bp, C) x2 -> (..., nB, 2*tileB, C): per tile, sentence-1 rows
        # followed by sentence-2 rows (so one GEMM per direction per step).
        s1 = a1.reshape(*a1.shape[:-2], nB, tileB, a1.shape[-1])
        s2 = a2.reshape(*a2.shape[:-2], nB, tileB, a2.shape[-1])
        return jnp.concatenate([s1, s2], axis=-2)

    e = arrange_batch(e1, e2)                       # (T, nB, B2, E)

    def reorder_ifog(a):
        # PyTorch gate order (i, f, g, o) -> (i, f, o, g) along the 4H axis.
        i_, f_, g_, o_ = jnp.split(a, 4, axis=0)
        return jnp.concatenate([i_, f_, o_, g_], axis=0)

    wih_f = reorder_ifog(params["wih_f"]).T         # (E, 4H)
    wih_b = reorder_ifog(params["wih_b"]).T
    whh_f = reorder_ifog(params["whh_f"]).T         # (H, 4H) f32
    whh_b = reorder_ifog(params["whh_b"]).T
    b_f = reorder_ifog(params["bih_f"] + params["bhh_f"]).reshape(1, G)
    b_b = reorder_ifog(params["bih_b"] + params["bhh_b"]).reshape(1, G)

    # Hoisted input projection: one big time-major f32 GEMM per direction
    # (f32 x f32 -> f32: safe on every dot executor), stored bf16 to halve
    # HBM/VMEM traffic of the dominant tensors. Bias is added in-kernel (f32).
    g_f = jnp.einsum("tnbe,eg->tnbg", e, wih_f,
                     preferred_element_type=jnp.float32).astype(jnp.bfloat16)
    g_b = jnp.einsum("tnbe,eg->tnbg", e, wih_b,
                     preferred_element_type=jnp.float32).astype(jnp.bfloat16)

    # T-chunking (pipelined "arbitrary" grid axis).
    Tc = min(T, 64)
    nK = pl.cdiv(T, Tc)
    T_pad = nK * Tc
    if T_pad != T:
        g_f = jnp.pad(g_f, ((0, T_pad - T), (0, 0), (0, 0), (0, 0)))
        g_b = jnp.pad(g_b, ((0, T_pad - T), (0, 0), (0, 0), (0, 0)))

    # Lengths (int masks) and clamped reciprocals (mean pooling).
    def prep_len(lengths):
        l = lengths.astype(jnp.int32).reshape(-1, 1)        # (B, 1)
        if pad_b:
            l = jnp.pad(l, ((0, pad_b), (0, 0)))             # pad rows -> 0
        return l

    lens = arrange_batch(prep_len(X1_lengths), prep_len(X2_lengths))  # (nB,B2,1)
    inv = 1.0 / jnp.maximum(lens, 1).astype(jnp.float32)              # >= 1

    # fc head weights.
    w1 = params["fc1_w"].T                          # (4H, Hout)
    b1 = params["fc1_b"].reshape(1, -1)             # (1, Hout)
    w2 = params["fc2_w"].T                          # (Hout, 1)
    b2 = params["fc2_b"].reshape(1, -1)             # (1, 1)
    Hout = w1.shape[1]

    # VMEM budget from the actual chunk/buffer footprint (double-buffered bf16
    # gate chunks dominate); cap below v7x's 64 MiB physical VMEM.
    chunk_bytes = Tc * B2 * G * 2
    est = (2 * 2 * chunk_bytes                      # g_f + g_b, double-buffered
           + 2 * H * G * 4 + 2 * G * 4              # W_hh + biases
           + (4 * H * Hout + 2 * Hout + 1) * 4      # head weights
           + 6 * B2 * H * 4                         # scratch carries
           + 2 * B2 * 2 * 4)                        # lens + inv
    vmem_limit = int(min(max(3 * est, 16 * 2 ** 20), 48 * 2 ** 20))

    kernel = _make_kernel(T_real=T, Tc=Tc, tileB=tileB,
                          needs_bwd_guard=(T_pad != T))

    full = lambda b, k: (0, 0)
    grid_spec = pltpu.PrefetchScalarGridSpec(
        num_scalar_prefetch=0,
        grid=(nB, nK),                              # (parallel, arbitrary)
        in_specs=[
            # forward gates: chunk k of batch tile b
            pl.BlockSpec((Tc, None, B2, G), lambda b, k: (k, b, 0, 0)),
            # backward gates: chunk nK-1-k (reverse sweep), same batch tile
            pl.BlockSpec((Tc, None, B2, G), lambda b, k: (nK - 1 - k, b, 0, 0)),
            pl.BlockSpec((H, G), full),             # whh_f
            pl.BlockSpec((H, G), full),             # whh_b
            pl.BlockSpec((1, G), full),             # bias fwd
            pl.BlockSpec((1, G), full),             # bias bwd
            pl.BlockSpec((None, B2, 1), lambda b, k: (b, 0, 0)),   # lens
            pl.BlockSpec((None, B2, 1), lambda b, k: (b, 0, 0)),   # 1/len
            pl.BlockSpec((4 * H, Hout), full),      # fc1 weight
            pl.BlockSpec((1, Hout), full),          # fc1 bias
            pl.BlockSpec((Hout, 1), full),          # fc2 weight
            pl.BlockSpec((1, 1), full),             # fc2 bias
        ],
        out_specs=pl.BlockSpec((tileB, 1), lambda b, k: (b, 0)),
        scratch_shapes=[pltpu.VMEM((B2, H), jnp.float32)] * 6,  # h/c/s fwd+bwd
    )

    out = pl.pallas_call(
        kernel,
        out_shape=jax.ShapeDtypeStruct((Bp, 1), jnp.float32),
        grid_spec=grid_spec,
        compiler_params=pltpu.CompilerParams(
            dimension_semantics=("parallel", "arbitrary"),
            vmem_limit_bytes=vmem_limit),
    )(g_f, g_b, whh_f, whh_b, b_f, b_b, lens, inv, w1, b1, w2, b2)

    return out[:B, 0]                               # squeeze(1), drop pad rows


if __name__ == "__main__":
    key = jax.random.PRNGKey(0)
    k_param, k_x1, k_x2 = jax.random.split(key, 3)

    vocab_size, embedding_size, hidden_size = 50, 32, 32
    B, T = 2, 8

    params = init_params(k_param, vocab_size, embedding_size, hidden_size)

    X1_lengths = jnp.array([5, 8], dtype=jnp.int32)
    X2_lengths = jnp.array([3, 7], dtype=jnp.int32)
    tids = jnp.arange(T)[None, :]
    X1 = jax.random.randint(k_x1, (B, T), 1, vocab_size)
    X2 = jax.random.randint(k_x2, (B, T), 1, vocab_size)
    X1 = jnp.where(tids < X1_lengths[:, None], X1, 0)   # pad token = 0
    X2 = jnp.where(tids < X2_lengths[:, None], X2, 0)

    out = wic_lstm_forward(params, X1, X2, X1_lengths, X2_lengths)
    out = jax.block_until_ready(out)
    assert out.shape == (B,)
    assert bool(jnp.all(jnp.isfinite(out)))
    print("KERNEL_OK")
</pallas_src>

<mosaic_0001>
module attributes {stable_mosaic.version = 11 : i64} {
  func.func @kernel(%arg0: i32, %arg1: i32, %arg2: memref<8x1x32x128xbf16, #tpu.memory_space<vmem>>, %arg3: memref<8x1x32x128xbf16, #tpu.memory_space<vmem>>, %arg4: memref<32x128xf32, #tpu.memory_space<vmem>>, %arg5: memref<32x128xf32, #tpu.memory_space<vmem>>, %arg6: memref<1x128xf32, #tpu.memory_space<vmem>>, %arg7: memref<1x128xf32, #tpu.memory_space<vmem>>, %arg8: memref<1x32x1xi32, #tpu.memory_space<vmem>>, %arg9: memref<1x32x1xf32, #tpu.memory_space<vmem>>, %arg10: memref<128x32xf32, #tpu.memory_space<vmem>>, %arg11: memref<1x32xf32, #tpu.memory_space<vmem>>, %arg12: memref<32x1xf32, #tpu.memory_space<vmem>>, %arg13: memref<1x1xf32, #tpu.memory_space<vmem>>, %arg14: memref<16x1xf32, #tpu.memory_space<vmem>>, %arg15: memref<32x32xf32, #tpu.memory_space<vmem>>, %arg16: memref<32x32xf32, #tpu.memory_space<vmem>>, %arg17: memref<32x32xf32, #tpu.memory_space<vmem>>, %arg18: memref<32x32xf32, #tpu.memory_space<vmem>>, %arg19: memref<32x32xf32, #tpu.memory_space<vmem>>, %arg20: memref<32x32xf32, #tpu.memory_space<vmem>>) attributes {dimension_semantics = [#tpu.dimension_semantics<parallel>, #tpu.dimension_semantics<arbitrary>], iteration_bounds = array<i64: 1, 1>, scalar_prefetch = 0 : i64, scratch_operands = 6 : i64, tpu.core_type = #tpu.core_type<tc>, window_params = [{transform_indices = @transform_0, window_bounds = array<i64: 8, 1, 32, 128>}, {transform_indices = @transform_1, window_bounds = array<i64: 8, 1, 32, 128>}, {pipeline_mode = #tpu.pipeline_mode<synchronous>, transform_indices = @transform_2, window_bounds = array<i64: 32, 128>}, {pipeline_mode = #tpu.pipeline_mode<synchronous>, transform_indices = @transform_3, window_bounds = array<i64: 32, 128>}, {pipeline_mode = #tpu.pipeline_mode<synchronous>, transform_indices = @transform_4, window_bounds = array<i64: 1, 128>}, {pipeline_mode = #tpu.pipeline_mode<synchronous>, transform_indices = @transform_5, window_bounds = array<i64: 1, 128>}, {transform_indices = @transform_6, window_bounds = array<i64: 1, 32, 1>}, {transform_indices = @transform_7, window_bounds = array<i64: 1, 32, 1>}, {pipeline_mode = #tpu.pipeline_mode<synchronous>, transform_indices = @transform_8, window_bounds = array<i64: 128, 32>}, {pipeline_mode = #tpu.pipeline_mode<synchronous>, transform_indices = @transform_9, window_bounds = array<i64: 1, 32>}, {pipeline_mode = #tpu.pipeline_mode<synchronous>, transform_indices = @transform_10, window_bounds = array<i64: 32, 1>}, {pipeline_mode = #tpu.pipeline_mode<synchronous>, transform_indices = @transform_11, window_bounds = array<i64: 1, 1>}, {transform_indices = @transform_12, window_bounds = array<i64: 16, 1>}]} {
    %c0_i32 = arith.constant 0 : i32
    %0 = arith.cmpi eq, %arg1, %c0_i32 : i32
    %1 = arith.extui %0 : i1 to i32
    %c0_i32_0 = arith.constant 0 : i32
    %2 = arith.cmpi ne, %1, %c0_i32_0 : i32
    scf.if %2 {
      %cst_184 = arith.constant 0.000000e+00 : f32
      %575 = vector.broadcast %cst_184 : f32 to vector<32x32xf32>
      %c0_185 = arith.constant 0 : index
      %c0_186 = arith.constant 0 : index
      %576 = vector.load %arg15[%c0_185, %c0_186] : memref<32x32xf32, #tpu.memory_space<vmem>>, vector<32x32xf32>
      tpu.vector_store %arg15[%c0_185, %c0_186], %575 {strides = array<i32>} : memref<32x32xf32, #tpu.memory_space<vmem>>, vector<32x32xf32>,
      %c0_187 = arith.constant 0 : index
      %c0_188 = arith.constant 0 : index
      %577 = vector.load %arg16[%c0_187, %c0_188] : memref<32x32xf32, #tpu.memory_space<vmem>>, vector<32x32xf32>
      tpu.vector_store %arg16[%c0_187, %c0_188], %575 {strides = array<i32>} : memref<32x32xf32, #tpu.memory_space<vmem>>, vector<32x32xf32>,
      %c0_189 = arith.constant 0 : index
      %c0_190 = arith.constant 0 : index
      %578 = vector.load %arg17[%c0_189, %c0_190] : memref<32x32xf32, #tpu.memory_space<vmem>>, vector<32x32xf32>
      tpu.vector_store %arg17[%c0_189, %c0_190], %575 {strides = array<i32>} : memref<32x32xf32, #tpu.memory_space<vmem>>, vector<32x32xf32>,
      %c0_191 = arith.constant 0 : index
      %c0_192 = arith.constant 0 : index
      %579 = vector.load %arg18[%c0_191, %c0_192] : memref<32x32xf32, #tpu.memory_space<vmem>>, vector<32x32xf32>
      tpu.vector_store %arg18[%c0_191, %c0_192], %575 {strides = array<i32>} : memref<32x32xf32, #tpu.memory_space<vmem>>, vector<32x32xf32>,
      %c0_193 = arith.constant 0 : index
      %c0_194 = arith.constant 0 : index
      %580 = vector.load %arg19[%c0_193, %c0_194] : memref<32x32xf32, #tpu.memory_space<vmem>>, vector<32x32xf32>
      tpu.vector_store %arg19[%c0_193, %c0_194], %575 {strides = array<i32>} : memref<32x32xf32, #tpu.memory_space<vmem>>, vector<32x32xf32>,
      %c0_195 = arith.constant 0 : index
      %c0_196 = arith.constant 0 : index
      %581 = vector.load %arg20[%c0_195, %c0_196] : memref<32x32xf32, #tpu.memory_space<vmem>>, vector<32x32xf32>
      tpu.vector_store %arg20[%c0_195, %c0_196], %575 {strides = array<i32>} : memref<32x32xf32, #tpu.memory_space<vmem>>, vector<32x32xf32>,
    } else {
    }
    %c0 = arith.constant 0 : index
    %c0_1 = arith.constant 0 : index
    %3 = vector.load %arg4[%c0, %c0_1] : memref<32x128xf32, #tpu.memory_space<vmem>>, vector<32x128xf32>
    %c0_2 = arith.constant 0 : index
    %c0_3 = arith.constant 0 : index
    %4 = vector.load %arg5[%c0_2, %c0_3] : memref<32x128xf32, #tpu.memory_space<vmem>>, vector<32x128xf32>
    %c0_4 = arith.constant 0 : index
    %c0_5 = arith.constant 0 : index
    %5 = vector.load %arg6[%c0_4, %c0_5] : memref<1x128xf32, #tpu.memory_space<vmem>>, vector<1x128xf32>
    %c0_6 = arith.constant 0 : index
    %c0_7 = arith.constant 0 : index
    %6 = vector.load %arg7[%c0_6, %c0_7] : memref<1x128xf32, #tpu.memory_space<vmem>>, vector<1x128xf32>
    %c0_8 = arith.constant 0 : index
    %c0_9 = arith.constant 0 : index
    %c0_10 = arith.constant 0 : index
    %7 = vector.load %arg8[%c0_8, %c0_9, %c0_10] : memref<1x32x1xi32, #tpu.memory_space<vmem>>, vector<1x32x1xi32>
    %8 = vector.shape_cast %7 : vector<1x32x1xi32> to vector<32x1xi32>
    %c8_i32 = arith.constant 8 : i32
    %9 = arith.muli %arg1, %c8_i32 : i32
    %c0_i32_11 = arith.constant 0 : i32
    %10 = arith.subi %c0_i32_11, %arg1 : i32
    %c8_i32_12 = arith.constant 8 : i32
    %11 = arith.muli %10, %c8_i32_12 : i32
    %c0_13 = arith.constant 0 : index
    %c0_14 = arith.constant 0 : index
    %12 = vector.load %arg15[%c0_13, %c0_14] : memref<32x32xf32, #tpu.memory_space<vmem>>, vector<32x32xf32>
    %c0_15 = arith.constant 0 : index
    %c0_16 = arith.constant 0 : index
    %13 = vector.load %arg16[%c0_15, %c0_16] : memref<32x32xf32, #tpu.memory_space<vmem>>, vector<32x32xf32>
    %c0_17 = arith.constant 0 : index
    %c0_18 = arith.constant 0 : index
    %14 = vector.load %arg18[%c0_17, %c0_18] : memref<32x32xf32, #tpu.memory_space<vmem>>, vector<32x32xf32>
    %c0_19 = arith.constant 0 : index
    %c0_20 = arith.constant 0 : index
    %15 = vector.load %arg19[%c0_19, %c0_20] : memref<32x32xf32, #tpu.memory_space<vmem>>, vector<32x32xf32>
    %c0_i32_21 = arith.constant 0 : i32
    %16 = arith.addi %9, %c0_i32_21 : i32
    %17 = arith.index_cast %c0_i32_21 : i32 to index
    %c0_22 = arith.constant 0 : index
    %c0_23 = arith.constant 0 : index
    %c0_24 = arith.constant 0 : index
    %18 = vector.load %arg2[%17, %c0_22, %c0_23, %c0_24] : memref<8x1x32x128xbf16, #tpu.memory_space<vmem>>, vector<1x1x32x128xbf16>
    %19 = vector.shape_cast %18 : vector<1x1x32x128xbf16> to vector<32x128xbf16>
    %20 = arith.extf %19 : vector<32x128xbf16> to vector<32x128xf32>
    %21 = vector.broadcast %5 : vector<1x128xf32> to vector<32x128xf32>
    %22 = arith.addf %20, %21 : vector<32x128xf32>
    %cst = arith.constant dense<0.000000e+00> : vector<32x128xf32>
    %23 = tpu.matmul %12, %3, %cst {dimension_numbers = #tpu.dot_dimension_numbers<[1], [0], [0], [1], [0, 0, 1, 1], [], []>} : vector<32x32xf32>, vector<32x128xf32>, vector<32x128xf32> -> vector<32x128xf32>
    %24 = arith.addf %22, %23 : vector<32x128xf32>
    %25 = vector.extract_strided_slice %24 {offsets = [0, 0], sizes = [32, 96], strides = [1, 1]} : vector<32x128xf32> to vector<32x96xf32>
    %26 = arith.negf %25 : vector<32x96xf32>
    %27 = math.exp %26 : vector<32x96xf32>
    %cst_25 = arith.constant 1.000000e+00 : f32
    %28 = vector.broadcast %cst_25 : f32 to vector<32x96xf32>
    %29 = arith.addf %28, %27 : vector<32x96xf32>
    %30 = arith.divf %28, %29 : vector<32x96xf32>
    %31 = vector.extract_strided_slice %30 {offsets = [0, 0], sizes = [32, 32], strides = [1, 1]} : vector<32x96xf32> to vector<32x32xf32>
    %32 = vector.extract_strided_slice %30 {offsets = [0, 32], sizes = [32, 32], strides = [1, 1]} : vector<32x96xf32> to vector<32x32xf32>
    %33 = vector.extract_strided_slice %30 {offsets = [0, 64], sizes = [32, 32], strides = [1, 1]} : vector<32x96xf32> to vector<32x32xf32>
    %34 = vector.extract_strided_slice %24 {offsets = [0, 96], sizes = [32, 32], strides = [1, 1]} : vector<32x128xf32> to vector<32x32xf32>
    %35 = math.tanh %34 : vector<32x32xf32>
    %36 = arith.mulf %32, %13 : vector<32x32xf32>
    %37 = arith.mulf %31, %35 : vector<32x32xf32>
    %38 = arith.addf %36, %37 : vector<32x32xf32>
    %39 = math.tanh %38 : vector<32x32xf32>
    %40 = arith.mulf %33, %39 : vector<32x32xf32>
    %c0_26 = arith.constant 0 : index
    %c0_27 = arith.constant 0 : index
    %41 = vector.load %arg17[%c0_26, %c0_27] : memref<32x32xf32, #tpu.memory_space<vmem>>, vector<32x32xf32>
    %42 = vector.broadcast %16 : i32 to vector<32x1xi32>
    %43 = arith.cmpi slt, %42, %8 : vector<32x1xi32>
    %44 = arith.extui %43 : vector<32x1xi1> to vector<32x1xi32>
    %45 = arith.sitofp %44 : vector<32x1xi32> to vector<32x1xf32>
    %46 = vector.broadcast %45 : vector<32x1xf32> to vector<32x32xf32>
    %47 = arith.mulf %40, %46 : vector<32x32xf32>
    %48 = arith.addf %41, %47 : vector<32x32xf32>
    %c0_28 = arith.constant 0 : index
    %c0_29 = arith.constant 0 : index
    %49 = vector.load %arg17[%c0_28, %c0_29] : memref<32x32xf32, #tpu.memory_space<vmem>>, vector<32x32xf32>
    tpu.vector_store %arg17[%c0_28, %c0_29], %48 {strides = array<i32>} : memref<32x32xf32, #tpu.memory_space<vmem>>, vector<32x32xf32>,
    %c7_i32 = arith.constant 7 : i32
    %50 = arith.subi %c7_i32, %c0_i32_21 : i32
    %51 = arith.addi %11, %50 : i32
    %52 = arith.index_cast %50 : i32 to index
    %c0_30 = arith.constant 0 : index
    %c0_31 = arith.constant 0 : index
    %c0_32 = arith.constant 0 : index
    %53 = vector.load %arg3[%52, %c0_30, %c0_31, %c0_32] : memref<8x1x32x128xbf16, #tpu.memory_space<vmem>>, vector<1x1x32x128xbf16>
    %54 = vector.shape_cast %53 : vector<1x1x32x128xbf16> to vector<32x128xbf16>
    %55 = arith.extf %54 : vector<32x128xbf16> to vector<32x128xf32>
    %56 = vector.broadcast %6 : vector<1x128xf32> to vector<32x128xf32>
    %57 = arith.addf %55, %56 : vector<32x128xf32>
    %cst_33 = arith.constant dense<0.000000e+00> : vector<32x128xf32>
    %58 = tpu.matmul %14, %4, %cst_33 {dimension_numbers = #tpu.dot_dimension_numbers<[1], [0], [0], [1], [0, 0, 1, 1], [], []>} : vector<32x32xf32>, vector<32x128xf32>, vector<32x128xf32> -> vector<32x128xf32>
    %59 = arith.addf %57, %58 : vector<32x128xf32>
    %60 = vector.extract_strided_slice %59 {offsets = [0, 0], sizes = [32, 96], strides = [1, 1]} : vector<32x128xf32> to vector<32x96xf32>
    %61 = arith.negf %60 : vector<32x96xf32>
    %62 = math.exp %61 : vector<32x96xf32>
    %cst_34 = arith.constant 1.000000e+00 : f32
    %63 = vector.broadcast %cst_34 : f32 to vector<32x96xf32>
    %64 = arith.addf %63, %62 : vector<32x96xf32>
    %65 = arith.divf %63, %64 : vector<32x96xf32>
    %66 = vector.extract_strided_slice %65 {offsets = [0, 0], sizes = [32, 32], strides = [1, 1]} : vector<32x96xf32> to vector<32x32xf32>
    %67 = vector.extract_strided_slice %65 {offsets = [0, 32], sizes = [32, 32], strides = [1, 1]} : vector<32x96xf32> to vector<32x32xf32>
    %68 = vector.extract_strided_slice %65 {offsets = [0, 64], sizes = [32, 32], strides = [1, 1]} : vector<32x96xf32> to vector<32x32xf32>
    %69 = vector.extract_strided_slice %59 {offsets = [0, 96], sizes = [32, 32], strides = [1, 1]} : vector<32x128xf32> to vector<32x32xf32>
    %70 = math.tanh %69 : vector<32x32xf32>
    %71 = arith.mulf %67, %15 : vector<32x32xf32>
    %72 = arith.mulf %66, %70 : vector<32x32xf32>
    %73 = arith.addf %71, %72 : vector<32x32xf32>
    %74 = math.tanh %73 : vector<32x32xf32>
    %75 = arith.mulf %68, %74 : vector<32x32xf32>
    %c0_35 = arith.constant 0 : index
    %c0_36 = arith.constant 0 : index
    %76 = vector.load %arg20[%c0_35, %c0_36] : memref<32x32xf32, #tpu.memory_space<vmem>>, vector<32x32xf32>
    %77 = vector.broadcast %51 : i32 to vector<32x1xi32>
    %78 = arith.cmpi slt, %77, %8 : vector<32x1xi32>
    %79 = arith.extui %78 : vector<32x1xi1> to vector<32x1xi32>
    %80 = arith.sitofp %79 : vector<32x1xi32> to vector<32x1xf32>
    %81 = vector.broadcast %80 : vector<32x1xf32> to vector<32x32xf32>
    %82 = arith.mulf %75, %81 : vector<32x32xf32>
    %83 = arith.addf %76, %82 : vector<32x32xf32>
    %c0_37 = arith.constant 0 : index
    %c0_38 = arith.constant 0 : index
    %84 = vector.load %arg20[%c0_37, %c0_38] : memref<32x32xf32, #tpu.memory_space<vmem>>, vector<32x32xf32>
    tpu.vector_store %arg20[%c0_37, %c0_38], %83 {strides = array<i32>} : memref<32x32xf32, #tpu.memory_space<vmem>>, vector<32x32xf32>,
    %c1_i32 = arith.constant 1 : i32
    %85 = arith.addi %9, %c1_i32 : i32
    %86 = arith.index_cast %c1_i32 : i32 to index
    %c0_39 = arith.constant 0 : index
    %c0_40 = arith.constant 0 : index
    %c0_41 = arith.constant 0 : index
    %87 = vector.load %arg2[%86, %c0_39, %c0_40, %c0_41] : memref<8x1x32x128xbf16, #tpu.memory_space<vmem>>, vector<1x1x32x128xbf16>
    %88 = vector.shape_cast %87 : vector<1x1x32x128xbf16> to vector<32x128xbf16>
    %89 = arith.extf %88 : vector<32x128xbf16> to vector<32x128xf32>
    %90 = vector.broadcast %5 : vector<1x128xf32> to vector<32x128xf32>
    %91 = arith.addf %89, %90 : vector<32x128xf32>
    %cst_42 = arith.constant dense<0.000000e+00> : vector<32x128xf32>
    %92 = tpu.matmul %40, %3, %cst_42 {dimension_numbers = #tpu.dot_dimension_numbers<[1], [0], [0], [1], [0, 0, 1, 1], [], []>} : vector<32x32xf32>, vector<32x128xf32>, vector<32x128xf32> -> vector<32x128xf32>
    %93 = arith.addf %91, %92 : vector<32x128xf32>
    %94 = vector.extract_strided_slice %93 {offsets = [0, 0], sizes = [32, 96], strides = [1, 1]} : vector<32x128xf32> to vector<32x96xf32>
    %95 = arith.negf %94 : vector<32x96xf32>
    %96 = math.exp %95 : vector<32x96xf32>
    %cst_43 = arith.constant 1.000000e+00 : f32
    %97 = vector.broadcast %cst_43 : f32 to vector<32x96xf32>
    %98 = arith.addf %97, %96 : vector<32x96xf32>
    %99 = arith.divf %97, %98 : vector<32x96xf32>
    %100 = vector.extract_strided_slice %99 {offsets = [0, 0], sizes = [32, 32], strides = [1, 1]} : vector<32x96xf32> to vector<32x32xf32>
    %101 = vector.extract_strided_slice %99 {offsets = [0, 32], sizes = [32, 32], strides = [1, 1]} : vector<32x96xf32> to vector<32x32xf32>
    %102 = vector.extract_strided_slice %99 {offsets = [0, 64], sizes = [32, 32], strides = [1, 1]} : vector<32x96xf32> to vector<32x32xf32>
    %103 = vector.extract_strided_slice %93 {offsets = [0, 96], sizes = [32, 32], strides = [1, 1]} : vector<32x128xf32> to vector<32x32xf32>
    %104 = math.tanh %103 : vector<32x32xf32>
    %105 = arith.mulf %101, %38 : vector<32x32xf32>
    %106 = arith.mulf %100, %104 : vector<32x32xf32>
    %107 = arith.addf %105, %106 : vector<32x32xf32>
    %108 = math.tanh %107 : vector<32x32xf32>
    %109 = arith.mulf %102, %108 : vector<32x32xf32>
    %c0_44 = arith.constant 0 : index
    %c0_45 = arith.constant 0 : index
    %110 = vector.load %arg17[%c0_44, %c0_45] : memref<32x32xf32, #tpu.memory_space<vmem>>, vector<32x32xf32>
    %111 = vector.broadcast %85 : i32 to vector<32x1xi32>
    %112 = arith.cmpi slt, %111, %8 : vector<32x1xi32>
    %113 = arith.extui %112 : vector<32x1xi1> to vector<32x1xi32>
    %114 = arith.sitofp %113 : vector<32x1xi32> to vector<32x1xf32>
    %115 = vector.broadcast %114 : vector<32x1xf32> to vector<32x32xf32>
    %116 = arith.mulf %109, %115 : vector<32x32xf32>
    %117 = arith.addf %110, %116 : vector<32x32xf32>
    %c0_46 = arith.constant 0 : index
    %c0_47 = arith.constant 0 : index
    %118 = vector.load %arg17[%c0_46, %c0_47] : memref<32x32xf32, #tpu.memory_space<vmem>>, vector<32x32xf32>
    tpu.vector_store %arg17[%c0_46, %c0_47], %117 {strides = array<i32>} : memref<32x32xf32, #tpu.memory_space<vmem>>, vector<32x32xf32>,
    %c7_i32_48 = arith.constant 7 : i32
    %119 = arith.subi %c7_i32_48, %c1_i32 : i32
    %120 = arith.addi %11, %119 : i32
    %121 = arith.index_cast %119 : i32 to index
    %c0_49 = arith.constant 0 : index
    %c0_50 = arith.constant 0 : index
    %c0_51 = arith.constant 0 : index
    %122 = vector.load %arg3[%121, %c0_49, %c0_50, %c0_51] : memref<8x1x32x128xbf16, #tpu.memory_space<vmem>>, vector<1x1x32x128xbf16>
    %123 = vector.shape_cast %122 : vector<1x1x32x128xbf16> to vector<32x128xbf16>
    %124 = arith.extf %123 : vector<32x128xbf16> to vector<32x128xf32>
    %125 = vector.broadcast %6 : vector<1x128xf32> to vector<32x128xf32>
    %126 = arith.addf %124, %125 : vector<32x128xf32>
    %cst_52 = arith.constant dense<0.000000e+00> : vector<32x128xf32>
    %127 = tpu.matmul %75, %4, %cst_52 {dimension_numbers = #tpu.dot_dimension_numbers<[1], [0], [0], [1], [0, 0, 1, 1], [], []>} : vector<32x32xf32>, vector<32x128xf32>, vector<32x128xf32> -> vector<32x128xf32>
    %128 = arith.addf %126, %127 : vector<32x128xf32>
    %129 = vector.extract_strided_slice %128 {offsets = [0, 0], sizes = [32, 96], strides = [1, 1]} : vector<32x128xf32> to vector<32x96xf32>
    %130 = arith.negf %129 : vector<32x96xf32>
    %131 = math.exp %130 : vector<32x96xf32>
    %cst_53 = arith.constant 1.000000e+00 : f32
    %132 = vector.broadcast %cst_53 : f32 to vector<32x96xf32>
    %133 = arith.addf %132, %131 : vector<32x96xf32>
    %134 = arith.divf %132, %133 : vector<32x96xf32>
    %135 = vector.extract_strided_slice %134 {offsets = [0, 0], sizes = [32, 32], strides = [1, 1]} : vector<32x96xf32> to vector<32x32xf32>
    %136 = vector.extract_strided_slice %134 {offsets = [0, 32], sizes = [32, 32], strides = [1, 1]} : vector<32x96xf32> to vector<32x32xf32>
    %137 = vector.extract_strided_slice %134 {offsets = [0, 64], sizes = [32, 32], strides = [1, 1]} : vector<32x96xf32> to vector<32x32xf32>
    %138 = vector.extract_strided_slice %128 {offsets = [0, 96], sizes = [32, 32], strides = [1, 1]} : vector<32x128xf32> to vector<32x32xf32>
    %139 = math.tanh %138 : vector<32x32xf32>
    %140 = arith.mulf %136, %73 : vector<32x32xf32>
    %141 = arith.mulf %135, %139 : vector<32x32xf32>
    %142 = arith.addf %140, %141 : vector<32x32xf32>
    %143 = math.tanh %142 : vector<32x32xf32>
    %144 = arith.mulf %137, %143 : vector<32x32xf32>
    %c0_54 = arith.constant 0 : index
    %c0_55 = arith.constant 0 : index
    %145 = vector.load %arg20[%c0_54, %c0_55] : memref<32x32xf32, #tpu.memory_space<vmem>>, vector<32x32xf32>
    %146 = vector.broadcast %120 : i32 to vector<32x1xi32>
    %147 = arith.cmpi slt, %146, %8 : vector<32x1xi32>
    %148 = arith.extui %147 : vector<32x1xi1> to vector<32x1xi32>
    %149 = arith.sitofp %148 : vector<32x1xi32> to vector<32x1xf32>
    %150 = vector.broadcast %149 : vector<32x1xf32> to vector<32x32xf32>
    %151 = arith.mulf %144, %150 : vector<32x32xf32>
    %152 = arith.addf %145, %151 : vector<32x32xf32>
    %c0_56 = arith.constant 0 : index
    %c0_57 = arith.constant 0 : index
    %153 = vector.load %arg20[%c0_56, %c0_57] : memref<32x32xf32, #tpu.memory_space<vmem>>, vector<32x32xf32>
    tpu.vector_store %arg20[%c0_56, %c0_57], %152 {strides = array<i32>} : memref<32x32xf32, #tpu.memory_space<vmem>>, vector<32x32xf32>,
    %c2_i32 = arith.constant 2 : i32
    %154 = arith.addi %9, %c2_i32 : i32
    %155 = arith.index_cast %c2_i32 : i32 to index
    %c0_58 = arith.constant 0 : index
    %c0_59 = arith.constant 0 : index
    %c0_60 = arith.constant 0 : index
    %156 = vector.load %arg2[%155, %c0_58, %c0_59, %c0_60] : memref<8x1x32x128xbf16, #tpu.memory_space<vmem>>, vector<1x1x32x128xbf16>
    %157 = vector.shape_cast %156 : vector<1x1x32x128xbf16> to vector<32x128xbf16>
    %158 = arith.extf %157 : vector<32x128xbf16> to vector<32x128xf32>
    %159 = vector.broadcast %5 : vector<1x128xf32> to vector<32x128xf32>
    %160 = arith.addf %158, %159 : vector<32x128xf32>
    %cst_61 = arith.constant dense<0.000000e+00> : vector<32x128xf32>
    %161 = tpu.matmul %109, %3, %cst_61 {dimension_numbers = #tpu.dot_dimension_numbers<[1], [0], [0], [1], [0, 0, 1, 1], [], []>} : vector<32x32xf32>, vector<32x128xf32>, vector<32x128xf32> -> vector<32x128xf32>
    %162 = arith.addf %160, %161 : vector<32x128xf32>
    %163 = vector.extract_strided_slice %162 {offsets = [0, 0], sizes = [32, 96], strides = [1, 1]} : vector<32x128xf32> to vector<32x96xf32>
    %164 = arith.negf %163 : vector<32x96xf32>
    %165 = math.exp %164 : vector<32x96xf32>
    %cst_62 = arith.constant 1.000000e+00 : f32
    %166 = vector.broadcast %cst_62 : f32 to vector<32x96xf32>
    %167 = arith.addf %166, %165 : vector<32x96xf32>
    %168 = arith.divf %166, %167 : vector<32x96xf32>
    %169 = vector.extract_strided_slice %168 {offsets = [0, 0], sizes = [32, 32], strides = [1, 1]} : vector<32x96xf32> to vector<32x32xf32>
    %170 = vector.extract_strided_slice %168 {offsets = [0, 32], sizes = [32, 32], strides = [1, 1]} : vector<32x96xf32> to vector<32x32xf32>
    %171 = vector.extract_strided_slice %168 {offsets = [0, 64], sizes = [32, 32], strides = [1, 1]} : vector<32x96xf32> to vector<32x32xf32>
    %172 = vector.extract_strided_slice %162 {offsets = [0, 96], sizes = [32, 32], strides = [1, 1]} : vector<32x128xf32> to vector<32x32xf32>
    %173 = math.tanh %172 : vector<32x32xf32>
    %174 = arith.mulf %170, %107 : vector<32x32xf32>
    %175 = arith.mulf %169, %173 : vector<32x32xf32>
    %176 = arith.addf %174, %175 : vector<32x32xf32>
    %177 = math.tanh %176 : vector<32x32xf32>
    %178 = arith.mulf %171, %177 : vector<32x32xf32>
    %c0_63 = arith.constant 0 : index
    %c0_64 = arith.constant 0 : index
    %179 = vector.load %arg17[%c0_63, %c0_64] : memref<32x32xf32, #tpu.memory_space<vmem>>, vector<32x32xf32>
    %180 = vector.broadcast %154 : i32 to vector<32x1xi32>
    %181 = arith.cmpi slt, %180, %8 : vector<32x1xi32>
    %182 = arith.extui %181 : vector<32x1xi1> to vector<32x1xi32>
    %183 = arith.sitofp %182 : vector<32x1xi32> to vector<32x1xf32>
    %184 = vector.broadcast %183 : vector<32x1xf32> to vector<32x32xf32>
    %185 = arith.mulf %178, %184 : vector<32x32xf32>
    %186 = arith.addf %179, %185 : vector<32x32xf32>
    %c0_65 = arith.constant 0 : index
    %c0_66 = arith.constant 0 : index
    %187 = vector.load %arg17[%c0_65, %c0_66] : memref<32x32xf32, #tpu.memory_space<vmem>>, vector<32x32xf32>
    tpu.vector_store %arg17[%c0_65, %c0_66], %186 {strides = array<i32>} : memref<32x32xf32, #tpu.memory_space<vmem>>, vector<32x32xf32>,
    %c7_i32_67 = arith.constant 7 : i32
    %188 = arith.subi %c7_i32_67, %c2_i32 : i32
    %189 = arith.addi %11, %188 : i32
    %190 = arith.index_cast %188 : i32 to index
    %c0_68 = arith.constant 0 : index
    %c0_69 = arith.constant 0 : index
    %c0_70 = arith.constant 0 : index
    %191 = vector.load %arg3[%190, %c0_68, %c0_69, %c0_70] : memref<8x1x32x128xbf16, #tpu.memory_space<vmem>>, vector<1x1x32x128xbf16>
    %192 = vector.shape_cast %191 : vector<1x1x32x128xbf16> to vector<32x128xbf16>
    %193 = arith.extf %192 : vector<32x128xbf16> to vector<32x128xf32>
    %194 = vector.broadcast %6 : vector<1x128xf32> to vector<32x128xf32>
    %195 = arith.addf %193, %194 : vector<32x128xf32>
    %cst_71 = arith.constant dense<0.000000e+00> : vector<32x128xf32>
    %196 = tpu.matmul %144, %4, %cst_71 {dimension_numbers = #tpu.dot_dimension_numbers<[1], [0], [0], [1], [0, 0, 1, 1], [], []>} : vector<32x32xf32>, vector<32x128xf32>, vector<32x128xf32> -> vector<32x128xf32>
    %197 = arith.addf %195, %196 : vector<32x128xf32>
    %198 = vector.extract_strided_slice %197 {offsets = [0, 0], sizes = [32, 96], strides = [1, 1]} : vector<32x128xf32> to vector<32x96xf32>
    %199 = arith.negf %198 : vector<32x96xf32>
    %200 = math.exp %199 : vector<32x96xf32>
    %cst_72 = arith.constant 1.000000e+00 : f32
    %201 = vector.broadcast %cst_72 : f32 to vector<32x96xf32>
    %202 = arith.addf %201, %200 : vector<32x96xf32>
    %203 = arith.divf %201, %202 : vector<32x96xf32>
    %204 = vector.extract_strided_slice %203 {offsets = [0, 0], sizes = [32, 32], strides = [1, 1]} : vector<32x96xf32> to vector<32x32xf32>
    %205 = vector.extract_strided_slice %203 {offsets = [0, 32], sizes = [32, 32], strides = [1, 1]} : vector<32x96xf32> to vector<32x32xf32>
    %206 = vector.extract_strided_slice %203 {offsets = [0, 64], sizes = [32, 32], strides = [1, 1]} : vector<32x96xf32> to vector<32x32xf32>
    %207 = vector.extract_strided_slice %197 {offsets = [0, 96], sizes = [32, 32], strides = [1, 1]} : vector<32x128xf32> to vector<32x32xf32>
    %208 = math.tanh %207 : vector<32x32xf32>
    %209 = arith.mulf %205, %142 : vector<32x32xf32>
    %210 = arith.mulf %204, %208 : vector<32x32xf32>
    %211 = arith.addf %209, %210 : vector<32x32xf32>
    %212 = math.tanh %211 : vector<32x32xf32>
    %213 = arith.mulf %206, %212 : vector<32x32xf32>
    %c0_73 = arith.constant 0 : index
    %c0_74 = arith.constant 0 : index
    %214 = vector.load %arg20[%c0_73, %c0_74] : memref<32x32xf32, #tpu.memory_space<vmem>>, vector<32x32xf32>
    %215 = vector.broadcast %189 : i32 to vector<32x1xi32>
    %216 = arith.cmpi slt, %215, %8 : vector<32x1xi32>
    %217 = arith.extui %216 : vector<32x1xi1> to vector<32x1xi32>
    %218 = arith.sitofp %217 : vector<32x1xi32> to vector<32x1xf32>
    %219 = vector.broadcast %218 : vector<32x1xf32> to vector<32x32xf32>
    %220 = arith.mulf %213, %219 : vector<32x32xf32>
    %221 = arith.addf %214, %220 : vector<32x32xf32>
    %c0_75 = arith.constant 0 : index
    %c0_76 = arith.constant 0 : index
    %222 = vector.load %arg20[%c0_75, %c0_76] : memref<32x32xf32, #tpu.memory_space<vmem>>, vector<32x32xf32>
    tpu.vector_store %arg20[%c0_75, %c0_76], %221 {strides = array<i32>} : memref<32x32xf32, #tpu.memory_space<vmem>>, vector<32x32xf32>,
    %c3_i32 = arith.constant 3 : i32
    %223 = arith.addi %9, %c3_i32 : i32
    %224 = arith.index_cast %c3_i32 : i32 to index
    %c0_77 = arith.constant 0 : index
    %c0_78 = arith.constant 0 : index
    %c0_79 = arith.constant 0 : index
    %225 = vector.load %arg2[%224, %c0_77, %c0_78, %c0_79] : memref<8x1x32x128xbf16, #tpu.memory_space<vmem>>, vector<1x1x32x128xbf16>
    %226 = vector.shape_cast %225 : vector<1x1x32x128xbf16> to vector<32x128xbf16>
    %227 = arith.extf %226 : vector<32x128xbf16> to vector<32x128xf32>
    %228 = vector.broadcast %5 : vector<1x128xf32> to vector<32x128xf32>
    %229 = arith.addf %227, %228 : vector<32x128xf32>
    %cst_80 = arith.constant dense<0.000000e+00> : vector<32x128xf32>
    %230 = tpu.matmul %178, %3, %cst_80 {dimension_numbers = #tpu.dot_dimension_numbers<[1], [0], [0], [1], [0, 0, 1, 1], [], []>} : vector<32x32xf32>, vector<32x128xf32>, vector<32x128xf32> -> vector<32x128xf32>
    %231 = arith.addf %229, %230 : vector<32x128xf32>
    %232 = vector.extract_strided_slice %231 {offsets = [0, 0], sizes = [32, 96], strides = [1, 1]} : vector<32x128xf32> to vector<32x96xf32>
    %233 = arith.negf %232 : vector<32x96xf32>
    %234 = math.exp %233 : vector<32x96xf32>
    %cst_81 = arith.constant 1.000000e+00 : f32
    %235 = vector.broadcast %cst_81 : f32 to vector<32x96xf32>
    %236 = arith.addf %235, %234 : vector<32x96xf32>
    %237 = arith.divf %235, %236 : vector<32x96xf32>
    %238 = vector.extract_strided_slice %237 {offsets = [0, 0], sizes = [32, 32], strides = [1, 1]} : vector<32x96xf32> to vector<32x32xf32>
    %239 = vector.extract_strided_slice %237 {offsets = [0, 32], sizes = [32, 32], strides = [1, 1]} : vector<32x96xf32> to vector<32x32xf32>
    %240 = vector.extract_strided_slice %237 {offsets = [0, 64], sizes = [32, 32], strides = [1, 1]} : vector<32x96xf32> to vector<32x32xf32>
    %241 = vector.extract_strided_slice %231 {offsets = [0, 96], sizes = [32, 32], strides = [1, 1]} : vector<32x128xf32> to vector<32x32xf32>
    %242 = math.tanh %241 : vector<32x32xf32>
    %243 = arith.mulf %239, %176 : vector<32x32xf32>
    %244 = arith.mulf %238, %242 : vector<32x32xf32>
    %245 = arith.addf %243, %244 : vector<32x32xf32>
    %246 = math.tanh %245 : vector<32x32xf32>
    %247 = arith.mulf %240, %246 : vector<32x32xf32>
    %c0_82 = arith.constant 0 : index
    %c0_83 = arith.constant 0 : index
    %248 = vector.load %arg17[%c0_82, %c0_83] : memref<32x32xf32, #tpu.memory_space<vmem>>, vector<32x32xf32>
    %249 = vector.broadcast %223 : i32 to vector<32x1xi32>
    %250 = arith.cmpi slt, %249, %8 : vector<32x1xi32>
    %251 = arith.extui %250 : vector<32x1xi1> to vector<32x1xi32>
    %252 = arith.sitofp %251 : vector<32x1xi32> to vector<32x1xf32>
    %253 = vector.broadcast %252 : vector<32x1xf32> to vector<32x32xf32>
    %254 = arith.mulf %247, %253 : vector<32x32xf32>
    %255 = arith.addf %248, %254 : vector<32x32xf32>
    %c0_84 = arith.constant 0 : index
    %c0_85 = arith.constant 0 : index
    %256 = vector.load %arg17[%c0_84, %c0_85] : memref<32x32xf32, #tpu.memory_space<vmem>>, vector<32x32xf32>
    tpu.vector_store %arg17[%c0_84, %c0_85], %255 {strides = array<i32>} : memref<32x32xf32, #tpu.memory_space<vmem>>, vector<32x32xf32>,
    %c7_i32_86 = arith.constant 7 : i32
    %257 = arith.subi %c7_i32_86, %c3_i32 : i32
    %258 = arith.addi %11, %257 : i32
    %259 = arith.index_cast %257 : i32 to index
    %c0_87 = arith.constant 0 : index
    %c0_88 = arith.constant 0 : index
    %c0_89 = arith.constant 0 : index
    %260 = vector.load %arg3[%259, %c0_87, %c0_88, %c0_89] : memref<8x1x32x128xbf16, #tpu.memory_space<vmem>>, vector<1x1x32x128xbf16>
    %261 = vector.shape_cast %260 : vector<1x1x32x128xbf16> to vector<32x128xbf16>
    %262 = arith.extf %261 : vector<32x128xbf16> to vector<32x128xf32>
    %263 = vector.broadcast %6 : vector<1x128xf32> to vector<32x128xf32>
    %264 = arith.addf %262, %263 : vector<32x128xf32>
    %cst_90 = arith.constant dense<0.000000e+00> : vector<32x128xf32>
    %265 = tpu.matmul %213, %4, %cst_90 {dimension_numbers = #tpu.dot_dimension_numbers<[1], [0], [0], [1], [0, 0, 1, 1], [], []>} : vector<32x32xf32>, vector<32x128xf32>, vector<32x128xf32> -> vector<32x128xf32>
    %266 = arith.addf %264, %265 : vector<32x128xf32>
    %267 = vector.extract_strided_slice %266 {offsets = [0, 0], sizes = [32, 96], strides = [1, 1]} : vector<32x128xf32> to vector<32x96xf32>
    %268 = arith.negf %267 : vector<32x96xf32>
    %269 = math.exp %268 : vector<32x96xf32>
    %cst_91 = arith.constant 1.000000e+00 : f32
    %270 = vector.broadcast %cst_91 : f32 to vector<32x96xf32>
    %271 = arith.addf %270, %269 : vector<32x96xf32>
    %272 = arith.divf %270, %271 : vector<32x96xf32>
    %273 = vector.extract_strided_slice %272 {offsets = [0, 0], sizes = [32, 32], strides = [1, 1]} : vector<32x96xf32> to vector<32x32xf32>
    %274 = vector.extract_strided_slice %272 {offsets = [0, 32], sizes = [32, 32], strides = [1, 1]} : vector<32x96xf32> to vector<32x32xf32>
    %275 = vector.extract_strided_slice %272 {offsets = [0, 64], sizes = [32, 32], strides = [1, 1]} : vector<32x96xf32> to vector<32x32xf32>
    %276 = vector.extract_strided_slice %266 {offsets = [0, 96], sizes = [32, 32], strides = [1, 1]} : vector<32x128xf32> to vector<32x32xf32>
    %277 = math.tanh %276 : vector<32x32xf32>
    %278 = arith.mulf %274, %211 : vector<32x32xf32>
    %279 = arith.mulf %273, %277 : vector<32x32xf32>
    %280 = arith.addf %278, %279 : vector<32x32xf32>
    %281 = math.tanh %280 : vector<32x32xf32>
    %282 = arith.mulf %275, %281 : vector<32x32xf32>
    %c0_92 = arith.constant 0 : index
    %c0_93 = arith.constant 0 : index
    %283 = vector.load %arg20[%c0_92, %c0_93] : memref<32x32xf32, #tpu.memory_space<vmem>>, vector<32x32xf32>
    %284 = vector.broadcast %258 : i32 to vector<32x1xi32>
    %285 = arith.cmpi slt, %284, %8 : vector<32x1xi32>
    %286 = arith.extui %285 : vector<32x1xi1> to vector<32x1xi32>
    %287 = arith.sitofp %286 : vector<32x1xi32> to vector<32x1xf32>
    %288 = vector.broadcast %287 : vector<32x1xf32> to vector<32x32xf32>
    %289 = arith.mulf %282, %288 : vector<32x32xf32>
    %290 = arith.addf %283, %289 : vector<32x32xf32>
    %c0_94 = arith.constant 0 : index
    %c0_95 = arith.constant 0 : index
    %291 = vector.load %arg20[%c0_94, %c0_95] : memref<32x32xf32, #tpu.memory_space<vmem>>, vector<32x32xf32>
    tpu.vector_store %arg20[%c0_94, %c0_95], %290 {strides = array<i32>} : memref<32x32xf32, #tpu.memory_space<vmem>>, vector<32x32xf32>,
    %c4_i32 = arith.constant 4 : i32
    %292 = arith.addi %9, %c4_i32 : i32
    %293 = arith.index_cast %c4_i32 : i32 to index
    %c0_96 = arith.constant 0 : index
    %c0_97 = arith.constant 0 : index
    %c0_98 = arith.constant 0 : index
    %294 = vector.load %arg2[%293, %c0_96, %c0_97, %c0_98] : memref<8x1x32x128xbf16, #tpu.memory_space<vmem>>, vector<1x1x32x128xbf16>
    %295 = vector.shape_cast %294 : vector<1x1x32x128xbf16> to vector<32x128xbf16>
    %296 = arith.extf %295 : vector<32x128xbf16> to vector<32x128xf32>
    %297 = vector.broadcast %5 : vector<1x128xf32> to vector<32x128xf32>
    %298 = arith.addf %296, %297 : vector<32x128xf32>
    %cst_99 = arith.constant dense<0.000000e+00> : vector<32x128xf32>
    %299 = tpu.matmul %247, %3, %cst_99 {dimension_numbers = #tpu.dot_dimension_numbers<[1], [0], [0], [1], [0, 0, 1, 1], [], []>} : vector<32x32xf32>, vector<32x128xf32>, vector<32x128xf32> -> vector<32x128xf32>
    %300 = arith.addf %298, %299 : vector<32x128xf32>
    %301 = vector.extract_strided_slice %300 {offsets = [0, 0], sizes = [32, 96], strides = [1, 1]} : vector<32x128xf32> to vector<32x96xf32>
    %302 = arith.negf %301 : vector<32x96xf32>
    %303 = math.exp %302 : vector<32x96xf32>
    %cst_100 = arith.constant 1.000000e+00 : f32
    %304 = vector.broadcast %cst_100 : f32 to vector<32x96xf32>
    %305 = arith.addf %304, %303 : vector<32x96xf32>
    %306 = arith.divf %304, %305 : vector<32x96xf32>
    %307 = vector.extract_strided_slice %306 {offsets = [0, 0], sizes = [32, 32], strides = [1, 1]} : vector<32x96xf32> to vector<32x32xf32>
    %308 = vector.extract_strided_slice %306 {offsets = [0, 32], sizes = [32, 32], strides = [1, 1]} : vector<32x96xf32> to vector<32x32xf32>
    %309 = vector.extract_strided_slice %306 {offsets = [0, 64], sizes = [32, 32], strides = [1, 1]} : vector<32x96xf32> to vector<32x32xf32>
    %310 = vector.extract_strided_slice %300 {offsets = [0, 96], sizes = [32, 32], strides = [1, 1]} : vector<32x128xf32> to vector<32x32xf32>
    %311 = math.tanh %310 : vector<32x32xf32>
    %312 = arith.mulf %308, %245 : vector<32x32xf32>
    %313 = arith.mulf %307, %311 : vector<32x32xf32>
    %314 = arith.addf %312, %313 : vector<32x32xf32>
    %315 = math.tanh %314 : vector<32x32xf32>
    %316 = arith.mulf %309, %315 : vector<32x32xf32>
    %c0_101 = arith.constant 0 : index
    %c0_102 = arith.constant 0 : index
    %317 = vector.load %arg17[%c0_101, %c0_102] : memref<32x32xf32, #tpu.memory_space<vmem>>, vector<32x32xf32>
    %318 = vector.broadcast %292 : i32 to vector<32x1xi32>
    %319 = arith.cmpi slt, %318, %8 : vector<32x1xi32>
    %320 = arith.extui %319 : vector<32x1xi1> to vector<32x1xi32>
    %321 = arith.sitofp %320 : vector<32x1xi32> to vector<32x1xf32>
    %322 = vector.broadcast %321 : vector<32x1xf32> to vector<32x32xf32>
    %323 = arith.mulf %316, %322 : vector<32x32xf32>
    %324 = arith.addf %317, %323 : vector<32x32xf32>
    %c0_103 = arith.constant 0 : index
    %c0_104 = arith.constant 0 : index
    %325 = vector.load %arg17[%c0_103, %c0_104] : memref<32x32xf32, #tpu.memory_space<vmem>>, vector<32x32xf32>
    tpu.vector_store %arg17[%c0_103, %c0_104], %324 {strides = array<i32>} : memref<32x32xf32, #tpu.memory_space<vmem>>, vector<32x32xf32>,
    %c7_i32_105 = arith.constant 7 : i32
    %326 = arith.subi %c7_i32_105, %c4_i32 : i32
    %327 = arith.addi %11, %326 : i32
    %328 = arith.index_cast %326 : i32 to index
    %c0_106 = arith.constant 0 : index
    %c0_107 = arith.constant 0 : index
    %c0_108 = arith.constant 0 : index
    %329 = vector.load %arg3[%328, %c0_106, %c0_107, %c0_108] : memref<8x1x32x128xbf16, #tpu.memory_space<vmem>>, vector<1x1x32x128xbf16>
    %330 = vector.shape_cast %329 : vector<1x1x32x128xbf16> to vector<32x128xbf16>
    %331 = arith.extf %330 : vector<32x128xbf16> to vector<32x128xf32>
    %332 = vector.broadcast %6 : vector<1x128xf32> to vector<32x128xf32>
    %333 = arith.addf %331, %332 : vector<32x128xf32>
    %cst_109 = arith.constant dense<0.000000e+00> : vector<32x128xf32>
    %334 = tpu.matmul %282, %4, %cst_109 {dimension_numbers = #tpu.dot_dimension_numbers<[1], [0], [0], [1], [0, 0, 1, 1], [], []>} : vector<32x32xf32>, vector<32x128xf32>, vector<32x128xf32> -> vector<32x128xf32>
    %335 = arith.addf %333, %334 : vector<32x128xf32>
    %336 = vector.extract_strided_slice %335 {offsets = [0, 0], sizes = [32, 96], strides = [1, 1]} : vector<32x128xf32> to vector<32x96xf32>
    %337 = arith.negf %336 : vector<32x96xf32>
    %338 = math.exp %337 : vector<32x96xf32>
    %cst_110 = arith.constant 1.000000e+00 : f32
    %339 = vector.broadcast %cst_110 : f32 to vector<32x96xf32>
    %340 = arith.addf %339, %338 : vector<32x96xf32>
    %341 = arith.divf %339, %340 : vector<32x96xf32>
    %342 = vector.extract_strided_slice %341 {offsets = [0, 0], sizes = [32, 32], strides = [1, 1]} : vector<32x96xf32> to vector<32x32xf32>
    %343 = vector.extract_strided_slice %341 {offsets = [0, 32], sizes = [32, 32], strides = [1, 1]} : vector<32x96xf32> to vector<32x32xf32>
    %344 = vector.extract_strided_slice %341 {offsets = [0, 64], sizes = [32, 32], strides = [1, 1]} : vector<32x96xf32> to vector<32x32xf32>
    %345 = vector.extract_strided_slice %335 {offsets = [0, 96], sizes = [32, 32], strides = [1, 1]} : vector<32x128xf32> to vector<32x32xf32>
    %346 = math.tanh %345 : vector<32x32xf32>
    %347 = arith.mulf %343, %280 : vector<32x32xf32>
    %348 = arith.mulf %342, %346 : vector<32x32xf32>
    %349 = arith.addf %347, %348 : vector<32x32xf32>
    %350 = math.tanh %349 : vector<32x32xf32>
    %351 = arith.mulf %344, %350 : vector<32x32xf32>
    %c0_111 = arith.constant 0 : index
    %c0_112 = arith.constant 0 : index
    %352 = vector.load %arg20[%c0_111, %c0_112] : memref<32x32xf32, #tpu.memory_space<vmem>>, vector<32x32xf32>
    %353 = vector.broadcast %327 : i32 to vector<32x1xi32>
    %354 = arith.cmpi slt, %353, %8 : vector<32x1xi32>
    %355 = arith.extui %354 : vector<32x1xi1> to vector<32x1xi32>
    %356 = arith.sitofp %355 : vector<32x1xi32> to vector<32x1xf32>
    %357 = vector.broadcast %356 : vector<32x1xf32> to vector<32x32xf32>
    %358 = arith.mulf %351, %357 : vector<32x32xf32>
    %359 = arith.addf %352, %358 : vector<32x32xf32>
    %c0_113 = arith.constant 0 : index
    %c0_114 = arith.constant 0 : index
    %360 = vector.load %arg20[%c0_113, %c0_114] : memref<32x32xf32, #tpu.memory_space<vmem>>, vector<32x32xf32>
    tpu.vector_store %arg20[%c0_113, %c0_114], %359 {strides = array<i32>} : memref<32x32xf32, #tpu.memory_space<vmem>>, vector<32x32xf32>,
    %c5_i32 = arith.constant 5 : i32
    %361 = arith.addi %9, %c5_i32 : i32
    %362 = arith.index_cast %c5_i32 : i32 to index
    %c0_115 = arith.constant 0 : index
    %c0_116 = arith.constant 0 : index
    %c0_117 = arith.constant 0 : index
    %363 = vector.load %arg2[%362, %c0_115, %c0_116, %c0_117] : memref<8x1x32x128xbf16, #tpu.memory_space<vmem>>, vector<1x1x32x128xbf16>
    %364 = vector.shape_cast %363 : vector<1x1x32x128xbf16> to vector<32x128xbf16>
    %365 = arith.extf %364 : vector<32x128xbf16> to vector<32x128xf32>
    %366 = vector.broadcast %5 : vector<1x128xf32> to vector<32x128xf32>
    %367 = arith.addf %365, %366 : vector<32x128xf32>
    %cst_118 = arith.constant dense<0.000000e+00> : vector<32x128xf32>
    %368 = tpu.matmul %316, %3, %cst_118 {dimension_numbers = #tpu.dot_dimension_numbers<[1], [0], [0], [1], [0, 0, 1, 1], [], []>} : vector<32x32xf32>, vector<32x128xf32>, vector<32x128xf32> -> vector<32x128xf32>
    %369 = arith.addf %367, %368 : vector<32x128xf32>
    %370 = vector.extract_strided_slice %369 {offsets = [0, 0], sizes = [32, 96], strides = [1, 1]} : vector<32x128xf32> to vector<32x96xf32>
    %371 = arith.negf %370 : vector<32x96xf32>
    %372 = math.exp %371 : vector<32x96xf32>
    %cst_119 = arith.constant 1.000000e+00 : f32
    %373 = vector.broadcast %cst_119 : f32 to vector<32x96xf32>
    %374 = arith.addf %373, %372 : vector<32x96xf32>
    %375 = arith.divf %373, %374 : vector<32x96xf32>
    %376 = vector.extract_strided_slice %375 {offsets = [0, 0], sizes = [32, 32], strides = [1, 1]} : vector<32x96xf32> to vector<32x32xf32>
    %377 = vector.extract_strided_slice %375 {offsets = [0, 32], sizes = [32, 32], strides = [1, 1]} : vector<32x96xf32> to vector<32x32xf32>
    %378 = vector.extract_strided_slice %375 {offsets = [0, 64], sizes = [32, 32], strides = [1, 1]} : vector<32x96xf32> to vector<32x32xf32>
    %379 = vector.extract_strided_slice %369 {offsets = [0, 96], sizes = [32, 32], strides = [1, 1]} : vector<32x128xf32> to vector<32x32xf32>
    %380 = math.tanh %379 : vector<32x32xf32>
    %381 = arith.mulf %377, %314 : vector<32x32xf32>
    %382 = arith.mulf %376, %380 : vector<32x32xf32>
    %383 = arith.addf %381, %382 : vector<32x32xf32>
    %384 = math.tanh %383 : vector<32x32xf32>
    %385 = arith.mulf %378, %384 : vector<32x32xf32>
    %c0_120 = arith.constant 0 : index
    %c0_121 = arith.constant 0 : index
    %386 = vector.load %arg17[%c0_120, %c0_121] : memref<32x32xf32, #tpu.memory_space<vmem>>, vector<32x32xf32>
    %387 = vector.broadcast %361 : i32 to vector<32x1xi32>
    %388 = arith.cmpi slt, %387, %8 : vector<32x1xi32>
    %389 = arith.extui %388 : vector<32x1xi1> to vector<32x1xi32>
    %390 = arith.sitofp %389 : vector<32x1xi32> to vector<32x1xf32>
    %391 = vector.broadcast %390 : vector<32x1xf32> to vector<32x32xf32>
    %392 = arith.mulf %385, %391 : vector<32x32xf32>
    %393 = arith.addf %386, %392 : vector<32x32xf32>
    %c0_122 = arith.constant 0 : index
    %c0_123 = arith.constant 0 : index
    %394 = vector.load %arg17[%c0_122, %c0_123] : memref<32x32xf32, #tpu.memory_space<vmem>>, vector<32x32xf32>
    tpu.vector_store %arg17[%c0_122, %c0_123], %393 {strides = array<i32>} : memref<32x32xf32, #tpu.memory_space<vmem>>, vector<32x32xf32>,
    %c7_i32_124 = arith.constant 7 : i32
    %395 = arith.subi %c7_i32_124, %c5_i32 : i32
    %396 = arith.addi %11, %395 : i32
    %397 = arith.index_cast %395 : i32 to index
    %c0_125 = arith.constant 0 : index
    %c0_126 = arith.constant 0 : index
    %c0_127 = arith.constant 0 : index
    %398 = vector.load %arg3[%397, %c0_125, %c0_126, %c0_127] : memref<8x1x32x128xbf16, #tpu.memory_space<vmem>>, vector<1x1x32x128xbf16>
    %399 = vector.shape_cast %398 : vector<1x1x32x128xbf16> to vector<32x128xbf16>
    %400 = arith.extf %399 : vector<32x128xbf16> to vector<32x128xf32>
    %401 = vector.broadcast %6 : vector<1x128xf32> to vector<32x128xf32>
    %402 = arith.addf %400, %401 : vector<32x128xf32>
    %cst_128 = arith.constant dense<0.000000e+00> : vector<32x128xf32>
    %403 = tpu.matmul %351, %4, %cst_128 {dimension_numbers = #tpu.dot_dimension_numbers<[1], [0], [0], [1], [0, 0, 1, 1], [], []>} : vector<32x32xf32>, vector<32x128xf32>, vector<32x128xf32> -> vector<32x128xf32>
    %404 = arith.addf %402, %403 : vector<32x128xf32>
    %405 = vector.extract_strided_slice %404 {offsets = [0, 0], sizes = [32, 96], strides = [1, 1]} : vector<32x128xf32> to vector<32x96xf32>
    %406 = arith.negf %405 : vector<32x96xf32>
    %407 = math.exp %406 : vector<32x96xf32>
    %cst_129 = arith.constant 1.000000e+00 : f32
    %408 = vector.broadcast %cst_129 : f32 to vector<32x96xf32>
    %409 = arith.addf %408, %407 : vector<32x96xf32>
    %410 = arith.divf %408, %409 : vector<32x96xf32>
    %411 = vector.extract_strided_slice %410 {offsets = [0, 0], sizes = [32, 32], strides = [1, 1]} : vector<32x96xf32> to vector<32x32xf32>
    %412 = vector.extract_strided_slice %410 {offsets = [0, 32], sizes = [32, 32], strides = [1, 1]} : vector<32x96xf32> to vector<32x32xf32>
    %413 = vector.extract_strided_slice %410 {offsets = [0, 64], sizes = [32, 32], strides = [1, 1]} : vector<32x96xf32> to vector<32x32xf32>
    %414 = vector.extract_strided_slice %404 {offsets = [0, 96], sizes = [32, 32], strides = [1, 1]} : vector<32x128xf32> to vector<32x32xf32>
    %415 = math.tanh %414 : vector<32x32xf32>
    %416 = arith.mulf %412, %349 : vector<32x32xf32>
    %417 = arith.mulf %411, %415 : vector<32x32xf32>
    %418 = arith.addf %416, %417 : vector<32x32xf32>
    %419 = math.tanh %418 : vector<32x32xf32>
    %420 = arith.mulf %413, %419 : vector<32x32xf32>
    %c0_130 = arith.constant 0 : index
    %c0_131 = arith.constant 0 : index
    %421 = vector.load %arg20[%c0_130, %c0_131] : memref<32x32xf32, #tpu.memory_space<vmem>>, vector<32x32xf32>
    %422 = vector.broadcast %396 : i32 to vector<32x1xi32>
    %423 = arith.cmpi slt, %422, %8 : vector<32x1xi32>
    %424 = arith.extui %423 : vector<32x1xi1> to vector<32x1xi32>
    %425 = arith.sitofp %424 : vector<32x1xi32> to vector<32x1xf32>
    %426 = vector.broadcast %425 : vector<32x1xf32> to vector<32x32xf32>
    %427 = arith.mulf %420, %426 : vector<32x32xf32>
    %428 = arith.addf %421, %427 : vector<32x32xf32>
    %c0_132 = arith.constant 0 : index
    %c0_133 = arith.constant 0 : index
    %429 = vector.load %arg20[%c0_132, %c0_133] : memref<32x32xf32, #tpu.memory_space<vmem>>, vector<32x32xf32>
    tpu.vector_store %arg20[%c0_132, %c0_133], %428 {strides = array<i32>} : memref<32x32xf32, #tpu.memory_space<vmem>>, vector<32x32xf32>,
    %c6_i32 = arith.constant 6 : i32
    %430 = arith.addi %9, %c6_i32 : i32
    %431 = arith.index_cast %c6_i32 : i32 to index
    %c0_134 = arith.constant 0 : index
    %c0_135 = arith.constant 0 : index
    %c0_136 = arith.constant 0 : index
    %432 = vector.load %arg2[%431, %c0_134, %c0_135, %c0_136] : memref<8x1x32x128xbf16, #tpu.memory_space<vmem>>, vector<1x1x32x128xbf16>
    %433 = vector.shape_cast %432 : vector<1x1x32x128xbf16> to vector<32x128xbf16>
    %434 = arith.extf %433 : vector<32x128xbf16> to vector<32x128xf32>
    %435 = vector.broadcast %5 : vector<1x128xf32> to vector<32x128xf32>
    %436 = arith.addf %434, %435 : vector<32x128xf32>
    %cst_137 = arith.constant dense<0.000000e+00> : vector<32x128xf32>
    %437 = tpu.matmul %385, %3, %cst_137 {dimension_numbers = #tpu.dot_dimension_numbers<[1], [0], [0], [1], [0, 0, 1, 1], [], []>} : vector<32x32xf32>, vector<32x128xf32>, vector<32x128xf32> -> vector<32x128xf32>
    %438 = arith.addf %436, %437 : vector<32x128xf32>
    %439 = vector.extract_strided_slice %438 {offsets = [0, 0], sizes = [32, 96], strides = [1, 1]} : vector<32x128xf32> to vector<32x96xf32>
    %440 = arith.negf %439 : vector<32x96xf32>
    %441 = math.exp %440 : vector<32x96xf32>
    %cst_138 = arith.constant 1.000000e+00 : f32
    %442 = vector.broadcast %cst_138 : f32 to vector<32x96xf32>
    %443 = arith.addf %442, %441 : vector<32x96xf32>
    %444 = arith.divf %442, %443 : vector<32x96xf32>
    %445 = vector.extract_strided_slice %444 {offsets = [0, 0], sizes = [32, 32], strides = [1, 1]} : vector<32x96xf32> to vector<32x32xf32>
    %446 = vector.extract_strided_slice %444 {offsets = [0, 32], sizes = [32, 32], strides = [1, 1]} : vector<32x96xf32> to vector<32x32xf32>
    %447 = vector.extract_strided_slice %444 {offsets = [0, 64], sizes = [32, 32], strides = [1, 1]} : vector<32x96xf32> to vector<32x32xf32>
    %448 = vector.extract_strided_slice %438 {offsets = [0, 96], sizes = [32, 32], strides = [1, 1]} : vector<32x128xf32> to vector<32x32xf32>
    %449 = math.tanh %448 : vector<32x32xf32>
    %450 = arith.mulf %446, %383 : vector<32x32xf32>
    %451 = arith.mulf %445, %449 : vector<32x32xf32>
    %452 = arith.addf %450, %451 : vector<32x32xf32>
    %453 = math.tanh %452 : vector<32x32xf32>
    %454 = arith.mulf %447, %453 : vector<32x32xf32>
    %c0_139 = arith.constant 0 : index
    %c0_140 = arith.constant 0 : index
    %455 = vector.load %arg17[%c0_139, %c0_140] : memref<32x32xf32, #tpu.memory_space<vmem>>, vector<32x32xf32>
    %456 = vector.broadcast %430 : i32 to vector<32x1xi32>
    %457 = arith.cmpi slt, %456, %8 : vector<32x1xi32>
    %458 = arith.extui %457 : vector<32x1xi1> to vector<32x1xi32>
    %459 = arith.sitofp %458 : vector<32x1xi32> to vector<32x1xf32>
    %460 = vector.broadcast %459 : vector<32x1xf32> to vector<32x32xf32>
    %461 = arith.mulf %454, %460 : vector<32x32xf32>
    %462 = arith.addf %455, %461 : vector<32x32xf32>
    %c0_141 = arith.constant 0 : index
    %c0_142 = arith.constant 0 : index
    %463 = vector.load %arg17[%c0_141, %c0_142] : memref<32x32xf32, #tpu.memory_space<vmem>>, vector<32x32xf32>
    tpu.vector_store %arg17[%c0_141, %c0_142], %462 {strides = array<i32>} : memref<32x32xf32, #tpu.memory_space<vmem>>, vector<32x32xf32>,
    %c7_i32_143 = arith.constant 7 : i32
    %464 = arith.subi %c7_i32_143, %c6_i32 : i32
    %465 = arith.addi %11, %464 : i32
    %466 = arith.index_cast %464 : i32 to index
    %c0_144 = arith.constant 0 : index
    %c0_145 = arith.constant 0 : index
    %c0_146 = arith.constant 0 : index
    %467 = vector.load %arg3[%466, %c0_144, %c0_145, %c0_146] : memref<8x1x32x128xbf16, #tpu.memory_space<vmem>>, vector<1x1x32x128xbf16>
    %468 = vector.shape_cast %467 : vector<1x1x32x128xbf16> to vector<32x128xbf16>
    %469 = arith.extf %468 : vector<32x128xbf16> to vector<32x128xf32>
    %470 = vector.broadcast %6 : vector<1x128xf32> to vector<32x128xf32>
    %471 = arith.addf %469, %470 : vector<32x128xf32>
    %cst_147 = arith.constant dense<0.000000e+00> : vector<32x128xf32>
    %472 = tpu.matmul %420, %4, %cst_147 {dimension_numbers = #tpu.dot_dimension_numbers<[1], [0], [0], [1], [0, 0, 1, 1], [], []>} : vector<32x32xf32>, vector<32x128xf32>, vector<32x128xf32> -> vector<32x128xf32>
    %473 = arith.addf %471, %472 : vector<32x128xf32>
    %474 = vector.extract_strided_slice %473 {offsets = [0, 0], sizes = [32, 96], strides = [1, 1]} : vector<32x128xf32> to vector<32x96xf32>
    %475 = arith.negf %474 : vector<32x96xf32>
    %476 = math.exp %475 : vector<32x96xf32>
    %cst_148 = arith.constant 1.000000e+00 : f32
    %477 = vector.broadcast %cst_148 : f32 to vector<32x96xf32>
    %478 = arith.addf %477, %476 : vector<32x96xf32>
    %479 = arith.divf %477, %478 : vector<32x96xf32>
    %480 = vector.extract_strided_slice %479 {offsets = [0, 0], sizes = [32, 32], strides = [1, 1]} : vector<32x96xf32> to vector<32x32xf32>
    %481 = vector.extract_strided_slice %479 {offsets = [0, 32], sizes = [32, 32], strides = [1, 1]} : vector<32x96xf32> to vector<32x32xf32>
    %482 = vector.extract_strided_slice %479 {offsets = [0, 64], sizes = [32, 32], strides = [1, 1]} : vector<32x96xf32> to vector<32x32xf32>
    %483 = vector.extract_strided_slice %473 {offsets = [0, 96], sizes = [32, 32], strides = [1, 1]} : vector<32x128xf32> to vector<32x32xf32>
    %484 = math.tanh %483 : vector<32x32xf32>
    %485 = arith.mulf %481, %418 : vector<32x32xf32>
    %486 = arith.mulf %480, %484 : vector<32x32xf32>
    %487 = arith.addf %485, %486 : vector<32x32xf32>
    %488 = math.tanh %487 : vector<32x32xf32>
    %489 = arith.mulf %482, %488 : vector<32x32xf32>
    %c0_149 = arith.constant 0 : index
    %c0_150 = arith.constant 0 : index
    %490 = vector.load %arg20[%c0_149, %c0_150] : memref<32x32xf32, #tpu.memory_space<vmem>>, vector<32x32xf32>
    %491 = vector.broadcast %465 : i32 to vector<32x1xi32>
    %492 = arith.cmpi slt, %491, %8 : vector<32x1xi32>
    %493 = arith.extui %492 : vector<32x1xi1> to vector<32x1xi32>
    %494 = arith.sitofp %493 : vector<32x1xi32> to vector<32x1xf32>
    %495 = vector.broadcast %494 : vector<32x1xf32> to vector<32x32xf32>
    %496 = arith.mulf %489, %495 : vector<32x32xf32>
    %497 = arith.addf %490, %496 : vector<32x32xf32>
    %c0_151 = arith.constant 0 : index
    %c0_152 = arith.constant 0 : index
    %498 = vector.load %arg20[%c0_151, %c0_152] : memref<32x32xf32, #tpu.memory_space<vmem>>, vector<32x32xf32>
    tpu.vector_store %arg20[%c0_151, %c0_152], %497 {strides = array<i32>} : memref<32x32xf32, #tpu.memory_space<vmem>>, vector<32x32xf32>,
    %c7_i32_153 = arith.constant 7 : i32
    %499 = arith.addi %9, %c7_i32_153 : i32
    %500 = arith.index_cast %c7_i32_153 : i32 to index
    %c0_154 = arith.constant 0 : index
    %c0_155 = arith.constant 0 : index
    %c0_156 = arith.constant 0 : index
    %501 = vector.load %arg2[%500, %c0_154, %c0_155, %c0_156] : memref<8x1x32x128xbf16, #tpu.memory_space<vmem>>, vector<1x1x32x128xbf16>
    %502 = vector.shape_cast %501 : vector<1x1x32x128xbf16> to vector<32x128xbf16>
    %503 = arith.extf %502 : vector<32x128xbf16> to vector<32x128xf32>
    %504 = vector.broadcast %5 : vector<1x128xf32> to vector<32x128xf32>
    %505 = arith.addf %503, %504 : vector<32x128xf32>
    %cst_157 = arith.constant dense<0.000000e+00> : vector<32x128xf32>
    %506 = tpu.matmul %454, %3, %cst_157 {dimension_numbers = #tpu.dot_dimension_numbers<[1], [0], [0], [1], [0, 0, 1, 1], [], []>} : vector<32x32xf32>, vector<32x128xf32>, vector<32x128xf32> -> vector<32x128xf32>
    %507 = arith.addf %505, %506 : vector<32x128xf32>
    %508 = vector.extract_strided_slice %507 {offsets = [0, 0], sizes = [32, 96], strides = [1, 1]} : vector<32x128xf32> to vector<32x96xf32>
    %509 = arith.negf %508 : vector<32x96xf32>
    %510 = math.exp %509 : vector<32x96xf32>
    %cst_158 = arith.constant 1.000000e+00 : f32
    %511 = vector.broadcast %cst_158 : f32 to vector<32x96xf32>
    %512 = arith.addf %511, %510 : vector<32x96xf32>
    %513 = arith.divf %511, %512 : vector<32x96xf32>
    %514 = vector.extract_strided_slice %513 {offsets = [0, 0], sizes = [32, 32], strides = [1, 1]} : vector<32x96xf32> to vector<32x32xf32>
    %515 = vector.extract_strided_slice %513 {offsets = [0, 32], sizes = [32, 32], strides = [1, 1]} : vector<32x96xf32> to vector<32x32xf32>
    %516 = vector.extract_strided_slice %513 {offsets = [0, 64], sizes = [32, 32], strides = [1, 1]} : vector<32x96xf32> to vector<32x32xf32>
    %517 = vector.extract_strided_slice %507 {offsets = [0, 96], sizes = [32, 32], strides = [1, 1]} : vector<32x128xf32> to vector<32x32xf32>
    %518 = math.tanh %517 : vector<32x32xf32>
    %519 = arith.mulf %515, %452 : vector<32x32xf32>
    %520 = arith.mulf %514, %518 : vector<32x32xf32>
    %521 = arith.addf %519, %520 : vector<32x32xf32>
    %522 = math.tanh %521 : vector<32x32xf32>
    %523 = arith.mulf %516, %522 : vector<32x32xf32>
    %c0_159 = arith.constant 0 : index
    %c0_160 = arith.constant 0 : index
    %524 = vector.load %arg17[%c0_159, %c0_160] : memref<32x32xf32, #tpu.memory_space<vmem>>, vector<32x32xf32>
    %525 = vector.broadcast %499 : i32 to vector<32x1xi32>
    %526 = arith.cmpi slt, %525, %8 : vector<32x1xi32>
    %527 = arith.extui %526 : vector<32x1xi1> to vector<32x1xi32>
    %528 = arith.sitofp %527 : vector<32x1xi32> to vector<32x1xf32>
    %529 = vector.broadcast %528 : vector<32x1xf32> to vector<32x32xf32>
    %530 = arith.mulf %523, %529 : vector<32x32xf32>
    %531 = arith.addf %524, %530 : vector<32x32xf32>
    %c0_161 = arith.constant 0 : index
    %c0_162 = arith.constant 0 : index
    %532 = vector.load %arg17[%c0_161, %c0_162] : memref<32x32xf32, #tpu.memory_space<vmem>>, vector<32x32xf32>
    tpu.vector_store %arg17[%c0_161, %c0_162], %531 {strides = array<i32>} : memref<32x32xf32, #tpu.memory_space<vmem>>, vector<32x32xf32>,
    %c7_i32_163 = arith.constant 7 : i32
    %533 = arith.subi %c7_i32_163, %c7_i32_153 : i32
    %534 = arith.addi %11, %533 : i32
    %535 = arith.index_cast %533 : i32 to index
    %c0_164 = arith.constant 0 : index
    %c0_165 = arith.constant 0 : index
    %c0_166 = arith.constant 0 : index
    %536 = vector.load %arg3[%535, %c0_164, %c0_165, %c0_166] : memref<8x1x32x128xbf16, #tpu.memory_space<vmem>>, vector<1x1x32x128xbf16>
    %537 = vector.shape_cast %536 : vector<1x1x32x128xbf16> to vector<32x128xbf16>
    %538 = arith.extf %537 : vector<32x128xbf16> to vector<32x128xf32>
    %539 = vector.broadcast %6 : vector<1x128xf32> to vector<32x128xf32>
    %540 = arith.addf %538, %539 : vector<32x128xf32>
    %cst_167 = arith.constant dense<0.000000e+00> : vector<32x128xf32>
    %541 = tpu.matmul %489, %4, %cst_167 {dimension_numbers = #tpu.dot_dimension_numbers<[1], [0], [0], [1], [0, 0, 1, 1], [], []>} : vector<32x32xf32>, vector<32x128xf32>, vector<32x128xf32> -> vector<32x128xf32>
    %542 = arith.addf %540, %541 : vector<32x128xf32>
    %543 = vector.extract_strided_slice %542 {offsets = [0, 0], sizes = [32, 96], strides = [1, 1]} : vector<32x128xf32> to vector<32x96xf32>
    %544 = arith.negf %543 : vector<32x96xf32>
    %545 = math.exp %544 : vector<32x96xf32>
    %cst_168 = arith.constant 1.000000e+00 : f32
    %546 = vector.broadcast %cst_168 : f32 to vector<32x96xf32>
    %547 = arith.addf %546, %545 : vector<32x96xf32>
    %548 = arith.divf %546, %547 : vector<32x96xf32>
    %549 = vector.extract_strided_slice %548 {offsets = [0, 0], sizes = [32, 32], strides = [1, 1]} : vector<32x96xf32> to vector<32x32xf32>
    %550 = vector.extract_strided_slice %548 {offsets = [0, 32], sizes = [32, 32], strides = [1, 1]} : vector<32x96xf32> to vector<32x32xf32>
    %551 = vector.extract_strided_slice %548 {offsets = [0, 64], sizes = [32, 32], strides = [1, 1]} : vector<32x96xf32> to vector<32x32xf32>
    %552 = vector.extract_strided_slice %542 {offsets = [0, 96], sizes = [32, 32], strides = [1, 1]} : vector<32x128xf32> to vector<32x32xf32>
    %553 = math.tanh %552 : vector<32x32xf32>
    %554 = arith.mulf %550, %487 : vector<32x32xf32>
    %555 = arith.mulf %549, %553 : vector<32x32xf32>
    %556 = arith.addf %554, %555 : vector<32x32xf32>
    %557 = math.tanh %556 : vector<32x32xf32>
    %558 = arith.mulf %551, %557 : vector<32x32xf32>
    %c0_169 = arith.constant 0 : index
    %c0_170 = arith.constant 0 : index
    %559 = vector.load %arg20[%c0_169, %c0_170] : memref<32x32xf32, #tpu.memory_space<vmem>>, vector<32x32xf32>
    %560 = vector.broadcast %534 : i32 to vector<32x1xi32>
    %561 = arith.cmpi slt, %560, %8 : vector<32x1xi32>
    %562 = arith.extui %561 : vector<32x1xi1> to vector<32x1xi32>
    %563 = arith.sitofp %562 : vector<32x1xi32> to vector<32x1xf32>
    %564 = vector.broadcast %563 : vector<32x1xf32> to vector<32x32xf32>
    %565 = arith.mulf %558, %564 : vector<32x32xf32>
    %566 = arith.addf %559, %565 : vector<32x32xf32>
    %c0_171 = arith.constant 0 : index
    %c0_172 = arith.constant 0 : index
    %567 = vector.load %arg20[%c0_171, %c0_172] : memref<32x32xf32, #tpu.memory_space<vmem>>, vector<32x32xf32>
    tpu.vector_store %arg20[%c0_171, %c0_172], %566 {strides = array<i32>} : memref<32x32xf32, #tpu.memory_space<vmem>>, vector<32x32xf32>,
    %c8_i32_173 = arith.constant 8 : i32
    %c0_174 = arith.constant 0 : index
    %c0_175 = arith.constant 0 : index
    %568 = vector.load %arg15[%c0_174, %c0_175] : memref<32x32xf32, #tpu.memory_space<vmem>>, vector<32x32xf32>
    tpu.vector_store %arg15[%c0_174, %c0_175], %523 {strides = array<i32>} : memref<32x32xf32, #tpu.memory_space<vmem>>, vector<32x32xf32>,
    %c0_176 = arith.constant 0 : index
    %c0_177 = arith.constant 0 : index
    %569 = vector.load %arg16[%c0_176, %c0_177] : memref<32x32xf32, #tpu.memory_space<vmem>>, vector<32x32xf32>
    tpu.vector_store %arg16[%c0_176, %c0_177], %521 {strides = array<i32>} : memref<32x32xf32, #tpu.memory_space<vmem>>, vector<32x32xf32>,
    %c0_178 = arith.constant 0 : index
    %c0_179 = arith.constant 0 : index
    %570 = vector.load %arg18[%c0_178, %c0_179] : memref<32x32xf32, #tpu.memory_space<vmem>>, vector<32x32xf32>
    tpu.vector_store %arg18[%c0_178, %c0_179], %558 {strides = array<i32>} : memref<32x32xf32, #tpu.memory_space<vmem>>, vector<32x32xf32>,
    %c0_180 = arith.constant 0 : index
    %c0_181 = arith.constant 0 : index
    %571 = vector.load %arg19[%c0_180, %c0_181] : memref<32x32xf32, #tpu.memory_space<vmem>>, vector<32x32xf32>
    tpu.vector_store %arg19[%c0_180, %c0_181], %556 {strides = array<i32>} : memref<32x32xf32, #tpu.memory_space<vmem>>, vector<32x32xf32>,
    %c0_i32_182 = arith.constant 0 : i32
    %572 = arith.cmpi eq, %arg1, %c0_i32_182 : i32
    %573 = arith.extui %572 : i1 to i32
    %c0_i32_183 = arith.constant 0 : i32
    %574 = arith.cmpi ne, %573, %c0_i32_183 : i32
    scf.if %574 {
      %c0_184 = arith.constant 0 : index
      %c0_185 = arith.constant 0 : index
      %c0_186 = arith.constant 0 : index
      %575 = vector.load %arg9[%c0_184, %c0_185, %c0_186] : memref<1x32x1xf32, #tpu.memory_space<vmem>>, vector<1x32x1xf32>
      %576 = vector.shape_cast %575 : vector<1x32x1xf32> to vector<32x1xf32>
      %c0_187 = arith.constant 0 : index
      %c0_188 = arith.constant 0 : index
      %577 = vector.load %arg17[%c0_187, %c0_188] : memref<32x32xf32, #tpu.memory_space<vmem>>, vector<32x32xf32>
      %578 = vector.broadcast %576 : vector<32x1xf32> to vector<32x32xf32>
      %579 = arith.mulf %577, %578 : vector<32x32xf32>
      %c0_189 = arith.constant 0 : index
      %c0_190 = arith.constant 0 : index
      %580 = vector.load %arg20[%c0_189, %c0_190] : memref<32x32xf32, #tpu.memory_space<vmem>>, vector<32x32xf32>
      %581 = vector.broadcast %576 : vector<32x1xf32> to vector<32x32xf32>
      %582 = arith.mulf %580, %581 : vector<32x32xf32>
      %583 = vector.extract_strided_slice %579 {offsets = [0, 0], sizes = [16, 32], strides = [1, 1]} : vector<32x32xf32> to vector<16x32xf32>
      %584 = vector.extract_strided_slice %579 {offsets = [16, 0], sizes = [16, 32], strides = [1, 1]} : vector<32x32xf32> to vector<16x32xf32>
      %585 = vector.extract_strided_slice %582 {offsets = [0, 0], sizes = [16, 32], strides = [1, 1]} : vector<32x32xf32> to vector<16x32xf32>
      %586 = vector.extract_strided_slice %582 {offsets = [16, 0], sizes = [16, 32], strides = [1, 1]} : vector<32x32xf32> to vector<16x32xf32>
      %c0_191 = arith.constant 0 : index
      %c0_192 = arith.constant 0 : index
      %587 = vector.load %arg10[%c0_191, %c0_192] : memref<128x32xf32, #tpu.memory_space<vmem>>, vector<128x32xf32>
      %588 = vector.extract_strided_slice %587 {offsets = [0, 0], sizes = [32, 32], strides = [1, 1]} : vector<128x32xf32> to vector<32x32xf32>
      %cst_193 = arith.constant dense<0.000000e+00> : vector<16x32xf32>
      %589 = tpu.matmul %583, %588, %cst_193 {dimension_numbers = #tpu.dot_dimension_numbers<[1], [0], [0], [1], [0, 0, 1, 1], [], []>} : vector<16x32xf32>, vector<32x32xf32>, vector<16x32xf32> -> vector<16x32xf32>
      %590 = vector.extract_strided_slice %587 {offsets = [32, 0], sizes = [32, 32], strides = [1, 1]} : vector<128x32xf32> to vector<32x32xf32>
      %cst_194 = arith.constant dense<0.000000e+00> : vector<16x32xf32>
      %591 = tpu.matmul %585, %590, %cst_194 {dimension_numbers = #tpu.dot_dimension_numbers<[1], [0], [0], [1], [0, 0, 1, 1], [], []>} : vector<16x32xf32>, vector<32x32xf32>, vector<16x32xf32> -> vector<16x32xf32>
      %592 = arith.addf %589, %591 : vector<16x32xf32>
      %593 = vector.extract_strided_slice %587 {offsets = [64, 0], sizes = [32, 32], strides = [1, 1]} : vector<128x32xf32> to vector<32x32xf32>
      %cst_195 = arith.constant dense<0.000000e+00> : vector<16x32xf32>
      %594 = tpu.matmul %584, %593, %cst_195 {dimension_numbers = #tpu.dot_dimension_numbers<[1], [0], [0], [1], [0, 0, 1, 1], [], []>} : vector<16x32xf32>, vector<32x32xf32>, vector<16x32xf32> -> vector<16x32xf32>
      %595 = arith.addf %592, %594 : vector<16x32xf32>
      %596 = vector.extract_strided_slice %587 {offsets = [96, 0], sizes = [32, 32], strides = [1, 1]} : vector<128x32xf32> to vector<32x32xf32>
      %cst_196 = arith.constant dense<0.000000e+00> : vector<16x32xf32>
      %597 = tpu.matmul %586, %596, %cst_196 {dimension_numbers = #tpu.dot_dimension_numbers<[1], [0], [0], [1], [0, 0, 1, 1], [], []>} : vector<16x32xf32>, vector<32x32xf32>, vector<16x32xf32> -> vector<16x32xf32>
      %598 = arith.addf %595, %597 : vector<16x32xf32>
      %c0_197 = arith.constant 0 : index
      %c0_198 = arith.constant 0 : index
      %599 = vector.load %arg11[%c0_197, %c0_198] : memref<1x32xf32, #tpu.memory_space<vmem>>, vector<1x32xf32>
      %600 = vector.broadcast %599 : vector<1x32xf32> to vector<16x32xf32>
      %601 = arith.addf %598, %600 : vector<16x32xf32>
      %cst_199 = arith.constant 0.000000e+00 : f32
      %602 = vector.broadcast %cst_199 : f32 to vector<16x32xf32>
      %603 = arith.maximumf %601, %602 : vector<16x32xf32>
      %c0_200 = arith.constant 0 : index
      %c0_201 = arith.constant 0 : index
      %604 = vector.load %arg12[%c0_200, %c0_201] : memref<32x1xf32, #tpu.memory_space<vmem>>, vector<32x1xf32>
      %cst_202 = arith.constant dense<0.000000e+00> : vector<16x1xf32>
      %605 = tpu.matmul %603, %604, %cst_202 {dimension_numbers = #tpu.dot_dimension_numbers<[1], [0], [0], [1], [0, 0, 1, 1], [], []>} : vector<16x32xf32>, vector<32x1xf32>, vector<16x1xf32> -> vector<16x1xf32>
      %c0_203 = arith.constant 0 : index
      %c0_204 = arith.constant 0 : index
      %606 = vector.load %arg13[%c0_203, %c0_204] : memref<1x1xf32, #tpu.memory_space<vmem>>, vector<1x1xf32>
      %607 = vector.broadcast %606 : vector<1x1xf32> to vector<16x1xf32>
      %608 = arith.addf %605, %607 : vector<16x1xf32>
      %609 = arith.negf %608 : vector<16x1xf32>
      %610 = math.exp %609 : vector<16x1xf32>
      %cst_205 = arith.constant 1.000000e+00 : f32
      %611 = vector.broadcast %cst_205 : f32 to vector<16x1xf32>
      %612 = arith.addf %611, %610 : vector<16x1xf32>
      %613 = arith.divf %611, %612 : vector<16x1xf32>
      %c0_206 = arith.constant 0 : index
      %c0_207 = arith.constant 0 : index
      %614 = vector.load %arg14[%c0_206, %c0_207] : memref<16x1xf32, #tpu.memory_space<vmem>>, vector<16x1xf32>
      tpu.vector_store %arg14[%c0_206, %c0_207], %613 {strides = array<i32>} : memref<16x1xf32, #tpu.memory_space<vmem>>, vector<16x1xf32>,
    } else {
    }
    return
  }
  func.func @transform_0(%arg0: i32, %arg1: i32) -> (i32, i32, i32, i32) {
    %c0_i32 = arith.constant 0 : i32
    %c0_i32_0 = arith.constant 0 : i32
    %c0_i32_1 = arith.constant 0 : i32
    return %arg1, %arg0, %c0_i32, %c0_i32_0 : i32, i32, i32, i32
  }
  func.func @transform_1(%arg0: i32, %arg1: i32) -> (i32, i32, i32, i32) {
    %c0_i32 = arith.constant 0 : i32
    %0 = arith.subi %c0_i32, %arg1 : i32
    %c0_i32_0 = arith.constant 0 : i32
    %c0_i32_1 = arith.constant 0 : i32
    %c0_i32_2 = arith.constant 0 : i32
    return %0, %arg0, %c0_i32_0, %c0_i32_1 : i32, i32, i32, i32
  }
  func.func @transform_2(%arg0: i32, %arg1: i32) -> (i32, i32) {
    %c0_i32 = arith.constant 0 : i32
    %c0_i32_0 = arith.constant 0 : i32
    %c0_i32_1 = arith.constant 0 : i32
    return %c0_i32, %c0_i32_0 : i32, i32
  }
  func.func @transform_3(%arg0: i32, %arg1: i32) -> (i32, i32) {
    %c0_i32 = arith.constant 0 : i32
    %c0_i32_0 = arith.constant 0 : i32
    %c0_i32_1 = arith.constant 0 : i32
    return %c0_i32, %c0_i32_0 : i32, i32
  }
  func.func @transform_4(%arg0: i32, %arg1: i32) -> (i32, i32) {
    %c0_i32 = arith.constant 0 : i32
    %c0_i32_0 = arith.constant 0 : i32
    %c0_i32_1 = arith.constant 0 : i32
    return %c0_i32, %c0_i32_0 : i32, i32
  }
  func.func @transform_5(%arg0: i32, %arg1: i32) -> (i32, i32) {
    %c0_i32 = arith.constant 0 : i32
    %c0_i32_0 = arith.constant 0 : i32
    %c0_i32_1 = arith.constant 0 : i32
    return %c0_i32, %c0_i32_0 : i32, i32
  }
  func.func @transform_6(%arg0: i32, %arg1: i32) -> (i32, i32, i32) {
    %c0_i32 = arith.constant 0 : i32
    %c0_i32_0 = arith.constant 0 : i32
    %c0_i32_1 = arith.constant 0 : i32
    return %arg0, %c0_i32, %c0_i32_0 : i32, i32, i32
  }
  func.func @transform_7(%arg0: i32, %arg1: i32) -> (i32, i32, i32) {
    %c0_i32 = arith.constant 0 : i32
    %c0_i32_0 = arith.constant 0 : i32
    %c0_i32_1 = arith.constant 0 : i32
    return %arg0, %c0_i32, %c0_i32_0 : i32, i32, i32
  }
  func.func @transform_8(%arg0: i32, %arg1: i32) -> (i32, i32) {
    %c0_i32 = arith.constant 0 : i32
    %c0_i32_0 = arith.constant 0 : i32
    %c0_i32_1 = arith.constant 0 : i32
    return %c0_i32, %c0_i32_0 : i32, i32
  }
  func.func @transform_9(%arg0: i32, %arg1: i32) -> (i32, i32) {
    %c0_i32 = arith.constant 0 : i32
    %c0_i32_0 = arith.constant 0 : i32
    %c0_i32_1 = arith.constant 0 : i32
    return %c0_i32, %c0_i32_0 : i32, i32
  }
  func.func @transform_10(%arg0: i32, %arg1: i32) -> (i32, i32) {
    %c0_i32 = arith.constant 0 : i32
    %c0_i32_0 = arith.constant 0 : i32
    %c0_i32_1 = arith.constant 0 : i32
    return %c0_i32, %c0_i32_0 : i32, i32
  }
  func.func @transform_11(%arg0: i32, %arg1: i32) -> (i32, i32) {
    %c0_i32 = arith.constant 0 : i32
    %c0_i32_0 = arith.constant 0 : i32
    %c0_i32_1 = arith.constant 0 : i32
    return %c0_i32, %c0_i32_0 : i32, i32
  }
  func.func @transform_12(%arg0: i32, %arg1: i32) -> (i32, i32) {
    %c0_i32 = arith.constant 0 : i32
    %c0_i32_0 = arith.constant 0 : i32
    return %arg0, %c0_i32 : i32, i32
  }
}

</mosaic_0001>

<bundles_post_ra>
// kernel: tpu_custom_call.1
= control target key start
LH: loop header
LB: loop body
LE: loop exit
PB: predicated region body
PF: predicated region fallthrough
CT: control target
= control target key end

     0   :  { %s9206_s0 = inlined_call_operand.vmem [shape: bf16[8,1,32,128], index: 0, kind: input, shape index: {}]   ;;  %s9207_s1 = inlined_call_operand.vmem [shape: bf16[8,1,32,128], index: 1, kind: input, shape index: {}]   ;;  %s9208_s2 = inlined_call_operand.hbm [shape: f32[32,128], index: 2, kind: input, shape index: {}]   ;;  %s9209_s3 = inlined_call_operand.hbm [shape: f32[32,128], index: 3, kind: input, shape index: {}]   ;;  %s9210_s4 = inlined_call_operand.vmem [shape: f32[1,128], index: 4, kind: input, shape index: {}]   ;;  %s9211_s5 = inlined_call_operand.vmem [shape: f32[1,128], index: 5, kind: input, shape index: {}]   ;;  %s9212_s6 = inlined_call_operand.vmem [shape: s32[1,32,1], index: 6, kind: input, shape index: {}]   ;;  %s9213_s7 = inlined_call_operand.vmem [shape: f32[1,32,1], index: 7, kind: input, shape index: {}]   ;;  %s9214_s8 = inlined_call_operand.vmem [shape: f32[128,32], index: 8, kind: input, shape index: {}]   ;;  %s9215_s9 = inlined_call_operand.vmem [shape: f32[1,32], index: 9, kind: input, shape index: {}]   ;;  %s9216_s10 = inlined_call_operand.vmem [shape: f32[32,1], index: 10, kind: input, shape index: {}]   ;;  %s9217_s11 = inlined_call_operand.<no memory space> [shape: f32[1,1], index: 11, kind: input, shape index: {}]   ;;  %s9218_s12 = inlined_call_operand.vmem [shape: f32[16,1], index: 12, kind: output, shape index: {}]  }
   0x1   :  { %v17_v0 = vstv %s9217_s11 }
   0x2   :  { %18 = vst [vmem:[#allocation8] sm:$0x1] %v17_v0 }
   0x3   :  { %19 = vsyncpa [#allocation10], 0 }
   0x4   :  { %20 = vsyncpa [#allocation12], 0  ;;  %s7004_s23 = smov [#allocation9]  }
   0x5   :  { %s39_s24 = sshll.u32 %s7004_s23, 4  ;;  %s40_s24 = int_to_ptr.vmem [resolvable:$true] %s39_s24 }
   0x6   :  { %s6968_s25 = scalar_lea.vmem %s40_s24, 512  ;;  %p6973_p1 = scmp.lt.s32.totalorder %s40_s24, %s40_s24 }
   0x7   :  { %p6969_p0 = scmp.ne.s32.totalorder %s40_s24, %s6968_s25  ;;  %p6974_p2 = scmp.lt.s32.totalorder %s6968_s25, %s6968_s25 }
   0x9   :  { %p6975_p3 = por %p6974_p2, %p6973_p1 }
   0xb   :  { %p6976_p4 = pnand %p6975_p3, %p6969_p0 }
   0xd   :  { %6979 = shalt.err (!%p6976_p4)
}
   0xe   :  { %s7005_s26 = smov 128   ;;  %s7006_s27 = smov 8  }
   0xf   :  { %45 = dma.hbm_to_vmem [thread:$0]  %s9208_s2, 512, %s40_s24, [#allocation10], %s7005_s26, %s7005_s26, %s7006_s27  }
  0x10   :  { %s7007_s11 = smov [#allocation11]  }
  0x11   :  { %s51_s30 = sshll.u32 %s7007_s11, 4  ;;  %s52_s30 = int_to_ptr.vmem [resolvable:$true] %s51_s30 }
  0x12   :  { %s6988_s13 = scalar_lea.vmem %s52_s30, 512  ;;  %p6993_p6 = scmp.lt.s32.totalorder %s52_s30, %s52_s30 }
  0x13   :  { %p6989_p5 = scmp.ne.s32.totalorder %s52_s30, %s6988_s13  ;;  %p6994_p7 = scmp.lt.s32.totalorder %s6988_s13, %s6988_s13 }
  0x15   :  { %p6995_p8 = por %p6994_p7, %p6993_p6 }
  0x17   :  { %p6996_p9 = pnand %p6995_p8, %p6989_p5 }
  0x19   :  { %6999 = shalt.err (!%p6996_p9)
}
  0x1a   :  { %57 = dma.hbm_to_vmem [thread:$0]  %s9209_s3, 512, %s52_s30, [#allocation12], %s7005_s26, %s7005_s26, %s7006_s27  }
  0x1b   :  { %7000 = dma.done.wait [#allocation10], 512  }
  0x1c   :  { %7001 = vsyncadd [#allocation10], 4294966784 }
  0x1d   :  { %7002 = dma.done.wait [#allocation12], 512  }
  0x1e   :  { %7003 = vsyncadd [#allocation12], 4294966784  ;;  %vm100_vm0 = vcmask 261120   ;;  %v9219_v1 = vmov 0.0   ;;  %v7135_v2 = vld [vmem:[#allocation9 + $0x18] sm:$0xff]  ;;  %v7139_v4 = vld [vmem:[#allocation9 + $0x10] sm:$0xff] }
  0x1f   :  { %101 = vst.msk [vmem:[#allocation2] sm:$0xff] %vm100_vm0, %v9219_v1  ;;  %102 = vst.msk [vmem:[#allocation2 + $0x8] sm:$0xff] %vm100_vm0, %v9219_v1  ;;  %v7137_v3 = vld [vmem:[#allocation11 + $0x18] sm:$0xff]  ;;  %5968 = vmatprep.subr.mxu0 %v7135_v2  ;;  %v7143_v5 = vld [vmem:[#allocation11 + $0x10] sm:$0xff]  ;;  %s7009_s26 = smov 32   ;;  %s7010_s27 = smov 64  }
  0x20   :  { %103 = vst.msk [vmem:[#allocation2 + $0x10] sm:$0xff] %vm100_vm0, %v9219_v1  ;;  %104 = vst.msk [vmem:[#allocation2 + $0x18] sm:$0xff] %vm100_vm0, %v9219_v1  ;;  %5982 = vmatprep.subr.mxu1 %v7137_v3  ;;  %5969 = vmatpush3.msra.mxu0 %v7135_v2  ;;  %v7147_v6 = vld [vmem:[#allocation9 + $0x8] sm:$0xff]  ;;  %v7155_v8 = vld [vmem:[#allocation9] sm:$0xff] }
  0x21   :  { %105 = vst.msk [vmem:[#allocation3] sm:$0xff] %vm100_vm0, %v9219_v1  ;;  %106 = vst.msk [vmem:[#allocation3 + $0x8] sm:$0xff] %vm100_vm0, %v9219_v1  ;;  %5983 = vmatpush3.msra.mxu1 %v7137_v3  ;;  %v7149_v7 = vld [vmem:[#allocation11 + $0x8] sm:$0xff]  ;;  %5970 = vmatprep.subr.mxu0 %v7139_v4  ;;  %v7157_v9 = vld [vmem:[#allocation11] sm:$0xff] }
  0x22   :  { %107 = vst.msk [vmem:[#allocation3 + $0x10] sm:$0xff] %vm100_vm0, %v9219_v1  ;;  %108 = vst.msk [vmem:[#allocation3 + $0x18] sm:$0xff] %vm100_vm0, %v9219_v1  ;;  %5984 = vmatprep.subr.mxu1 %v7143_v5  ;;  %5971 = vmatpush3.msra.mxu0 %v7139_v4  ;;  %v5653_v18 = vld [vmem:[%s9206_s0] sm:$0xff]   ;;  %v5781_v21 = vld [vmem:[%s9207_s1 + $0x70] sm:$0xff]  }
  0x23   :  { %109 = vst.msk [vmem:[#allocation4] sm:$0xff] %vm100_vm0, %v9219_v1  ;;  %110 = vst.msk [vmem:[#allocation4 + $0x8] sm:$0xff] %vm100_vm0, %v9219_v1  ;;  %5985 = vmatpush3.msra.mxu1 %v7143_v5  ;;  %5972 = vmatprep.subr.mxu0 %v7147_v6  ;;  %v5655_v19 = vunpack.c.h.bf16 %v5653_v18  ;;  %v7199_v20 = vld [vmem:[%s9210_s4] ss:$0 sm:$0xff]  ;;  %v5662_v22 = vunpack.c.l.bf16 %v5781_v21  ;;  %v5780_v24 = vld [vmem:[%s9206_s0 + $0x8] sm:$0xff]   ;;  %v5654_v25 = vunpack.c.l.bf16 %v5653_v18  ;;  %v5663_v27 = vunpack.c.h.bf16 %v5781_v21 }
  0x24   :  { %111 = vst.msk [vmem:[#allocation4 + $0x10] sm:$0xff] %vm100_vm0, %v9219_v1  ;;  %112 = vst.msk [vmem:[#allocation4 + $0x18] sm:$0xff] %vm100_vm0, %v9219_v1  ;;  %5986 = vmatprep.subr.mxu1 %v7149_v7  ;;  %5973 = vmatpush3.msra.mxu0 %v7147_v6  ;;  %v7211_v26 = vld [vmem:[%s9211_s5] ss:$0 sm:$0xff]  ;;  %v5659_v31 = vunpack.c.h.bf16 %v5780_v24  ;;  %v5782_v33 = vld [vmem:[%s9207_s1 + $0x78] sm:$0xff]   ;;  %v5658_v37 = vunpack.c.l.bf16 %v5780_v24 }
  0x25   :  { %113 = vst.msk [vmem:[#allocation5] sm:$0xff] %vm100_vm0, %v9219_v1  ;;  %114 = vst.msk [vmem:[#allocation5 + $0x8] sm:$0xff] %vm100_vm0, %v9219_v1  ;;  %5987 = vmatpush3.msra.mxu1 %v7149_v7  ;;  %5974 = vmatprep.subr.mxu0 %v7155_v8  ;;  %v173_v23 = vadd.f32 %v5655_v19, %v7199_v20  ;;  %v471_v30 = vadd.f32 %v5662_v22, %v7211_v26  ;;  %v5667_v42 = vunpack.c.h.bf16 %v5782_v33 }
  0x26   :  { %115 = vst.msk [vmem:[#allocation5 + $0x10] sm:$0xff] %vm100_vm0, %v9219_v1  ;;  %116 = vst.msk [vmem:[#allocation5 + $0x18] sm:$0xff] %vm100_vm0, %v9219_v1  ;;  %v142_v10 = vld [vmem:[#allocation2] sm:$0xff]  ;;  %5988 = vmatprep.subr.mxu1 %v7157_v9  ;;  %v143_v12 = vld [vmem:[#allocation2 + $0x8] sm:$0xff]  ;;  %5975 = vmatpush3.msra.mxu0 %v7155_v8  ;;  %v172_v35 = vadd.f32 %v5654_v25, %v7199_v20  ;;  %v472_v38 = vadd.f32 %v5663_v27, %v7211_v26  ;;  %v5666_v45 = vunpack.c.l.bf16 %v5782_v33 }
  0x27   :  { %117 = vst.msk [vmem:[#allocation6] sm:$0xff] %vm100_vm0, %v9219_v1  ;;  %118 = vst.msk [vmem:[#allocation6 + $0x8] sm:$0xff] %vm100_vm0, %v9219_v1  ;;  %5976 = vmatprep.mubr.msk.f32.mxu0 %vm100_vm0, %v142_v10  ;;  %v144_v14 = vld [vmem:[#allocation2 + $0x10] sm:$0xff]  ;;  %5989 = vmatpush3.msra.mxu1 %v7157_v9  ;;  %v145_v16 = vld [vmem:[#allocation2 + $0x18] sm:$0xff]  ;;  %v175_v40 = vadd.f32 %v5659_v31, %v7199_v20  ;;  %v174_v44 = vadd.f32 %v5658_v37, %v7199_v20 }
  0x28   :  { %119 = vst.msk [vmem:[#allocation6 + $0x10] sm:$0xff] %vm100_vm0, %v9219_v1  ;;  %120 = vst.msk [vmem:[#allocation6 + $0x18] sm:$0xff] %vm100_vm0, %v9219_v1  ;;  %5977 = vmatmul.mubr.msk.f32.vlgmr.msra.gmra.mxu0 %vm100_vm0, %v143_v12  ;;  %6010 = vmatprep.subr.mxu1 %v7137_v3  ;;  %v474_v50 = vadd.f32 %v5667_v42, %v7211_v26  ;;  %v473_v52 = vadd.f32 %v5666_v45, %v7211_v26  ;;  %v146_v12 = vld [vmem:[#allocation3] sm:$0xff] }
  0x29   :  { %121 = vst.msk [vmem:[#allocation7] sm:$0xff] %vm100_vm0, %v9219_v1  ;;  %122 = vst.msk [vmem:[#allocation7 + $0x8] sm:$0xff] %vm100_vm0, %v9219_v1  ;;  %5979 = vmatprep.mubr.msk.f32.mxu0 %vm100_vm0, %v144_v14  ;;  %5996 = vmatprep.subr.mxu0 %v7135_v2  ;;  %v148_v14 = vld [vmem:[#allocation3 + $0x10] sm:$0xff] }
  0x2a   :  { %123 = vst.msk [vmem:[#allocation7 + $0x10] sm:$0xff] %vm100_vm0, %v9219_v1  ;;  %124 = vst.msk [vmem:[#allocation7 + $0x18] sm:$0xff] %vm100_vm0, %v9219_v1  ;;  %5997 = vmatpush3.msra.mxu0 %v7135_v2 }
  0x2b   :  { %5998 = vmatprep.subr.mxu0 %v7139_v4 }
  0x2c   :  { %v150_v11 = vld [vmem:[#allocation5] sm:$0xff]  ;;  %v151_v13 = vld [vmem:[#allocation5 + $0x8] sm:$0xff]  ;;  %5980 = vmatmul.mubr.msk.f32.gmra.mxu0 %vm100_vm0, %v145_v16 }
  0x2d   :  { %v152_v15 = vld [vmem:[#allocation5 + $0x10] sm:$0xff]  ;;  %5990 = vmatprep.mubr.msk.f32.mxu1 %vm100_vm0, %v150_v11  ;;  %v153_v17 = vld [vmem:[#allocation5 + $0x18] sm:$0xff]  ;;  %5999 = vmatpush3.msra.mxu0 %v7139_v4 }
  0x2e   :  { %5991 = vmatmul.mubr.msk.f32.vlgmr.msra.gmra.mxu1 %vm100_vm0, %v151_v13  ;;  %6000 = vmatprep.subr.mxu0 %v7147_v6  ;;  %v155_v0 = vld [vmem:[#allocation6 + $0x8] sm:$0xff]  ;;  %v154_v10 = vld [vmem:[#allocation6] sm:$0xff]  ;;  %v149_v11 = vld [vmem:[#allocation3 + $0x18] sm:$0xff] }
  0x2f   :  { %5993 = vmatprep.mubr.msk.f32.mxu1 %vm100_vm0, %v152_v15  ;;  %6011 = vmatpush3.msra.mxu1 %v7137_v3  ;;  %v147_v13 = vld [vmem:[#allocation3 + $0x8] sm:$0xff] }
  0x30   :  { %6012 = vmatprep.subr.mxu1 %v7143_v5  ;;  %6001 = vmatpush3.msra.mxu0 %v7147_v6 }
  0x31   :  { %6013 = vmatpush3.msra.mxu1 %v7143_v5  ;;  %6002 = vmatprep.subr.mxu0 %v7155_v8 }
  0x32   :  { %5994 = vmatmul.mubr.msk.f32.gmra.mxu1 %vm100_vm0, %v153_v17  ;;  %6014 = vmatprep.subr.mxu1 %v7149_v7 }
  0x33   :  { %6015 = vmatpush3.msra.mxu1 %v7149_v7  ;;  %6003 = vmatpush3.msra.mxu0 %v7155_v8 }
  0x34   :  { %6016 = vmatprep.subr.mxu1 %v7157_v9  ;;  %6024 = vmatprep.subr.mxu0 %v7135_v2 }
  0x35   :  { %6017 = vmatpush3.msra.mxu1 %v7157_v9 }
  0x36   :  { %6038 = vmatprep.subr.mxu1 %v7137_v3 }
  0xe8   :  { %v5978_v28 = vpop.f32.mrf.mxu0 }
  0xe9   :  { %v7214_v32 = vadd.f32 %v5978_v28, %v173_v23 }
  0xea   :  { %v255_v36 = vpop.f32.mrf.mxu0 }
  0xeb   :  { %6418 = vtanh.f32 %v7214_v32  ;;  %v274_v43 = vadd.f32 %v255_v36, %v172_v35  ;;  %v5330_v18 = vmul.f32 -1.442695, %v7214_v32 }
  0xec   :  { %v5981_v41 = vpop.f32.mrf.mxu0 }
  0xed   :  { %v277_v49 = vadd.f32 %v5981_v41, %v175_v40  ;;  %v5329_v15 = vmul.f32 -1.442695, %v274_v43 }
  0xee   :  { %v5992_v29 = vpop.f32.mrf.mxu1  ;;  %v265_v47 = vpop.f32.mrf.mxu0 }
  0xef   :  { %v573_v46 = vadd.f32 %v5992_v29, %v472_v38  ;;  %v276_v51 = vadd.f32 %v265_v47, %v174_v44  ;;  %v5332_v17 = vmul.f32 -1.442695, %v277_v49 }
  0xf0   :  { %v553_v34 = vpop.f32.mrf.mxu1 }
  0xf1   :  { %v572_v39 = vadd.f32 %v553_v34, %v471_v30  ;;  %v5351_v16 = vmul.f32 -1.442695, %v573_v46  ;;  %v5331_v19 = vmul.f32 -1.442695, %v276_v51 }
  0xf2   :  { %v5995_v48 = vpop.f32.mrf.mxu1 }
  0xf3   :  { %6420 = vtanh.f32 %v572_v39  ;;  %v575_v54 = vadd.f32 %v5995_v48, %v474_v50  ;;  %v5350_v21 = vmul.f32 -1.442695, %v572_v39 }
  0xf4   :  { %6422 = vtanh.f32 %v274_v43  ;;  %v563_v53 = vpop.f32.mrf.mxu1 }
  0xf5   :  { %6424 = vtanh.f32 %v573_v46  ;;  %v574_v55 = vadd.f32 %v563_v53, %v473_v52  ;;  %v5353_v28 = vmul.f32 -1.442695, %v575_v54 }
  0xf6   :  { %6426 = vtanh.f32 %v277_v49 }
  0xf7   :  { %6428 = vtanh.f32 %v276_v51  ;;  %v5352_v22 = vmul.f32 -1.442695, %v574_v55 }
  0xf8   :  { %v6419_v56 = vpop.eup %6418  ;;  %6430 = vtanh.f32 %v575_v54 }
  0xf9   :  { %332 = vrot.lane.b32.xlu1 %v6419_v56, %s7009_s26  ;;  %6432 = vtanh.f32 %v574_v55 }
  0xfa   :  { %6434 = vpow2.f32 %v5329_v15 }
  0xfb   :  { %6436 = vpow2.f32 %v5351_v16 }
  0xfc   :  { %6438 = vpow2.f32 %v5332_v17 }
  0xfd   :  { %6440 = vpow2.f32 %v5330_v18 }
  0xfe   :  { %6442 = vpow2.f32 %v5331_v19 }
  0xff   :  { %6444 = vpow2.f32 %v5350_v21 }
 0x100   :  { %v6421_v57 = vpop.eup %6420  ;;  %6446 = vpow2.f32 %v5352_v22 }
 0x101   :  { %628 = vrot.lane.b32.xlu0 %v6421_v57, %s7009_s26  ;;  %v6423_v58 = vpop.eup %6422 }
 0x102   :  { %v6425_v59 = vpop.eup %6424  ;;  %330 = vrot.lane.b32.xlu1 %v6423_v58, %s7009_s26 }
 0x103   :  { %v6427_v60 = vpop.eup %6426 }
 0x104   :  { %v6429_v61 = vpop.eup %6428 }
 0x105   :  { %630 = vrot.lane.b32.xlu0 %v6425_v59, %s7009_s26  ;;  %v6431_v62 = vpop.eup %6430 }
 0x106   :  { %336 = vrot.lane.b32.xlu1 %v6427_v60, %s7009_s26  ;;  %v6433_v63 = vpop.eup %6432 }
 0x107   :  { %v6435_v23 = vpop.eup %6434 }
 0x108   :  { %v6437_v24 = vpop.eup %6436  ;;  %v290_v25 = vadd.f32 1.0, %v6435_v23 }
 0x109   :  { %334 = vrot.lane.b32.xlu0 %v6429_v61, %s7009_s26  ;;  %v6439_v27 = vpop.eup %6438  ;;  %v589_v29 = vadd.f32 1.0, %v6437_v24 }
 0x10a   :  { %634 = vrot.lane.b32.xlu1 %v6431_v62, %s7009_s26  ;;  %v6441_v30 = vpop.eup %6440  ;;  %6448 = vrcp.f32 %v290_v25  ;;  %v293_v31 = vadd.f32 1.0, %v6439_v27  ;;  %v156_v62 = vld [vmem:[#allocation6 + $0x10] sm:$0xff] }
 0x10b   :  { %v6443_v33 = vpop.eup %6442  ;;  %6450 = vpow2.f32 %v5353_v28  ;;  %v291_v32 = vadd.f32 1.0, %v6441_v30 }
 0x10c   :  { %6452 = vrcp.f32 %v589_v29  ;;  %v6445_v34 = vpop.eup %6444  ;;  %v292_v35 = vadd.f32 1.0, %v6443_v33 }
 0x10d   :  { %632 = vrot.lane.b32.xlu0 %v6433_v63, %s7009_s26  ;;  %6454 = vrcp.f32 %v293_v31  ;;  %v6447_v36 = vpop.eup %6446  ;;  %v588_v37 = vadd.f32 1.0, %v6445_v34  ;;  %v157_v63 = vld [vmem:[#allocation6 + $0x18] sm:$0xff] }
 0x10e   :  { %610 = vrot.lane.b32.xlu1 %v155_v0, %s7009_s26  ;;  %6456 = vrcp.f32 %v291_v32  ;;  %v590_v39 = vadd.f32 1.0, %v6447_v36 }
 0x10f   :  { %6458 = vrcp.f32 %v292_v35 }
 0x110   :  { %6460 = vrcp.f32 %v588_v37 }
 0x111   :  { %608 = vrot.lane.b32.xlu0 %v154_v10, %s7009_s26  ;;  %6462 = vrcp.f32 %v590_v39 }
 0x112   :  { %316 = vrot.lane.b32.xlu1 %v149_v11, %s7009_s26 }
 0x115   :  { %310 = vrot.lane.b32.xlu0 %v146_v12, %s7009_s26 }
 0x117   :  { %v7241_v41 = vpop.eup %6448 }
 0x118   :  { %v6451_v43 = vpop.eup %6450 }
 0x119   :  { %312 = vrot.lane.b32.xlu0 %v147_v13, %s7009_s26  ;;  %v7244_v45 = vpop.eup %6452  ;;  %v591_v50 = vadd.f32 1.0, %v6451_v43 }
 0x11a   :  { %v7248_v48 = vpop.eup %6454 }
 0x11b   :  { %v7252_v52 = vpop.eup %6456  ;;  %6464 = vrcp.f32 %v591_v50 }
 0x11c   :  { %v7256_v55 = vpop.eup %6458 }
 0x11d   :  { %314 = vrot.lane.b32.xlu0 %v148_v14, %s7009_s26  ;;  %v7260_v57 = vpop.eup %6460 }
 0x11e   :  { %v7264_v60 = vpop.eup %6462 }
 0x128   :  { %v7271_v10 = vpop.eup %6464 }
 0x16b   :  { %v333_v38 = vpop.permute.xlu1 %332 }
 0x16c   :  { %v343_v54 = vmul.f32 %v7252_v52, %v333_v38 }
 0x173   :  { %v629_v40 = vpop.permute.xlu0 %628 }
 0x174   :  { %v331_v42 = vpop.permute.xlu1 %330  ;;  %v640_v59 = vmul.f32 %v7260_v57, %v629_v40 }
 0x175   :  { %v342_v44 = vmul.f32 %v7241_v41, %v331_v42 }
 0x177   :  { %v631_v46 = vpop.permute.xlu0 %630  ;;  %350 = vrot.lane.b32.xlu0 %v342_v44, %s7009_s26 }
 0x178   :  { %v641_v47 = vmul.f32 %v7244_v45, %v631_v46  ;;  %v337_v49 = vpop.permute.xlu1 %336 }
 0x179   :  { %v345_v51 = vmul.f32 %v7248_v48, %v337_v49 }
 0x17a   :  { %650 = vrot.lane.b32.xlu1 %v641_v47, %s7009_s26 }
 0x17b   :  { %v335_v53 = vpop.permute.xlu0 %334  ;;  %356 = vrot.lane.b32.xlu0 %v345_v51, %s7009_s26 }
 0x17c   :  { %v344_v56 = vmul.f32 %v7256_v55, %v335_v53  ;;  %v635_v0 = vpop.permute.xlu1 %634 }
 0x17d   :  { %v643_v11 = vmul.f32 %v7271_v10, %v635_v0 }
 0x17e   :  { %352 = vrot.lane.b32.xlu1 %v343_v54, %s7009_s26 }
 0x17f   :  { %v633_v58 = vpop.permute.xlu0 %632  ;;  %354 = vrot.lane.b32.xlu0 %v344_v56, %s7009_s26 }
 0x180   :  { %v642_v61 = vmul.f32 %v7264_v60, %v633_v58  ;;  %v611_v15 = vpop.permute.xlu1 %610 }
 0x181   :  { %v621_v19 = vmul.f32 %v7244_v45, %v611_v15 }
 0x182   :  { %648 = vrot.lane.b32.xlu1 %v640_v59, %s7009_s26 }
 0x183   :  { %652 = vrot.lane.b32.xlu0 %v642_v61, %s7009_s26  ;;  %v609_v12 = vpop.permute.xlu0 %608 }
 0x184   :  { %v317_v17 = vpop.permute.xlu1 %316  ;;  %v620_v30 = vmul.f32 %v7260_v57, %v609_v12 }
 0x185   :  { %v325_v25 = vmul.f32 %v7248_v48, %v317_v17 }
 0x186   :  { %612 = vrot.lane.b32.xlu1 %v156_v62, %s7009_s26 }
 0x187   :  { %v311_v13 = vpop.permute.xlu0 %310 }
 0x188   :  { %v322_v33 = vmul.f32 %v7241_v41, %v311_v13 }
 0x18a   :  { %614 = vrot.lane.b32.xlu1 %v157_v63, %s7009_s26 }
 0x18b   :  { %v313_v14 = vpop.permute.xlu0 %312 }
 0x18c   :  { %v323_v23 = vmul.f32 %v7252_v52, %v313_v14 }
 0x18e   :  { %654 = vrot.lane.b32.xlu1 %v643_v11, %s7009_s26 }
 0x18f   :  { %v315_v16 = vpop.permute.xlu0 %314 }
 0x190   :  { %v324_v37 = vmul.f32 %v7256_v55, %v315_v16 }
 0x1e9   :  { %v351_v18 = vpop.permute.xlu0 %350 }
 0x1ea   :  { %v7291_v34 = vadd.f32 %v351_v18, %v322_v33 }
 0x1ec   :  { %v651_v21 = vpop.permute.xlu1 %650 }
 0x1ed   :  { %v7276_v22 = vadd.f32 %v651_v21, %v621_v19  ;;  %v357_v24 = vpop.permute.xlu0 %356 }
 0x1ee   :  { %v7283_v29 = vadd.f32 %v357_v24, %v325_v25  ;;  %v5784_v25 = vld [vmem:[%s9206_s0 + $0x18] sm:$0xff]  }
 0x1ef   :  { %6466 = vtanh.f32 %v7276_v22  ;;  %v5675_v33 = vunpack.c.h.bf16 %v5784_v25 }
 0x1f0   :  { %v353_v27 = vpop.permute.xlu1 %352 }
 0x1f1   :  { %v7281_v28 = vadd.f32 %v353_v27, %v323_v23  ;;  %v355_v35 = vpop.permute.xlu0 %354 }
 0x1f2   :  { %v7297_v39 = vadd.f32 %v355_v35, %v324_v37 }
 0x1f3   :  { %6468 = vtanh.f32 %v7281_v28 }
 0x1f4   :  { %v649_v31 = vpop.permute.xlu1 %648  ;;  %6470 = vtanh.f32 %v7283_v29 }
 0x1f5   :  { %v7288_v32 = vadd.f32 %v649_v31, %v620_v30  ;;  %v653_v43 = vpop.permute.xlu0 %652 }
 0x1f7   :  { %6472 = vtanh.f32 %v7288_v32 }
 0x1f8   :  { %v613_v36 = vpop.permute.xlu1 %612  ;;  %6474 = vtanh.f32 %v7291_v34 }
 0x1f9   :  { %v622_v38 = vmul.f32 %v7264_v60, %v613_v36  ;;  %6476 = vtanh.f32 %v7297_v39  ;;  %v5786_v36 = vld [vmem:[%s9207_s1 + $0x68] sm:$0xff]  }
 0x1fb   :  { %v7300_v44 = vadd.f32 %v653_v43, %v622_v38 }
 0x1fc   :  { %v6467_v40 = vpop.eup %6466  ;;  %v615_v42 = vpop.permute.xlu1 %614 }
 0x1fd   :  { %674 = vrot.lane.b32.xlu1 %v6467_v40, %s7009_s26  ;;  %v623_v46 = vmul.f32 %v7271_v10, %v615_v42  ;;  %6478 = vtanh.f32 %v7300_v44  ;;  %v5674_v40 = vunpack.c.l.bf16 %v5784_v25 }
 0x200   :  { %v6469_v47 = vpop.eup %6468  ;;  %v655_v49 = vpop.permute.xlu1 %654 }
 0x201   :  { %v7304_v50 = vadd.f32 %v655_v49, %v623_v46  ;;  %376 = vrot.lane.b32.xlu1 %v6469_v47, %s7009_s26  ;;  %v6471_v51 = vpop.eup %6470  ;;  %v766_v46 = vadd.f32 %v5675_v33, %v7199_v20  ;;  %v5683_v47 = vunpack.c.h.bf16 %v5786_v36 }
 0x203   :  { %6480 = vtanh.f32 %v7304_v50 }
 0x204   :  { %v6473_v53 = vpop.eup %6472 }
 0x205   :  { %380 = vrot.lane.b32.xlu1 %v6471_v51, %s7009_s26  ;;  %672 = vrot.lane.b32.xlu0 %v6473_v53, %s7009_s26  ;;  %v6475_v54 = vpop.eup %6474  ;;  %v765_v53 = vadd.f32 %v5674_v40, %v7199_v20 }
 0x206   :  { %v6477_v56 = vpop.eup %6476 }
 0x209   :  { %374 = vrot.lane.b32.xlu0 %v6475_v54, %s7009_s26  ;;  %v5682_v54 = vunpack.c.l.bf16 %v5786_v36 }
 0x20a   :  { %v6479_v58 = vpop.eup %6478 }
 0x20d   :  { %378 = vrot.lane.b32.xlu0 %v6477_v56, %s7009_s26 }
 0x210   :  { %v6481_v59 = vpop.eup %6480 }
 0x211   :  { %678 = vrot.lane.b32.xlu1 %v6481_v59, %s7009_s26  ;;  %676 = vrot.lane.b32.xlu0 %v6479_v58, %s7009_s26  ;;  %v1050_v59 = vadd.f32 %v5683_v47, %v7211_v26 }
 0x26f   :  { %v675_v61 = vpop.permute.xlu1 %674 }
 0x270   :  { %v7316_v62 = vmul.f32 %v7244_v45, %v675_v61 }
 0x272   :  { %1057 = vrot.lane.b32.xlu1 %v7316_v62, %s7010_s27 }
 0x273   :  { %v377_v63 = vpop.permute.xlu1 %376 }
 0x274   :  { %v7321_v0 = vmul.f32 %v7252_v52, %v377_v63 }
 0x276   :  { %773 = vrot.lane.b32.xlu1 %v7321_v0, %s7010_s27 }
 0x277   :  { %v381_v11 = vpop.permute.xlu1 %380  ;;  %v673_v12 = vpop.permute.xlu0 %672 }
 0x278   :  { %v7326_v13 = vmul.f32 %v7248_v48, %v381_v11  ;;  %v7329_v14 = vmul.f32 %v7260_v57, %v673_v12  ;;  %v1049_v11 = vadd.f32 %v5682_v54, %v7211_v26 }
 0x27a   :  { %777 = vrot.lane.b32.xlu1 %v7326_v13, %s7010_s27  ;;  %1055 = vrot.lane.b32.xlu0 %v7329_v14, %s7010_s27 }
 0x27b   :  { %v375_v45 = vpop.permute.xlu0 %374 }
 0x27c   :  { %v7336_v52 = vmul.f32 %v7241_v41, %v375_v45 }
 0x27e   :  { %771 = vrot.lane.b32.xlu0 %v7336_v52, %s7010_s27 }
 0x27f   :  { %v379_v15 = vpop.permute.xlu0 %378 }
 0x280   :  { %v7341_v48 = vmul.f32 %v7256_v55, %v379_v15 }
 0x282   :  { %775 = vrot.lane.b32.xlu0 %v7341_v48, %s7010_s27 }
 0x283   :  { %v679_v57 = vpop.permute.xlu1 %678  ;;  %v677_v16 = vpop.permute.xlu0 %676 }
 0x284   :  { %v7346_v17 = vmul.f32 %v7271_v10, %v679_v57  ;;  %v7349_v18 = vmul.f32 %v7264_v60, %v677_v16 }
 0x286   :  { %1061 = vrot.lane.b32.xlu1 %v7346_v17, %s7010_s27  ;;  %1059 = vrot.lane.b32.xlu0 %v7349_v18, %s7010_s27 }
 0x2e4   :  { %v1058_v41 = vpop.permute.xlu1 %1057 }
 0x2e8   :  { %v774_v19 = vpop.permute.xlu1 %773 }
 0x2ec   :  { %v1056_v55 = vpop.permute.xlu0 %1055  ;;  %v778_v60 = vpop.permute.xlu1 %777 }
 0x2ed   :  { %6018 = vmatprep.mubr.msk.f32.mxu1 %vm100_vm0, %v1056_v55 }
 0x2ee   :  { %6019 = vmatmul.mubr.msk.f32.vlgmr.msra.gmra.mxu1 %vm100_vm0, %v1058_v41 }
 0x2ef   :  { %6039 = vmatpush3.msra.mxu1 %v7137_v3 }
 0x2f0   :  { %v772_v10 = vpop.permute.xlu0 %771  ;;  %6040 = vmatprep.subr.mxu1 %v7143_v5 }
 0x2f1   :  { %6004 = vmatprep.mubr.msk.f32.mxu0 %vm100_vm0, %v772_v10  ;;  %6041 = vmatpush3.msra.mxu1 %v7143_v5 }
 0x2f2   :  { %6005 = vmatmul.mubr.msk.f32.vlgmr.msra.gmra.mxu0 %vm100_vm0, %v774_v19  ;;  %6042 = vmatprep.subr.mxu1 %v7149_v7 }
 0x2f3   :  { %6025 = vmatpush3.msra.mxu0 %v7135_v2  ;;  %6043 = vmatpush3.msra.mxu1 %v7149_v7 }
 0x2f4   :  { %v776_v21 = vpop.permute.xlu0 %775  ;;  %6026 = vmatprep.subr.mxu0 %v7139_v4  ;;  %6044 = vmatprep.subr.mxu1 %v7157_v9 }
 0x2f5   :  { %6007 = vmatprep.mubr.msk.f32.mxu0 %vm100_vm0, %v776_v21  ;;  %6027 = vmatpush3.msra.mxu0 %v7139_v4  ;;  %v5785_v4 = vld [vmem:[%s9207_s1 + $0x60] sm:$0xff]  }
 0x2f6   :  { %6008 = vmatmul.mubr.msk.f32.gmra.mxu0 %vm100_vm0, %v778_v60  ;;  %6045 = vmatpush3.msra.mxu1 %v7157_v9  ;;  %v5679_v9 = vunpack.c.h.bf16 %v5785_v4 }
 0x2f7   :  { %6028 = vmatprep.subr.mxu0 %v7147_v6  ;;  %6066 = vmatprep.subr.mxu1 %v7137_v3  ;;  %v5783_v3 = vld [vmem:[%s9206_s0 + $0x10] sm:$0xff]  }
 0x2f8   :  { %v1062_v5 = vpop.permute.xlu1 %1061  ;;  %v1060_v7 = vpop.permute.xlu0 %1059  ;;  %6029 = vmatpush3.msra.mxu0 %v7147_v6  ;;  %v5678_v6 = vunpack.c.l.bf16 %v5785_v4  ;;  %v1048_v23 = vadd.f32 %v5679_v9, %v7211_v26  ;;  %v5671_v24 = vunpack.c.h.bf16 %v5783_v3 }
 0x2f9   :  { %6021 = vmatprep.mubr.msk.f32.mxu1 %vm100_vm0, %v1060_v7  ;;  %6030 = vmatprep.subr.mxu0 %v7155_v8 }
 0x2fa   :  { %6022 = vmatmul.mubr.msk.f32.gmra.mxu1 %vm100_vm0, %v1062_v5  ;;  %6031 = vmatpush3.msra.mxu0 %v7155_v8  ;;  %v1047_v8 = vadd.f32 %v5678_v6, %v7211_v26  ;;  %v764_v31 = vadd.f32 %v5671_v24, %v7199_v20 }
 0x2fb   :  { %6052 = vmatprep.subr.mxu0 %v7135_v2  ;;  %v5670_v2 = vunpack.c.l.bf16 %v5783_v3 }
 0x2fd   :  { %v763_v38 = vadd.f32 %v5670_v2, %v7199_v20 }
 0x3ae   :  { %v6020_v27 = vpop.f32.mrf.mxu1 }
 0x3af   :  { %v1157_v30 = vadd.f32 %v6020_v27, %v1048_v23 }
 0x3b0   :  { %v1137_v35 = vpop.f32.mrf.mxu1 }
 0x3b1   :  { %6482 = vtanh.f32 %v1157_v30  ;;  %v1156_v37 = vadd.f32 %v1137_v35, %v1047_v8  ;;  %v5391_v7 = vmul.f32 -1.442695, %v1157_v30 }
 0x3b2   :  { %v6006_v42 = vpop.f32.mrf.mxu0 }
 0x3b3   :  { %v873_v43 = vadd.f32 %v6006_v42, %v764_v31  ;;  %6484 = vtanh.f32 %v1156_v37  ;;  %v5390_v4 = vmul.f32 -1.442695, %v1156_v37 }
 0x3b4   :  { %v853_v49 = vpop.f32.mrf.mxu0 }
 0x3b5   :  { %v872_v51 = vadd.f32 %v853_v49, %v763_v38  ;;  %6486 = vtanh.f32 %v873_v43  ;;  %v5371_v9 = vmul.f32 -1.442695, %v873_v43 }
 0x3b6   :  { %v6009_v56 = vpop.f32.mrf.mxu0 }
 0x3b7   :  { %v875_v58 = vadd.f32 %v6009_v56, %v766_v46  ;;  %6488 = vtanh.f32 %v872_v51  ;;  %v5370_v3 = vmul.f32 -1.442695, %v872_v51 }
 0x3b8   :  { %v863_v61 = vpop.f32.mrf.mxu0 }
 0x3b9   :  { %v874_v63 = vadd.f32 %v863_v61, %v765_v53  ;;  %6490 = vtanh.f32 %v875_v58  ;;  %v5373_v6 = vmul.f32 -1.442695, %v875_v58 }
 0x3ba   :  { %v6023_v12 = vpop.f32.mrf.mxu1 }
 0x3bb   :  { %v1159_v45 = vadd.f32 %v6023_v12, %v1050_v59  ;;  %6492 = vtanh.f32 %v874_v63  ;;  %v5372_v23 = vmul.f32 -1.442695, %v874_v63 }
 0x3bc   :  { %v1147_v15 = vpop.f32.mrf.mxu1 }
 0x3bd   :  { %v1158_v57 = vadd.f32 %v1147_v15, %v1049_v11  ;;  %6494 = vtanh.f32 %v1159_v45  ;;  %v5393_v24 = vmul.f32 -1.442695, %v1159_v45 }
 0x3be   :  { %v6483_v16 = vpop.eup %6482 }
 0x3bf   :  { %1198 = vrot.lane.b32.xlu1 %v6483_v16, %s7009_s26  ;;  %6496 = vtanh.f32 %v1158_v57  ;;  %v5392_v25 = vmul.f32 -1.442695, %v1158_v57 }
 0x3c0   :  { %v6485_v41 = vpop.eup %6484  ;;  %6498 = vpow2.f32 %v5391_v7 }
 0x3c1   :  { %1196 = vrot.lane.b32.xlu0 %v6485_v41, %s7009_s26  ;;  %6500 = vpow2.f32 %v5390_v4 }
 0x3c2   :  { %v6487_v55 = vpop.eup %6486  ;;  %6502 = vpow2.f32 %v5371_v9 }
 0x3c3   :  { %914 = vrot.lane.b32.xlu1 %v6487_v55, %s7009_s26  ;;  %6504 = vpow2.f32 %v5370_v3 }
 0x3c4   :  { %v6489_v19 = vpop.eup %6488  ;;  %6506 = vpow2.f32 %v5373_v6 }
 0x3c5   :  { %912 = vrot.lane.b32.xlu0 %v6489_v19, %s7009_s26  ;;  %6508 = vpow2.f32 %v5372_v23 }
 0x3c6   :  { %v6491_v10 = vpop.eup %6490  ;;  %6510 = vpow2.f32 %v5393_v24 }
 0x3c7   :  { %918 = vrot.lane.b32.xlu1 %v6491_v10, %s7009_s26  ;;  %6512 = vpow2.f32 %v5392_v25 }
 0x3c8   :  { %v6493_v60 = vpop.eup %6492 }
 0x3c9   :  { %916 = vrot.lane.b32.xlu0 %v6493_v60, %s7009_s26 }
 0x3ca   :  { %v6495_v21 = vpop.eup %6494 }
 0x3cb   :  { %1202 = vrot.lane.b32.xlu1 %v6495_v21, %s7009_s26 }
 0x3cc   :  { %v6497_v5 = vpop.eup %6496 }
 0x3cd   :  { %1200 = vrot.lane.b32.xlu0 %v6497_v5, %s7009_s26  ;;  %v6499_v8 = vpop.eup %6498 }
 0x3ce   :  { %v6501_v2 = vpop.eup %6500  ;;  %v1173_v27 = vadd.f32 1.0, %v6499_v8 }
 0x3cf   :  { %v6503_v31 = vpop.eup %6502  ;;  %v1172_v30 = vadd.f32 1.0, %v6501_v2 }
 0x3d0   :  { %v6505_v33 = vpop.eup %6504  ;;  %6514 = vrcp.f32 %v1173_v27  ;;  %v889_v35 = vadd.f32 1.0, %v6503_v31 }
 0x3d1   :  { %v6507_v36 = vpop.eup %6506  ;;  %6516 = vrcp.f32 %v1172_v30  ;;  %v888_v37 = vadd.f32 1.0, %v6505_v33 }
 0x3d2   :  { %v6509_v38 = vpop.eup %6508  ;;  %6518 = vrcp.f32 %v889_v35  ;;  %v891_v40 = vadd.f32 1.0, %v6507_v36 }
 0x3d3   :  { %v6511_v42 = vpop.eup %6510  ;;  %6520 = vrcp.f32 %v888_v37  ;;  %v890_v43 = vadd.f32 1.0, %v6509_v38 }
 0x3d4   :  { %v6513_v46 = vpop.eup %6512  ;;  %6522 = vrcp.f32 %v891_v40  ;;  %v1175_v47 = vadd.f32 1.0, %v6511_v42 }
 0x3d5   :  { %6524 = vrcp.f32 %v890_v43  ;;  %v1174_v49 = vadd.f32 1.0, %v6513_v46 }
 0x3d6   :  { %6526 = vrcp.f32 %v1175_v47 }
 0x3d7   :  { %6528 = vrcp.f32 %v1174_v49 }
 0x3dd   :  { %v7407_v51 = vpop.eup %6514 }
 0x3de   :  { %v7410_v56 = vpop.eup %6516  ;;  %v1189_v3 = vmul.f32 %v7407_v51, %v7276_v22 }
 0x3df   :  { %v7414_v61 = vpop.eup %6518  ;;  %v1188_v24 = vmul.f32 %v7410_v56, %v7288_v32 }
 0x3e0   :  { %v7418_v12 = vpop.eup %6520  ;;  %v905_v2 = vmul.f32 %v7414_v61, %v7281_v28 }
 0x3e1   :  { %v7422_v57 = vpop.eup %6522  ;;  %v904_v22 = vmul.f32 %v7418_v12, %v7291_v34 }
 0x3e2   :  { %v7426_v55 = vpop.eup %6524  ;;  %v907_v33 = vmul.f32 %v7422_v57, %v7283_v29 }
 0x3e3   :  { %v7430_v60 = vpop.eup %6526  ;;  %v906_v36 = vmul.f32 %v7426_v55, %v7297_v39 }
 0x3e4   :  { %v7434_v7 = vpop.eup %6528  ;;  %v1191_v38 = vmul.f32 %v7430_v60, %v7304_v50 }
 0x3e5   :  { %v1190_v42 = vmul.f32 %v7434_v7, %v7300_v44 }
 0x431   :  { %v1199_v53 = vpop.permute.xlu1 %1198 }
 0x432   :  { %v1209_v54 = vmul.f32 %v7407_v51, %v1199_v53 }
 0x433   :  { %v1197_v58 = vpop.permute.xlu0 %1196 }
 0x434   :  { %1218 = vrot.lane.b32.xlu1 %v1209_v54, %s7009_s26  ;;  %v1208_v59 = vmul.f32 %v7410_v56, %v1197_v58 }
 0x435   :  { %v915_v63 = vpop.permute.xlu1 %914 }
 0x436   :  { %v925_v11 = vmul.f32 %v7414_v61, %v915_v63  ;;  %1216 = vrot.lane.b32.xlu0 %v1208_v59, %s7009_s26 }
 0x437   :  { %v913_v45 = vpop.permute.xlu0 %912 }
 0x438   :  { %v924_v15 = vmul.f32 %v7418_v12, %v913_v45  ;;  %934 = vrot.lane.b32.xlu1 %v925_v11, %s7009_s26 }
 0x439   :  { %v919_v16 = vpop.permute.xlu1 %918 }
 0x43a   :  { %v927_v41 = vmul.f32 %v7422_v57, %v919_v16  ;;  %932 = vrot.lane.b32.xlu0 %v924_v15, %s7009_s26 }
 0x43b   :  { %v917_v19 = vpop.permute.xlu0 %916 }
 0x43c   :  { %v926_v10 = vmul.f32 %v7426_v55, %v917_v19  ;;  %938 = vrot.lane.b32.xlu1 %v927_v41, %s7009_s26 }
 0x43d   :  { %v1203_v21 = vpop.permute.xlu1 %1202 }
 0x43e   :  { %v1211_v5 = vmul.f32 %v7430_v60, %v1203_v21  ;;  %936 = vrot.lane.b32.xlu0 %v926_v10, %s7009_s26 }
 0x43f   :  { %v1201_v4 = vpop.permute.xlu0 %1200 }
 0x440   :  { %v1210_v9 = vmul.f32 %v7434_v7, %v1201_v4  ;;  %1222 = vrot.lane.b32.xlu1 %v1211_v5, %s7009_s26 }
 0x442   :  { %1220 = vrot.lane.b32.xlu0 %v1210_v9, %s7009_s26 }
 0x4a6   :  { %v1219_v6 = vpop.permute.xlu1 %1218 }
 0x4a7   :  { %v7441_v23 = vadd.f32 %v1219_v6, %v1189_v3  ;;  %v7538_v6 = vld [vmem:[#allocation11 + $0x8] sm:$0xff] }
 0x4a8   :  { %v1217_v25 = vpop.permute.xlu0 %1216 }
 0x4a9   :  { %6530 = vtanh.f32 %v7441_v23  ;;  %v7446_v8 = vadd.f32 %v1217_v25, %v1188_v24  ;;  %v7541_v25 = vld [vmem:[#allocation9 + $0x18] sm:$0xff] }
 0x4aa   :  { %v935_v27 = vpop.permute.xlu1 %934 }
 0x4ab   :  { %6532 = vtanh.f32 %v7446_v8  ;;  %v7451_v31 = vadd.f32 %v935_v27, %v905_v2  ;;  %v7545_v27 = vld [vmem:[#allocation9 + $0x10] sm:$0xff] }
 0x4ac   :  { %v933_v30 = vpop.permute.xlu0 %932 }
 0x4ad   :  { %6534 = vtanh.f32 %v7451_v31  ;;  %v7456_v32 = vadd.f32 %v933_v30, %v904_v22  ;;  %v7548_v22 = vld [vmem:[#allocation11] sm:$0xff]  ;;  %v7555_v30 = vld [vmem:[#allocation9 + $0x8] sm:$0xff] }
 0x4ae   :  { %v939_v35 = vpop.permute.xlu1 %938 }
 0x4af   :  { %6536 = vtanh.f32 %v7456_v32  ;;  %v7461_v28 = vadd.f32 %v939_v35, %v907_v33 }
 0x4b0   :  { %v937_v37 = vpop.permute.xlu0 %936 }
 0x4b1   :  { %6538 = vtanh.f32 %v7461_v28  ;;  %v7466_v34 = vadd.f32 %v937_v37, %v906_v36  ;;  %v7561_v36 = vld [vmem:[#allocation9] sm:$0xff]  ;;  %v5789_v37 = vld [vmem:[%s9207_s1 + $0x50] sm:$0xff]  }
 0x4b2   :  { %v1223_v40 = vpop.permute.xlu1 %1222 }
 0x4b3   :  { %6540 = vtanh.f32 %v7466_v34  ;;  %v7471_v29 = vadd.f32 %v1223_v40, %v1191_v38  ;;  %v5695_v38 = vunpack.c.h.bf16 %v5789_v37  ;;  %v5787_v40 = vld [vmem:[%s9206_s0 + $0x20] sm:$0xff]  }
 0x4b4   :  { %v1221_v43 = vpop.permute.xlu0 %1220 }
 0x4b5   :  { %6542 = vtanh.f32 %v7471_v29  ;;  %v7476_v39 = vadd.f32 %v1221_v43, %v1190_v42  ;;  %v5694_v42 = vunpack.c.l.bf16 %v5789_v37  ;;  %v1616_v43 = vadd.f32 %v5695_v38, %v7211_v26 }
 0x4b6   :  { %v6531_v46 = vpop.eup %6530 }
 0x4b7   :  { %1242 = vrot.lane.b32.xlu1 %v6531_v46, %s7009_s26  ;;  %6544 = vtanh.f32 %v7476_v39  ;;  %v5687_v46 = vunpack.c.h.bf16 %v5787_v40 }
 0x4b8   :  { %v6533_v47 = vpop.eup %6532 }
 0x4b9   :  { %1240 = vrot.lane.b32.xlu0 %v6533_v47, %s7009_s26  ;;  %v5788_v47 = vld [vmem:[%s9206_s0 + $0x28] sm:$0xff]  }
 0x4ba   :  { %v6535_v50 = vpop.eup %6534 }
 0x4bb   :  { %958 = vrot.lane.b32.xlu1 %v6535_v50, %s7009_s26  ;;  %v1615_v50 = vadd.f32 %v5694_v42, %v7211_v26 }
 0x4bc   :  { %v6537_v49 = vpop.eup %6536 }
 0x4bd   :  { %956 = vrot.lane.b32.xlu0 %v6537_v49, %s7009_s26  ;;  %v5686_v49 = vunpack.c.l.bf16 %v5787_v40 }
 0x4be   :  { %v6539_v44 = vpop.eup %6538 }
 0x4bf   :  { %962 = vrot.lane.b32.xlu1 %v6539_v44, %s7009_s26 }
 0x4c0   :  { %v6541_v53 = vpop.eup %6540 }
 0x4c1   :  { %960 = vrot.lane.b32.xlu0 %v6541_v53, %s7009_s26 }
 0x4c2   :  { %v6543_v54 = vpop.eup %6542 }
 0x4c3   :  { %1246 = vrot.lane.b32.xlu1 %v6543_v54, %s7009_s26  ;;  %v1332_v54 = vadd.f32 %v5687_v46, %v7199_v20 }
 0x4c4   :  { %v6545_v58 = vpop.eup %6544 }
 0x4c5   :  { %1244 = vrot.lane.b32.xlu0 %v6545_v58, %s7009_s26  ;;  %v5691_v58 = vunpack.c.h.bf16 %v5788_v47 }
 0x529   :  { %v1243_v59 = vpop.permute.xlu1 %1242 }
 0x52a   :  { %v7488_v63 = vmul.f32 %v7407_v51, %v1243_v59 }
 0x52b   :  { %v1241_v11 = vpop.permute.xlu0 %1240 }
 0x52c   :  { %1625 = vrot.lane.b32.xlu1 %v7488_v63, %s7010_s27  ;;  %v7493_v45 = vmul.f32 %v7410_v56, %v1241_v11  ;;  %v5790_v11 = vld [vmem:[%s9207_s1 + $0x58] sm:$0xff]  }
 0x52d   :  { %v959_v15 = vpop.permute.xlu1 %958 }
 0x52e   :  { %v7496_v16 = vmul.f32 %v7414_v61, %v959_v15  ;;  %1623 = vrot.lane.b32.xlu0 %v7493_v45, %s7010_s27 }
 0x52f   :  { %v957_v41 = vpop.permute.xlu0 %956 }
 0x530   :  { %v7501_v19 = vmul.f32 %v7418_v12, %v957_v41  ;;  %1341 = vrot.lane.b32.xlu1 %v7496_v16, %s7010_s27  ;;  %v7585_v41 = vld [vmem:[%s9210_s4] ss:$0 sm:$0xff] }
 0x531   :  { %v963_v51 = vpop.permute.xlu1 %962  ;;  %v1331_v26 = vadd.f32 %v7585_v41, %v5686_v49  ;;  %v1334_v20 = vadd.f32 %v7585_v41, %v5691_v58 }
 0x532   :  { %v7506_v10 = vmul.f32 %v7422_v57, %v963_v51  ;;  %1339 = vrot.lane.b32.xlu0 %v7501_v19, %s7010_s27  ;;  %v5690_v51 = vunpack.c.l.bf16 %v5788_v47 }
 0x533   :  { %v961_v56 = vpop.permute.xlu0 %960 }
 0x534   :  { %v7511_v61 = vmul.f32 %v7426_v55, %v961_v56  ;;  %1345 = vrot.lane.b32.xlu1 %v7506_v10, %s7010_s27 }
 0x535   :  { %v1247_v21 = vpop.permute.xlu1 %1246 }
 0x536   :  { %v7516_v12 = vmul.f32 %v7430_v60, %v1247_v21  ;;  %1343 = vrot.lane.b32.xlu0 %v7511_v61, %s7010_s27  ;;  %v7529_v60 = vld [vmem:[#allocation11 + $0x18] sm:$0xff] }
 0x537   :  { %v1245_v5 = vpop.permute.xlu0 %1244 }
 0x538   :  { %v7521_v57 = vmul.f32 %v7434_v7, %v1245_v5  ;;  %1629 = vrot.lane.b32.xlu1 %v7516_v12, %s7010_s27  ;;  %v7532_v7 = vld [vmem:[#allocation11 + $0x10] sm:$0xff]  ;;  %v5699_v5 = vunpack.c.h.bf16 %v5790_v11 }
 0x53a   :  { %1627 = vrot.lane.b32.xlu0 %v7521_v57, %s7010_s27 }
 0x59e   :  { %v1626_v55 = vpop.permute.xlu1 %1625 }
 0x5a0   :  { %v1624_v4 = vpop.permute.xlu0 %1623 }
 0x5a1   :  { %6046 = vmatprep.mubr.msk.f32.mxu1 %vm100_vm0, %v1624_v4 }
 0x5a2   :  { %v1342_v9 = vpop.permute.xlu1 %1341  ;;  %6047 = vmatmul.mubr.msk.f32.vlgmr.msra.gmra.mxu1 %vm100_vm0, %v1626_v55 }
 0x5a3   :  { %6067 = vmatpush3.msra.mxu1 %v7529_v60 }
 0x5a4   :  { %v1340_v3 = vpop.permute.xlu0 %1339  ;;  %6068 = vmatprep.subr.mxu1 %v7532_v7 }
 0x5a5   :  { %6032 = vmatprep.mubr.msk.f32.mxu0 %vm100_vm0, %v1340_v3  ;;  %6069 = vmatpush3.msra.mxu1 %v7532_v7  ;;  %v5698_v3 = vunpack.c.l.bf16 %v5790_v11 }
 0x5a6   :  { %6033 = vmatmul.mubr.msk.f32.vlgmr.msra.gmra.mxu0 %vm100_vm0, %v1342_v9  ;;  %6070 = vmatprep.subr.mxu1 %v7538_v6  ;;  %v1346_v24 = vpop.permute.xlu1 %1345  ;;  %v1333_v9 = vadd.f32 %v7585_v41, %v5690_v51 }
 0x5a7   :  { %6053 = vmatpush3.msra.mxu0 %v7541_v25  ;;  %6071 = vmatpush3.msra.mxu1 %v7538_v6 }
 0x5a8   :  { %v1344_v2 = vpop.permute.xlu0 %1343  ;;  %6054 = vmatprep.subr.mxu0 %v7545_v27  ;;  %6072 = vmatprep.subr.mxu1 %v7548_v22 }
 0x5a9   :  { %6035 = vmatprep.mubr.msk.f32.mxu0 %vm100_vm0, %v1344_v2  ;;  %6055 = vmatpush3.msra.mxu0 %v7545_v27 }
 0x5aa   :  { %6036 = vmatmul.mubr.msk.f32.gmra.mxu0 %vm100_vm0, %v1346_v24  ;;  %6073 = vmatpush3.msra.mxu1 %v7548_v22  ;;  %v1630_v35 = vpop.permute.xlu1 %1629 }
 0x5ab   :  { %6056 = vmatprep.subr.mxu0 %v7555_v30  ;;  %6094 = vmatprep.subr.mxu1 %v7529_v60 }
 0x5ac   :  { %v1628_v33 = vpop.permute.xlu0 %1627  ;;  %6057 = vmatpush3.msra.mxu0 %v7555_v30 }
 0x5ad   :  { %6049 = vmatprep.mubr.msk.f32.mxu1 %vm100_vm0, %v1628_v33  ;;  %6058 = vmatprep.subr.mxu0 %v7561_v36  ;;  %v7593_v33 = vld [vmem:[%s9211_s5] ss:$0 sm:$0xff] }
 0x5ae   :  { %6050 = vmatmul.mubr.msk.f32.gmra.mxu1 %vm100_vm0, %v1630_v35  ;;  %6059 = vmatpush3.msra.mxu0 %v7561_v36  ;;  %v1618_v35 = vadd.f32 %v7593_v33, %v5699_v5  ;;  %v1617_v40 = vadd.f32 %v7593_v33, %v5698_v3 }
 0x5af   :  { %6080 = vmatprep.subr.mxu0 %v7541_v25 }
 0x662   :  { %v6048_v44 = vpop.f32.mrf.mxu1 }
 0x663   :  { %v1725_v53 = vadd.f32 %v6048_v44, %v1616_v43 }
 0x664   :  { %v1705_v59 = vpop.f32.mrf.mxu1 }
 0x665   :  { %6546 = vtanh.f32 %v1725_v53  ;;  %v1724_v15 = vadd.f32 %v1705_v59, %v1615_v50  ;;  %v5431_v51 = vmul.f32 -1.442695, %v1725_v53 }
 0x666   :  { %v6034_v56 = vpop.f32.mrf.mxu0 }
 0x667   :  { %v1441_v21 = vadd.f32 %v6034_v56, %v1332_v54  ;;  %6548 = vtanh.f32 %v1724_v15  ;;  %v5430_v56 = vmul.f32 -1.442695, %v1724_v15 }
 0x668   :  { %v1421_v55 = vpop.f32.mrf.mxu0 }
 0x669   :  { %v1440_v4 = vadd.f32 %v1421_v55, %v1331_v26  ;;  %6550 = vtanh.f32 %v1441_v21 }
 0x66a   :  { %v6037_v24 = vpop.f32.mrf.mxu0 }
 0x66b   :  { %v1443_v2 = vadd.f32 %v6037_v24, %v1334_v20  ;;  %6552 = vtanh.f32 %v1440_v4  ;;  %v5411_v20 = vmul.f32 -1.442695, %v1441_v21  ;;  %v5410_v5 = vmul.f32 -1.442695, %v1440_v4 }
 0x66c   :  { %v1431_v37 = vpop.f32.mrf.mxu0 }
 0x66d   :  { %v1442_v38 = vadd.f32 %v1431_v37, %v1333_v9  ;;  %6554 = vtanh.f32 %v1443_v2  ;;  %v5413_v55 = vmul.f32 -1.442695, %v1443_v2 }
 0x66e   :  { %v6051_v42 = vpop.f32.mrf.mxu1 }
 0x66f   :  { %v1727_v43 = vadd.f32 %v6051_v42, %v1618_v35  ;;  %6556 = vtanh.f32 %v1442_v38  ;;  %v5412_v9 = vmul.f32 -1.442695, %v1442_v38 }
 0x670   :  { %v1715_v46 = vpop.f32.mrf.mxu1 }
 0x671   :  { %v1726_v47 = vadd.f32 %v1715_v46, %v1617_v40  ;;  %6558 = vtanh.f32 %v1727_v43  ;;  %v5433_v3 = vmul.f32 -1.442695, %v1727_v43 }
 0x672   :  { %v6547_v50 = vpop.eup %6546 }
 0x673   :  { %1766 = vrot.lane.b32.xlu1 %v6547_v50, %s7009_s26  ;;  %6560 = vtanh.f32 %v1726_v47  ;;  %v5432_v24 = vmul.f32 -1.442695, %v1726_v47 }
 0x674   :  { %v6549_v49 = vpop.eup %6548  ;;  %6562 = vpow2.f32 %v5431_v51 }
 0x675   :  { %1764 = vrot.lane.b32.xlu0 %v6549_v49, %s7009_s26  ;;  %6564 = vpow2.f32 %v5430_v56 }
 0x676   :  { %v6551_v44 = vpop.eup %6550  ;;  %6566 = vpow2.f32 %v5411_v20 }
 0x677   :  { %1482 = vrot.lane.b32.xlu1 %v6551_v44, %s7009_s26  ;;  %6568 = vpow2.f32 %v5410_v5 }
 0x678   :  { %v6553_v54 = vpop.eup %6552  ;;  %6570 = vpow2.f32 %v5413_v55 }
 0x679   :  { %1480 = vrot.lane.b32.xlu0 %v6553_v54, %s7009_s26  ;;  %6572 = vpow2.f32 %v5412_v9 }
 0x67a   :  { %v6555_v58 = vpop.eup %6554  ;;  %6574 = vpow2.f32 %v5433_v3 }
 0x67b   :  { %1486 = vrot.lane.b32.xlu1 %v6555_v58, %s7009_s26  ;;  %6576 = vpow2.f32 %v5432_v24 }
 0x67c   :  { %v6557_v59 = vpop.eup %6556 }
 0x67d   :  { %1484 = vrot.lane.b32.xlu0 %v6557_v59, %s7009_s26 }
 0x67e   :  { %v6559_v11 = vpop.eup %6558 }
 0x67f   :  { %1770 = vrot.lane.b32.xlu1 %v6559_v11, %s7009_s26 }
 0x680   :  { %v6561_v26 = vpop.eup %6560 }
 0x681   :  { %1768 = vrot.lane.b32.xlu0 %v6561_v26, %s7009_s26  ;;  %v6563_v35 = vpop.eup %6562 }
 0x682   :  { %v6565_v37 = vpop.eup %6564  ;;  %v1741_v40 = vadd.f32 1.0, %v6563_v35 }
 0x683   :  { %v6567_v42 = vpop.eup %6566  ;;  %v1740_v53 = vadd.f32 1.0, %v6565_v37 }
 0x684   :  { %v6569_v15 = vpop.eup %6568  ;;  %6578 = vrcp.f32 %v1741_v40  ;;  %v1457_v21 = vadd.f32 1.0, %v6567_v42 }
 0x685   :  { %v6571_v46 = vpop.eup %6570  ;;  %6580 = vrcp.f32 %v1740_v53  ;;  %v1456_v4 = vadd.f32 1.0, %v6569_v15 }
 0x686   :  { %v6573_v2 = vpop.eup %6572  ;;  %6582 = vrcp.f32 %v1457_v21  ;;  %v1459_v38 = vadd.f32 1.0, %v6571_v46 }
 0x687   :  { %v6575_v50 = vpop.eup %6574  ;;  %6584 = vrcp.f32 %v1456_v4  ;;  %v1458_v43 = vadd.f32 1.0, %v6573_v2 }
 0x688   :  { %v6577_v47 = vpop.eup %6576  ;;  %6586 = vrcp.f32 %v1459_v38  ;;  %v1743_v49 = vadd.f32 1.0, %v6575_v50 }
 0x689   :  { %6588 = vrcp.f32 %v1458_v43  ;;  %v1742_v44 = vadd.f32 1.0, %v6577_v47 }
 0x68a   :  { %6590 = vrcp.f32 %v1743_v49 }
 0x68b   :  { %6592 = vrcp.f32 %v1742_v44 }
 0x691   :  { %v7605_v54 = vpop.eup %6578 }
 0x692   :  { %v7608_v11 = vpop.eup %6580  ;;  %v1757_v50 = vmul.f32 %v7605_v54, %v7441_v23 }
 0x693   :  { %v7612_v56 = vpop.eup %6582  ;;  %v1756_v49 = vmul.f32 %v7608_v11, %v7446_v8 }
 0x694   :  { %v7616_v55 = vpop.eup %6584 }
 0x695   :  { %v7620_v24 = vpop.eup %6586  ;;  %v1472_v23 = vmul.f32 %v7616_v55, %v7456_v32 }
 0x696   :  { %v7624_v40 = vpop.eup %6588 }
 0x697   :  { %v7628_v15 = vpop.eup %6590 }
 0x698   :  { %v7632_v4 = vpop.eup %6592 }
 0x6e5   :  { %v1767_v58 = vpop.permute.xlu1 %1766 }
 0x6e6   :  { %v1777_v59 = vmul.f32 %v7605_v54, %v1767_v58 }
 0x6e7   :  { %v1765_v26 = vpop.permute.xlu0 %1764 }
 0x6e8   :  { %1786 = vrot.lane.b32.xlu1 %v1777_v59, %s7009_s26  ;;  %v1776_v51 = vmul.f32 %v7608_v11, %v1765_v26  ;;  %v1473_v59 = vmul.f32 %v7612_v56, %v7451_v31 }
 0x6e9   :  { %v1483_v20 = vpop.permute.xlu1 %1482 }
 0x6ea   :  { %v1493_v5 = vmul.f32 %v7612_v56, %v1483_v20  ;;  %1784 = vrot.lane.b32.xlu0 %v1776_v51, %s7009_s26 }
 0x6eb   :  { %v1481_v9 = vpop.permute.xlu0 %1480 }
 0x6ec   :  { %v1492_v3 = vmul.f32 %v7616_v55, %v1481_v9  ;;  %1502 = vrot.lane.b32.xlu1 %v1493_v5, %s7009_s26  ;;  %v1475_v5 = vmul.f32 %v7620_v24, %v7461_v28 }
 0x6ed   :  { %v1487_v35 = vpop.permute.xlu1 %1486 }
 0x6ee   :  { %v1495_v37 = vmul.f32 %v7620_v24, %v1487_v35  ;;  %1500 = vrot.lane.b32.xlu0 %v1492_v3, %s7009_s26  ;;  %v1474_v3 = vmul.f32 %v7624_v40, %v7466_v34 }
 0x6ef   :  { %v1485_v42 = vpop.permute.xlu0 %1484 }
 0x6f0   :  { %v1494_v53 = vmul.f32 %v7624_v40, %v1485_v42  ;;  %1506 = vrot.lane.b32.xlu1 %v1495_v37, %s7009_s26  ;;  %v1759_v37 = vmul.f32 %v7628_v15, %v7471_v29 }
 0x6f1   :  { %v1771_v21 = vpop.permute.xlu1 %1770 }
 0x6f2   :  { %v1779_v46 = vmul.f32 %v7628_v15, %v1771_v21  ;;  %1504 = vrot.lane.b32.xlu0 %v1494_v53, %s7009_s26  ;;  %v1758_v53 = vmul.f32 %v7632_v4, %v7476_v39 }
 0x6f3   :  { %v1769_v2 = vpop.permute.xlu0 %1768 }
 0x6f4   :  { %v1778_v38 = vmul.f32 %v7632_v4, %v1769_v2  ;;  %1790 = vrot.lane.b32.xlu1 %v1779_v46, %s7009_s26 }
 0x6f6   :  { %1788 = vrot.lane.b32.xlu0 %v1778_v38, %s7009_s26 }
 0x75a   :  { %v1787_v43 = vpop.permute.xlu1 %1786 }
 0x75b   :  { %v7639_v47 = vadd.f32 %v1787_v43, %v1757_v50 }
 0x75c   :  { %v1785_v44 = vpop.permute.xlu0 %1784 }
 0x75d   :  { %6594 = vtanh.f32 %v7639_v47  ;;  %v7644_v58 = vadd.f32 %v1785_v44, %v1756_v49 }
 0x75e   :  { %v1503_v26 = vpop.permute.xlu1 %1502 }
 0x75f   :  { %6596 = vtanh.f32 %v7644_v58  ;;  %v7649_v51 = vadd.f32 %v1503_v26, %v1473_v59 }
 0x760   :  { %v1501_v20 = vpop.permute.xlu0 %1500 }
 0x761   :  { %6598 = vtanh.f32 %v7649_v51  ;;  %v7654_v8 = vadd.f32 %v1501_v20, %v1472_v23 }
 0x762   :  { %v1507_v9 = vpop.permute.xlu1 %1506 }
 0x763   :  { %6600 = vtanh.f32 %v7654_v8  ;;  %v7659_v31 = vadd.f32 %v1507_v9, %v1475_v5 }
 0x764   :  { %v1505_v35 = vpop.permute.xlu0 %1504 }
 0x765   :  { %6602 = vtanh.f32 %v7659_v31  ;;  %v7664_v32 = vadd.f32 %v1505_v35, %v1474_v3 }
 0x766   :  { %v1791_v42 = vpop.permute.xlu1 %1790 }
 0x767   :  { %6604 = vtanh.f32 %v7664_v32  ;;  %v7669_v28 = vadd.f32 %v1791_v42, %v1759_v37 }
 0x768   :  { %v1789_v21 = vpop.permute.xlu0 %1788 }
 0x769   :  { %6606 = vtanh.f32 %v7669_v28  ;;  %v7674_v34 = vadd.f32 %v1789_v21, %v1758_v53 }
 0x76a   :  { %v6595_v46 = vpop.eup %6594 }
 0x76b   :  { %1810 = vrot.lane.b32.xlu1 %v6595_v46, %s7009_s26  ;;  %6608 = vtanh.f32 %v7674_v34 }
 0x76c   :  { %v6597_v2 = vpop.eup %6596 }
 0x76d   :  { %1808 = vrot.lane.b32.xlu0 %v6597_v2, %s7009_s26 }
 0x76e   :  { %v6599_v29 = vpop.eup %6598 }
 0x76f   :  { %1526 = vrot.lane.b32.xlu1 %v6599_v29, %s7009_s26 }
 0x770   :  { %v6601_v38 = vpop.eup %6600 }
 0x771   :  { %1524 = vrot.lane.b32.xlu0 %v6601_v38, %s7009_s26  ;;  %v5793_v38 = vld [vmem:[%s9207_s1 + $0x40] sm:$0xff]  }
 0x772   :  { %v6603_v39 = vpop.eup %6602 }
 0x773   :  { %1530 = vrot.lane.b32.xlu1 %v6603_v39, %s7009_s26  ;;  %v5711_v39 = vunpack.c.h.bf16 %v5793_v38 }
 0x774   :  { %v6605_v50 = vpop.eup %6604 }
 0x775   :  { %1528 = vrot.lane.b32.xlu0 %v6605_v50, %s7009_s26  ;;  %v5791_v50 = vld [vmem:[%s9206_s0 + $0x30] sm:$0xff]  }
 0x776   :  { %v6607_v43 = vpop.eup %6606 }
 0x777   :  { %1814 = vrot.lane.b32.xlu1 %v6607_v43, %s7009_s26  ;;  %v5710_v43 = vunpack.c.l.bf16 %v5793_v38 }
 0x778   :  { %v6609_v49 = vpop.eup %6608 }
 0x779   :  { %1812 = vrot.lane.b32.xlu0 %v6609_v49, %s7009_s26  ;;  %v2184_v49 = vadd.f32 %v7593_v33, %v5711_v39 }
 0x7dd   :  { %v1811_v44 = vpop.permute.xlu1 %1810 }
 0x7de   :  { %v7686_v59 = vmul.f32 %v7605_v54, %v1811_v44  ;;  %v5703_v44 = vunpack.c.h.bf16 %v5791_v50 }
 0x7df   :  { %v1809_v26 = vpop.permute.xlu0 %1808 }
 0x7e0   :  { %2193 = vrot.lane.b32.xlu1 %v7686_v59, %s7010_s27  ;;  %v7691_v23 = vmul.f32 %v7608_v11, %v1809_v26  ;;  %v5792_v26 = vld [vmem:[%s9206_s0 + $0x38] sm:$0xff]  }
 0x7e1   :  { %v1527_v20 = vpop.permute.xlu1 %1526 }
 0x7e2   :  { %v7694_v5 = vmul.f32 %v7612_v56, %v1527_v20  ;;  %2191 = vrot.lane.b32.xlu0 %v7691_v23, %s7010_s27  ;;  %v2183_v20 = vadd.f32 %v7593_v33, %v5710_v43 }
 0x7e3   :  { %v1525_v9 = vpop.permute.xlu0 %1524 }
 0x7e4   :  { %v7699_v3 = vmul.f32 %v7616_v55, %v1525_v9  ;;  %1909 = vrot.lane.b32.xlu1 %v7694_v5, %s7010_s27  ;;  %v5702_v9 = vunpack.c.l.bf16 %v5791_v50 }
 0x7e5   :  { %v1531_v54 = vpop.permute.xlu1 %1530 }
 0x7e6   :  { %v7704_v35 = vmul.f32 %v7620_v24, %v1531_v54  ;;  %1907 = vrot.lane.b32.xlu0 %v7699_v3, %s7010_s27 }
 0x7e7   :  { %v1529_v11 = vpop.permute.xlu0 %1528 }
 0x7e8   :  { %v7709_v56 = vmul.f32 %v7624_v40, %v1529_v11  ;;  %1913 = vrot.lane.b32.xlu1 %v7704_v35, %s7010_s27 }
 0x7e9   :  { %v1815_v37 = vpop.permute.xlu1 %1814 }
 0x7ea   :  { %v7714_v55 = vmul.f32 %v7628_v15, %v1815_v37  ;;  %1911 = vrot.lane.b32.xlu0 %v7709_v56, %s7010_s27  ;;  %v1900_v37 = vadd.f32 %v7585_v41, %v5703_v44 }
 0x7eb   :  { %v1813_v42 = vpop.permute.xlu0 %1812 }
 0x7ec   :  { %v7719_v24 = vmul.f32 %v7632_v4, %v1813_v42  ;;  %2197 = vrot.lane.b32.xlu1 %v7714_v55, %s7010_s27  ;;  %v5707_v42 = vunpack.c.h.bf16 %v5792_v26 }
 0x7ee   :  { %9260 = vst [vmem:[#allocation15_spill] sm:$0xff] %v7719_v24  ;;  %2195 = vrot.lane.b32.xlu0 %v7719_v24, %s7010_s27 }
 0x852   :  { %v2194_v40 = vpop.permute.xlu1 %2193 }
 0x854   :  { %v2192_v53 = vpop.permute.xlu0 %2191 }
 0x855   :  { %6074 = vmatprep.mubr.msk.f32.mxu1 %vm100_vm0, %v2192_v53  ;;  %v5794_v53 = vld [vmem:[%s9207_s1 + $0x48] sm:$0xff]  }
 0x856   :  { %v1910_v21 = vpop.permute.xlu1 %1909  ;;  %6075 = vmatmul.mubr.msk.f32.vlgmr.msra.gmra.mxu1 %vm100_vm0, %v2194_v40  ;;  %v5715_v38 = vunpack.c.h.bf16 %v5794_v53 }
 0x857   :  { %6095 = vmatpush3.msra.mxu1 %v7529_v60 }
 0x858   :  { %v1908_v15 = vpop.permute.xlu0 %1907  ;;  %6096 = vmatprep.subr.mxu1 %v7532_v7  ;;  %v2186_v1 = vadd.f32 %v7593_v33, %v5715_v38 }
 0x859   :  { %6060 = vmatprep.mubr.msk.f32.mxu0 %vm100_vm0, %v1908_v15  ;;  %6097 = vmatpush3.msra.mxu1 %v7532_v7  ;;  %v1899_v15 = vadd.f32 %v7585_v41, %v5702_v9 }
 0x85a   :  { %6061 = vmatmul.mubr.msk.f32.vlgmr.msra.gmra.mxu0 %vm100_vm0, %v1910_v21  ;;  %6098 = vmatprep.subr.mxu1 %v7538_v6  ;;  %v1914_v4 = vpop.permute.xlu1 %1913 }
 0x85b   :  { %6081 = vmatpush3.msra.mxu0 %v7541_v25  ;;  %6099 = vmatpush3.msra.mxu1 %v7538_v6 }
 0x85c   :  { %v1912_v46 = vpop.permute.xlu0 %1911  ;;  %6082 = vmatprep.subr.mxu0 %v7545_v27  ;;  %6100 = vmatprep.subr.mxu1 %v7548_v22 }
 0x85d   :  { %6063 = vmatprep.mubr.msk.f32.mxu0 %vm100_vm0, %v1912_v46  ;;  %6083 = vmatpush3.msra.mxu0 %v7545_v27 }
 0x85e   :  { %6064 = vmatmul.mubr.msk.f32.gmra.mxu0 %vm100_vm0, %v1914_v4  ;;  %6101 = vmatpush3.msra.mxu1 %v7548_v22  ;;  %v2198_v29 = vpop.permute.xlu1 %2197  ;;  %v5706_v4 = vunpack.c.l.bf16 %v5792_v26 }
 0x85f   :  { %6084 = vmatprep.subr.mxu0 %v7555_v30  ;;  %6122 = vmatprep.subr.mxu1 %v7529_v60 }
 0x860   :  { %v2196_v2 = vpop.permute.xlu0 %2195  ;;  %6085 = vmatpush3.msra.mxu0 %v7555_v30  ;;  %v1901_v43 = vadd.f32 %v7585_v41, %v5706_v4 }
 0x861   :  { %6077 = vmatprep.mubr.msk.f32.mxu1 %vm100_vm0, %v2196_v2  ;;  %6086 = vmatprep.subr.mxu0 %v7561_v36 }
 0x862   :  { %6078 = vmatmul.mubr.msk.f32.gmra.mxu1 %vm100_vm0, %v2198_v29  ;;  %6087 = vmatpush3.msra.mxu0 %v7561_v36  ;;  %v1902_v29 = vadd.f32 %v7585_v41, %v5707_v42 }
 0x863   :  { %6108 = vmatprep.subr.mxu0 %v7541_v25 }
 0x916   :  { %v6076_v54 = vpop.f32.mrf.mxu1 }
 0x917   :  { %v2293_v11 = vadd.f32 %v6076_v54, %v2184_v49  ;;  %v5714_v49 = vunpack.c.l.bf16 %v5794_v53 }
 0x918   :  { %v2273_v40 = vpop.f32.mrf.mxu1 }
 0x919   :  { %6610 = vtanh.f32 %v2293_v11  ;;  %v2292_v21 = vadd.f32 %v2273_v40, %v2183_v20  ;;  %v2185_v26 = vadd.f32 %v7593_v33, %v5714_v49  ;;  %v5471_v49 = vmul.f32 -1.442695, %v2293_v11 }
 0x91a   :  { %v6062_v46 = vpop.f32.mrf.mxu0 }
 0x91b   :  { %v2009_v2 = vadd.f32 %v6062_v46, %v1900_v37  ;;  %6612 = vtanh.f32 %v2292_v21 }
 0x91c   :  { %v1989_v39 = vpop.f32.mrf.mxu0 }
 0x91d   :  { %v2008_v50 = vadd.f32 %v1989_v39, %v1899_v15  ;;  %6614 = vtanh.f32 %v2009_v2 }
 0x91e   :  { %v6065_v44 = vpop.f32.mrf.mxu0 }
 0x91f   :  { %v2011_v54 = vadd.f32 %v6065_v44, %v1902_v29  ;;  %6616 = vtanh.f32 %v2008_v50  ;;  %v5470_v44 = vmul.f32 -1.442695, %v2292_v21 }
 0x920   :  { %v1999_v20 = vpop.f32.mrf.mxu0 }
 0x921   :  { %v2010_v9 = vadd.f32 %v1999_v20, %v1901_v43  ;;  %6618 = vtanh.f32 %v2011_v54  ;;  %v5451_v20 = vmul.f32 -1.442695, %v2009_v2 }
 0x922   :  { %v6079_v37 = vpop.f32.mrf.mxu1 }
 0x923   :  { %v2295_v42 = vadd.f32 %v6079_v37, %v2186_v1  ;;  %6620 = vtanh.f32 %v2010_v9  ;;  %v5453_v37 = vmul.f32 -1.442695, %v2011_v54 }
 0x924   :  { %v2283_v40 = vpop.f32.mrf.mxu1 }
 0x925   :  { %v2294_v46 = vadd.f32 %v2283_v40, %v2185_v26  ;;  %6622 = vtanh.f32 %v2295_v42  ;;  %v5450_v26 = vmul.f32 -1.442695, %v2008_v50  ;;  %v5452_v40 = vmul.f32 -1.442695, %v2010_v9 }
 0x926   :  { %v6611_v15 = vpop.eup %6610 }
 0x927   :  { %2334 = vrot.lane.b32.xlu1 %v6611_v15, %s7009_s26  ;;  %6624 = vtanh.f32 %v2294_v46  ;;  %v5473_v15 = vmul.f32 -1.442695, %v2295_v42 }
 0x928   :  { %v6613_v53 = vpop.eup %6612  ;;  %6626 = vpow2.f32 %v5471_v49 }
 0x929   :  { %2332 = vrot.lane.b32.xlu0 %v6613_v53, %s7009_s26  ;;  %6628 = vpow2.f32 %v5470_v44  ;;  %v5472_v53 = vmul.f32 -1.442695, %v2294_v46 }
 0x92a   :  { %v6615_v4 = vpop.eup %6614  ;;  %6630 = vpow2.f32 %v5451_v20 }
 0x92b   :  { %2050 = vrot.lane.b32.xlu1 %v6615_v4, %s7009_s26  ;;  %6632 = vpow2.f32 %v5450_v26 }
 0x92c   :  { %v6617_v29 = vpop.eup %6616  ;;  %6634 = vpow2.f32 %v5453_v37 }
 0x92d   :  { %2048 = vrot.lane.b32.xlu0 %v6617_v29, %s7009_s26  ;;  %6636 = vpow2.f32 %v5452_v40 }
 0x92e   :  { %v6619_v38 = vpop.eup %6618  ;;  %6638 = vpow2.f32 %v5473_v15 }
 0x92f   :  { %2054 = vrot.lane.b32.xlu1 %v6619_v38, %s7009_s26  ;;  %6640 = vpow2.f32 %v5472_v53 }
 0x930   :  { %v6621_v1 = vpop.eup %6620 }
 0x931   :  { %2052 = vrot.lane.b32.xlu0 %v6621_v1, %s7009_s26 }
 0x932   :  { %v6623_v39 = vpop.eup %6622 }
 0x933   :  { %2338 = vrot.lane.b32.xlu1 %v6623_v39, %s7009_s26 }
 0x934   :  { %v6625_v43 = vpop.eup %6624 }
 0x935   :  { %2336 = vrot.lane.b32.xlu0 %v6625_v43, %s7009_s26  ;;  %v6627_v4 = vpop.eup %6626 }
 0x936   :  { %v6629_v29 = vpop.eup %6628  ;;  %v2309_v38 = vadd.f32 1.0, %v6627_v4 }
 0x937   :  { %v6631_v1 = vpop.eup %6630  ;;  %v2308_v11 = vadd.f32 1.0, %v6629_v29 }
 0x938   :  { %v6633_v21 = vpop.eup %6632  ;;  %6642 = vrcp.f32 %v2309_v38  ;;  %v2025_v2 = vadd.f32 1.0, %v6631_v1 }
 0x939   :  { %v6635_v39 = vpop.eup %6634  ;;  %6644 = vrcp.f32 %v2308_v11  ;;  %v2024_v50 = vadd.f32 1.0, %v6633_v21 }
 0x93a   :  { %v6637_v54 = vpop.eup %6636  ;;  %6646 = vrcp.f32 %v2025_v2  ;;  %v2027_v9 = vadd.f32 1.0, %v6635_v39 }
 0x93b   :  { %v6639_v43 = vpop.eup %6638  ;;  %6648 = vrcp.f32 %v2024_v50  ;;  %v2026_v42 = vadd.f32 1.0, %v6637_v54 }
 0x93c   :  { %v6641_v46 = vpop.eup %6640  ;;  %6650 = vrcp.f32 %v2027_v9  ;;  %v2311_v49 = vadd.f32 1.0, %v6639_v43 }
 0x93d   :  { %6652 = vrcp.f32 %v2026_v42  ;;  %v2310_v44 = vadd.f32 1.0, %v6641_v46 }
 0x93e   :  { %6654 = vrcp.f32 %v2311_v49 }
 0x93f   :  { %6656 = vrcp.f32 %v2310_v44 }
 0x945   :  { %v7777_v20 = vpop.eup %6642 }
 0x946   :  { %v7780_v40 = vpop.eup %6644 }
 0x947   :  { %v7784_v4 = vpop.eup %6646 }
 0x948   :  { %v7788_v1 = vpop.eup %6648 }
 0x949   :  { %v7792_v2 = vpop.eup %6650 }
 0x94a   :  { %v7796_v54 = vpop.eup %6652 }
 0x94b   :  { %v7800_v42 = vpop.eup %6654 }
 0x94c   :  { %v7804_v44 = vpop.eup %6656 }
 0x999   :  { %v2335_v26 = vpop.permute.xlu1 %2334 }
 0x99a   :  { %v2345_v37 = vmul.f32 %v7777_v20, %v2335_v26 }
 0x99b   :  { %v2333_v15 = vpop.permute.xlu0 %2332 }
 0x99c   :  { %2354 = vrot.lane.b32.xlu1 %v2345_v37, %s7009_s26  ;;  %v2344_v53 = vmul.f32 %v7780_v40, %v2333_v15  ;;  %v2325_v15 = vmul.f32 %v7777_v20, %v7639_v47  ;;  %v2040_v47 = vmul.f32 %v7788_v1, %v7654_v8 }
 0x99d   :  { %v2051_v29 = vpop.permute.xlu1 %2050 }
 0x99e   :  { %v2061_v38 = vmul.f32 %v7784_v4, %v2051_v29  ;;  %2352 = vrot.lane.b32.xlu0 %v2344_v53, %s7009_s26 }
 0x99f   :  { %v2049_v11 = vpop.permute.xlu0 %2048 }
 0x9a0   :  { %v2060_v21 = vmul.f32 %v7788_v1, %v2049_v11  ;;  %2070 = vrot.lane.b32.xlu1 %v2061_v38, %s7009_s26  ;;  %v2324_v38 = vmul.f32 %v7780_v40, %v7644_v58 }
 0x9a1   :  { %v2055_v39 = vpop.permute.xlu1 %2054 }
 0x9a2   :  { %v2063_v50 = vmul.f32 %v7792_v2, %v2055_v39  ;;  %2068 = vrot.lane.b32.xlu0 %v2060_v21, %s7009_s26  ;;  %v2041_v39 = vmul.f32 %v7784_v4, %v7649_v51 }
 0x9a3   :  { %v2053_v9 = vpop.permute.xlu0 %2052 }
 0x9a4   :  { %v2062_v43 = vmul.f32 %v7796_v54, %v2053_v9  ;;  %2074 = vrot.lane.b32.xlu1 %v2063_v50, %s7009_s26 }
 0x9a5   :  { %v2339_v46 = vpop.permute.xlu1 %2338 }
 0x9a6   :  { %v2347_v49 = vmul.f32 %v7800_v42, %v2339_v46  ;;  %2072 = vrot.lane.b32.xlu0 %v2062_v43, %s7009_s26  ;;  %v2043_v46 = vmul.f32 %v7792_v2, %v7659_v31 }
 0x9a7   :  { %v2337_v26 = vpop.permute.xlu0 %2336 }
 0x9a8   :  { %v2346_v37 = vmul.f32 %v7804_v44, %v2337_v26  ;;  %2358 = vrot.lane.b32.xlu1 %v2347_v49, %s7009_s26  ;;  %v2042_v26 = vmul.f32 %v7796_v54, %v7664_v32 }
 0x9aa   :  { %2356 = vrot.lane.b32.xlu0 %v2346_v37, %s7009_s26 }
 0xa0e   :  { %v2355_v53 = vpop.permute.xlu1 %2354 }
 0xa0f   :  { %v7811_v29 = vadd.f32 %v2355_v53, %v2325_v15  ;;  %v2327_v15 = vmul.f32 %v7800_v42, %v7669_v28 }
 0xa10   :  { %v2353_v11 = vpop.permute.xlu0 %2352 }
 0xa11   :  { %6658 = vtanh.f32 %v7811_v29  ;;  %v7816_v21 = vadd.f32 %v2353_v11, %v2324_v38  ;;  %v2326_v38 = vmul.f32 %v7804_v44, %v7674_v34 }
 0xa12   :  { %v2071_v50 = vpop.permute.xlu1 %2070 }
 0xa13   :  { %6660 = vtanh.f32 %v7816_v21  ;;  %v7821_v9 = vadd.f32 %v2071_v50, %v2041_v39 }
 0xa14   :  { %v2069_v43 = vpop.permute.xlu0 %2068 }
 0xa15   :  { %6662 = vtanh.f32 %v7821_v9  ;;  %v7826_v58 = vadd.f32 %v2069_v43, %v2040_v47 }
 0xa16   :  { %v2075_v49 = vpop.permute.xlu1 %2074 }
 0xa17   :  { %6664 = vtanh.f32 %v7826_v58  ;;  %v7831_v51 = vadd.f32 %v2075_v49, %v2043_v46 }
 0xa18   :  { %v2073_v37 = vpop.permute.xlu0 %2072 }
 0xa19   :  { %6666 = vtanh.f32 %v7831_v51  ;;  %v7836_v8 = vadd.f32 %v2073_v37, %v2042_v26 }
 0xa1a   :  { %v2359_v53 = vpop.permute.xlu1 %2358 }
 0xa1b   :  { %6668 = vtanh.f32 %v7836_v8  ;;  %v7841_v31 = vadd.f32 %v2359_v53, %v2327_v15 }
 0xa1c   :  { %v2357_v11 = vpop.permute.xlu0 %2356 }
 0xa1d   :  { %6670 = vtanh.f32 %v7841_v31  ;;  %v7846_v32 = vadd.f32 %v2357_v11, %v2326_v38 }
 0xa1e   :  { %v6659_v39 = vpop.eup %6658 }
 0xa1f   :  { %2378 = vrot.lane.b32.xlu1 %v6659_v39, %s7009_s26  ;;  %6672 = vtanh.f32 %v7846_v32 }
 0xa20   :  { %v6661_v50 = vpop.eup %6660 }
 0xa21   :  { %2376 = vrot.lane.b32.xlu0 %v6661_v50, %s7009_s26 }
 0xa22   :  { %v6663_v28 = vpop.eup %6662 }
 0xa23   :  { %2094 = vrot.lane.b32.xlu1 %v6663_v28, %s7009_s26 }
 0xa24   :  { %v6665_v47 = vpop.eup %6664 }
 0xa25   :  { %2092 = vrot.lane.b32.xlu0 %v6665_v47, %s7009_s26 }
 0xa26   :  { %v6667_v34 = vpop.eup %6666 }
 0xa27   :  { %2098 = vrot.lane.b32.xlu1 %v6667_v34, %s7009_s26 }
 0xa28   :  { %v6669_v43 = vpop.eup %6668 }
 0xa29   :  { %2096 = vrot.lane.b32.xlu0 %v6669_v43, %s7009_s26 }
 0xa2a   :  { %v6671_v46 = vpop.eup %6670 }
 0xa2b   :  { %2382 = vrot.lane.b32.xlu1 %v6671_v46, %s7009_s26 }
 0xa2c   :  { %v6673_v49 = vpop.eup %6672 }
 0xa2d   :  { %2380 = vrot.lane.b32.xlu0 %v6673_v49, %s7009_s26 }
 0xa91   :  { %v2379_v26 = vpop.permute.xlu1 %2378 }
 0xa92   :  { %v7858_v37 = vmul.f32 %v7777_v20, %v2379_v26 }
 0xa93   :  { %v2377_v15 = vpop.permute.xlu0 %2376 }
 0xa94   :  { %2761 = vrot.lane.b32.xlu1 %v7858_v37, %s7010_s27  ;;  %v7863_v53 = vmul.f32 %v7780_v40, %v2377_v15 }
 0xa95   :  { %v2095_v38 = vpop.permute.xlu1 %2094 }
 0xa96   :  { %9261 = vst [vmem:[#allocation16_spill] sm:$0xff] %v7863_v53  ;;  %v7866_v11 = vmul.f32 %v7784_v4, %v2095_v38  ;;  %2759 = vrot.lane.b32.xlu0 %v7863_v53, %s7010_s27  ;;  %v5796_v38 = vld [vmem:[%s9206_s0 + $0x48] sm:$0xff]  }
 0xa97   :  { %v2093_v39 = vpop.permute.xlu0 %2092 }
 0xa98   :  { %9262 = vst [vmem:[#allocation17_spill] sm:$0xff] %v7866_v11  ;;  %v7871_v50 = vmul.f32 %v7788_v1, %v2093_v39  ;;  %2477 = vrot.lane.b32.xlu1 %v7866_v11, %s7010_s27 }
 0xa99   :  { %v2099_v20 = vpop.permute.xlu1 %2098 }
 0xa9a   :  { %9263 = vst [vmem:[#allocation18_spill] sm:$0xff] %v7871_v50  ;;  %v7876_v28 = vmul.f32 %v7792_v2, %v2099_v20  ;;  %2475 = vrot.lane.b32.xlu0 %v7871_v50, %s7010_s27 }
 0xa9b   :  { %v2097_v40 = vpop.permute.xlu0 %2096 }
 0xa9c   :  { %9264 = vst [vmem:[#allocation19_spill] sm:$0xff] %v7876_v28  ;;  %v7881_v4 = vmul.f32 %v7796_v54, %v2097_v40  ;;  %2481 = vrot.lane.b32.xlu1 %v7876_v28, %s7010_s27 }
 0xa9d   :  { %v2383_v47 = vpop.permute.xlu1 %2382 }
 0xa9e   :  { %9265 = vst [vmem:[#allocation20_spill] sm:$0xff] %v7881_v4  ;;  %v7886_v1 = vmul.f32 %v7800_v42, %v2383_v47  ;;  %2479 = vrot.lane.b32.xlu0 %v7881_v4, %s7010_s27  ;;  %v5723_v47 = vunpack.c.h.bf16 %v5796_v38 }
 0xa9f   :  { %v2381_v34 = vpop.permute.xlu0 %2380 }
 0xaa0   :  { %9266 = vst [vmem:[#allocation21_spill] sm:$0xff] %v7886_v1  ;;  %v7891_v2 = vmul.f32 %v7804_v44, %v2381_v34  ;;  %2765 = vrot.lane.b32.xlu1 %v7886_v1, %s7010_s27 }
 0xaa2   :  { %9267 = vst [vmem:[#allocation22_spill] sm:$0xff] %v7891_v2  ;;  %2763 = vrot.lane.b32.xlu0 %v7891_v2, %s7010_s27 }
 0xb06   :  { %v2762_v54 = vpop.permute.xlu1 %2761 }
 0xb08   :  { %v2760_v43 = vpop.permute.xlu0 %2759 }
 0xb09   :  { %6102 = vmatprep.mubr.msk.f32.mxu1 %vm100_vm0, %v2760_v43 }
 0xb0a   :  { %v2478_v46 = vpop.permute.xlu1 %2477  ;;  %6103 = vmatmul.mubr.msk.f32.vlgmr.msra.gmra.mxu1 %vm100_vm0, %v2762_v54  ;;  %v5798_v54 = vld [vmem:[%s9207_s1 + $0x38] sm:$0xff]  }
 0xb0b   :  { %6123 = vmatpush3.msra.mxu1 %v7529_v60 }
 0xb0c   :  { %v2476_v42 = vpop.permute.xlu0 %2475  ;;  %6124 = vmatprep.subr.mxu1 %v7532_v7 }
 0xb0d   :  { %6088 = vmatprep.mubr.msk.f32.mxu0 %vm100_vm0, %v2476_v42  ;;  %6125 = vmatpush3.msra.mxu1 %v7532_v7  ;;  %v5722_v42 = vunpack.c.l.bf16 %v5796_v38 }
 0xb0e   :  { %6089 = vmatmul.mubr.msk.f32.vlgmr.msra.gmra.mxu0 %vm100_vm0, %v2478_v46  ;;  %6126 = vmatprep.subr.mxu1 %v7538_v6  ;;  %v2482_v44 = vpop.permute.xlu1 %2481 }
 0xb0f   :  { %6109 = vmatpush3.msra.mxu0 %v7541_v25  ;;  %6127 = vmatpush3.msra.mxu1 %v7538_v6 }
 0xb10   :  { %v2480_v49 = vpop.permute.xlu0 %2479  ;;  %6110 = vmatprep.subr.mxu0 %v7545_v27  ;;  %6128 = vmatprep.subr.mxu1 %v7548_v22 }
 0xb11   :  { %6091 = vmatprep.mubr.msk.f32.mxu0 %vm100_vm0, %v2480_v49  ;;  %6111 = vmatpush3.msra.mxu0 %v7545_v27  ;;  %v5797_v27 = vld [vmem:[%s9207_s1 + $0x30] sm:$0xff]  }
 0xb12   :  { %6092 = vmatmul.mubr.msk.f32.gmra.mxu0 %vm100_vm0, %v2482_v44  ;;  %6129 = vmatpush3.msra.mxu1 %v7548_v22  ;;  %v2766_v6 = vpop.permute.xlu1 %2765  ;;  %v5727_v22 = vunpack.c.h.bf16 %v5797_v27 }
 0xb13   :  { %6112 = vmatprep.subr.mxu0 %v7555_v30  ;;  %6150 = vmatprep.subr.mxu1 %v7529_v60  ;;  %v5795_v60 = vld [vmem:[%s9206_s0 + $0x40] sm:$0xff]  }
 0xb14   :  { %v2764_v7 = vpop.permute.xlu0 %2763  ;;  %6113 = vmatpush3.msra.mxu0 %v7555_v30  ;;  %v5726_v30 = vunpack.c.l.bf16 %v5797_v27  ;;  %v2752_v26 = vadd.f32 %v7593_v33, %v5727_v22  ;;  %v5719_v15 = vunpack.c.h.bf16 %v5795_v60 }
 0xb15   :  { %6105 = vmatprep.mubr.msk.f32.mxu1 %vm100_vm0, %v2764_v7  ;;  %6114 = vmatprep.subr.mxu0 %v7561_v36  ;;  %v2470_v7 = vadd.f32 %v7585_v41, %v5723_v47 }
 0xb16   :  { %6106 = vmatmul.mubr.msk.f32.gmra.mxu1 %vm100_vm0, %v2766_v6  ;;  %6115 = vmatpush3.msra.mxu0 %v7561_v36  ;;  %v2751_v36 = vadd.f32 %v7593_v33, %v5726_v30  ;;  %v2468_v40 = vadd.f32 %v7585_v41, %v5719_v15  ;;  %v5731_v6 = vunpack.c.h.bf16 %v5798_v54  ;;  %v5730_v30 = vunpack.c.l.bf16 %v5798_v54 }
 0xb17   :  { %6136 = vmatprep.subr.mxu0 %v7541_v25  ;;  %v5718_v25 = vunpack.c.l.bf16 %v5795_v60  ;;  %v2469_v60 = vadd.f32 %v7585_v41, %v5722_v42 }
 0xb18   :  { %v2753_v38 = vadd.f32 %v7593_v33, %v5730_v30 }
 0xb19   :  { %v2467_v46 = vadd.f32 %v7585_v41, %v5718_v25 }
 0xbca   :  { %v6104_v39 = vpop.f32.mrf.mxu1 }
 0xbcb   :  { %v2861_v20 = vadd.f32 %v6104_v39, %v2752_v26  ;;  %v2754_v39 = vadd.f32 %v7593_v33, %v5731_v6 }
 0xbcc   :  { %v2841_v34 = vpop.f32.mrf.mxu1 }
 0xbcd   :  { %6674 = vtanh.f32 %v2861_v20  ;;  %v2860_v43 = vadd.f32 %v2841_v34, %v2751_v36 }
 0xbce   :  { %v6090_v44 = vpop.f32.mrf.mxu0 }
 0xbcf   :  { %v2577_v49 = vadd.f32 %v6090_v44, %v2468_v40  ;;  %6676 = vtanh.f32 %v2860_v43  ;;  %v5510_v30 = vmul.f32 -1.442695, %v2860_v43 }
 0xbd0   :  { %v2557_v27 = vpop.f32.mrf.mxu0 }
 0xbd1   :  { %v2576_v22 = vadd.f32 %v2557_v27, %v2467_v46  ;;  %6678 = vtanh.f32 %v2577_v49 }
 0xbd2   :  { %v6093_v26 = vpop.f32.mrf.mxu0 }
 0xbd3   :  { %v2579_v15 = vadd.f32 %v6093_v26, %v2470_v7  ;;  %6680 = vtanh.f32 %v2576_v22  ;;  %v5491_v26 = vmul.f32 -1.442695, %v2577_v49 }
 0xbd4   :  { %v2567_v36 = vpop.f32.mrf.mxu0 }
 0xbd5   :  { %v2578_v25 = vadd.f32 %v2567_v36, %v2469_v60  ;;  %6682 = vtanh.f32 %v2579_v15  ;;  %v5511_v60 = vmul.f32 -1.442695, %v2861_v20  ;;  %v5493_v36 = vmul.f32 -1.442695, %v2579_v15 }
 0xbd6   :  { %v6107_v40 = vpop.f32.mrf.mxu1 }
 0xbd7   :  { %v2863_v47 = vadd.f32 %v6107_v40, %v2754_v39  ;;  %6684 = vtanh.f32 %v2578_v25  ;;  %v5490_v39 = vmul.f32 -1.442695, %v2576_v22 }
 0xbd8   :  { %v2851_v34 = vpop.f32.mrf.mxu1 }
 0xbd9   :  { %v2862_v44 = vadd.f32 %v2851_v34, %v2753_v38  ;;  %6686 = vtanh.f32 %v2863_v47  ;;  %v5492_v38 = vmul.f32 -1.442695, %v2578_v25  ;;  %v5513_v40 = vmul.f32 -1.442695, %v2863_v47 }
 0xbda   :  { %v6675_v46 = vpop.eup %6674 }
 0xbdb   :  { %2902 = vrot.lane.b32.xlu1 %v6675_v46, %s7009_s26  ;;  %6688 = vtanh.f32 %v2862_v44  ;;  %v5512_v34 = vmul.f32 -1.442695, %v2862_v44 }
 0xbdc   :  { %v6677_v41 = vpop.eup %6676  ;;  %6690 = vpow2.f32 %v5511_v60 }
 0xbdd   :  { %2900 = vrot.lane.b32.xlu0 %v6677_v41, %s7009_s26  ;;  %6692 = vpow2.f32 %v5510_v30 }
 0xbde   :  { %v6679_v54 = vpop.eup %6678  ;;  %6694 = vpow2.f32 %v5491_v26 }
 0xbdf   :  { %2618 = vrot.lane.b32.xlu1 %v6679_v54, %s7009_s26  ;;  %6696 = vpow2.f32 %v5490_v39 }
 0xbe0   :  { %v6681_v42 = vpop.eup %6680  ;;  %6698 = vpow2.f32 %v5493_v36 }
 0xbe1   :  { %2616 = vrot.lane.b32.xlu0 %v6681_v42, %s7009_s26  ;;  %6700 = vpow2.f32 %v5492_v38 }
 0xbe2   :  { %v6683_v33 = vpop.eup %6682  ;;  %6702 = vpow2.f32 %v5513_v40 }
 0xbe3   :  { %2622 = vrot.lane.b32.xlu1 %v6683_v33, %s7009_s26  ;;  %6704 = vpow2.f32 %v5512_v34 }
 0xbe4   :  { %v6685_v7 = vpop.eup %6684 }
 0xbe5   :  { %2620 = vrot.lane.b32.xlu0 %v6685_v7, %s7009_s26 }
 0xbe6   :  { %v6687_v6 = vpop.eup %6686 }
 0xbe7   :  { %2906 = vrot.lane.b32.xlu1 %v6687_v6, %s7009_s26 }
 0xbe8   :  { %v6689_v27 = vpop.eup %6688 }
 0xbe9   :  { %2904 = vrot.lane.b32.xlu0 %v6689_v27, %s7009_s26  ;;  %v6691_v46 = vpop.eup %6690 }
 0xbea   :  { %v6693_v41 = vpop.eup %6692  ;;  %v2877_v54 = vadd.f32 1.0, %v6691_v46 }
 0xbeb   :  { %v6695_v42 = vpop.eup %6694  ;;  %v2876_v20 = vadd.f32 1.0, %v6693_v41 }
 0xbec   :  { %v6697_v43 = vpop.eup %6696  ;;  %6706 = vrcp.f32 %v2877_v54  ;;  %v2593_v49 = vadd.f32 1.0, %v6695_v42 }
 0xbed   :  { %v6699_v33 = vpop.eup %6698  ;;  %6708 = vrcp.f32 %v2876_v20  ;;  %v2592_v22 = vadd.f32 1.0, %v6697_v43 }
 0xbee   :  { %v6701_v15 = vpop.eup %6700  ;;  %6710 = vrcp.f32 %v2593_v49  ;;  %v2595_v25 = vadd.f32 1.0, %v6699_v33 }
 0xbef   :  { %v6703_v7 = vpop.eup %6702  ;;  %6712 = vrcp.f32 %v2592_v22  ;;  %v2594_v47 = vadd.f32 1.0, %v6701_v15 }
 0xbf0   :  { %v6705_v44 = vpop.eup %6704  ;;  %6714 = vrcp.f32 %v2595_v25  ;;  %v2879_v6 = vadd.f32 1.0, %v6703_v7 }
 0xbf1   :  { %6716 = vrcp.f32 %v2594_v47  ;;  %v2878_v27 = vadd.f32 1.0, %v6705_v44 }
 0xbf2   :  { %6718 = vrcp.f32 %v2879_v6 }
 0xbf3   :  { %6720 = vrcp.f32 %v2878_v27 }
 0xbf9   :  { %v7949_v60 = vpop.eup %6706 }
 0xbfa   :  { %v7952_v39 = vpop.eup %6708 }
 0xbfb   :  { %v7956_v40 = vpop.eup %6710 }
 0xbfc   :  { %v7960_v41 = vpop.eup %6712 }
 0xbfd   :  { %v7964_v20 = vpop.eup %6714 }
 0xbfe   :  { %v7968_v33 = vpop.eup %6716 }
 0xbff   :  { %v7972_v25 = vpop.eup %6718 }
 0xc00   :  { %v7976_v44 = vpop.eup %6720 }
 0xc4d   :  { %v2903_v30 = vpop.permute.xlu1 %2902 }
 0xc4e   :  { %v2913_v26 = vmul.f32 %v7949_v60, %v2903_v30  ;;  %v2893_v30 = vmul.f32 %v7949_v60, %v7811_v29  ;;  %v2608_v29 = vmul.f32 %v7960_v41, %v7826_v58 }
 0xc4f   :  { %v2901_v36 = vpop.permute.xlu0 %2900 }
 0xc50   :  { %2922 = vrot.lane.b32.xlu1 %v2913_v26, %s7009_s26  ;;  %v2912_v38 = vmul.f32 %v7952_v39, %v2901_v36 }
 0xc51   :  { %v2619_v34 = vpop.permute.xlu1 %2618 }
 0xc52   :  { %v2629_v46 = vmul.f32 %v7956_v40, %v2619_v34  ;;  %2920 = vrot.lane.b32.xlu0 %v2912_v38, %s7009_s26  ;;  %v2892_v38 = vmul.f32 %v7952_v39, %v7816_v21 }
 0xc53   :  { %v2617_v54 = vpop.permute.xlu0 %2616 }
 0xc54   :  { %v2628_v42 = vmul.f32 %v7960_v41, %v2617_v54  ;;  %2638 = vrot.lane.b32.xlu1 %v2629_v46, %s7009_s26  ;;  %v2609_v54 = vmul.f32 %v7956_v40, %v7821_v9 }
 0xc55   :  { %v2623_v43 = vpop.permute.xlu1 %2622 }
 0xc56   :  { %v2631_v49 = vmul.f32 %v7964_v20, %v2623_v43  ;;  %2636 = vrot.lane.b32.xlu0 %v2628_v42, %s7009_s26 }
 0xc57   :  { %v2621_v22 = vpop.permute.xlu0 %2620 }
 0xc58   :  { %v2630_v15 = vmul.f32 %v7968_v33, %v2621_v22  ;;  %2642 = vrot.lane.b32.xlu1 %v2631_v49, %s7009_s26  ;;  %v2611_v22 = vmul.f32 %v7964_v20, %v7831_v51 }
 0xc59   :  { %v2907_v7 = vpop.permute.xlu1 %2906 }
 0xc5a   :  { %v2915_v47 = vmul.f32 %v7972_v25, %v2907_v7  ;;  %2640 = vrot.lane.b32.xlu0 %v2630_v15, %s7009_s26  ;;  %v2610_v7 = vmul.f32 %v7968_v33, %v7836_v8 }
 0xc5b   :  { %v2905_v6 = vpop.permute.xlu0 %2904 }
 0xc5c   :  { %v2914_v27 = vmul.f32 %v7976_v44, %v2905_v6  ;;  %2926 = vrot.lane.b32.xlu1 %v2915_v47, %s7009_s26  ;;  %v2895_v6 = vmul.f32 %v7972_v25, %v7841_v31 }
 0xc5e   :  { %2924 = vrot.lane.b32.xlu0 %v2914_v27, %s7009_s26 }
 0xcc2   :  { %v2923_v26 = vpop.permute.xlu1 %2922 }
 0xcc3   :  { %v7983_v36 = vadd.f32 %v2923_v26, %v2893_v30  ;;  %v2894_v30 = vmul.f32 %v7976_v44, %v7846_v32 }
 0xcc4   :  { %v2921_v34 = vpop.permute.xlu0 %2920 }
 0xcc5   :  { %6722 = vtanh.f32 %v7983_v36  ;;  %v7988_v46 = vadd.f32 %v2921_v34, %v2892_v38 }
 0xcc6   :  { %v2639_v42 = vpop.permute.xlu1 %2638 }
 0xcc7   :  { %6724 = vtanh.f32 %v7988_v46  ;;  %v7993_v43 = vadd.f32 %v2639_v42, %v2609_v54 }
 0xcc8   :  { %v2637_v49 = vpop.permute.xlu0 %2636 }
 0xcc9   :  { %6726 = vtanh.f32 %v7993_v43  ;;  %v7998_v21 = vadd.f32 %v2637_v49, %v2608_v29 }
 0xcca   :  { %v2643_v15 = vpop.permute.xlu1 %2642 }
 0xccb   :  { %6728 = vtanh.f32 %v7998_v21  ;;  %v8003_v9 = vadd.f32 %v2643_v15, %v2611_v22 }
 0xccc   :  { %v2641_v47 = vpop.permute.xlu0 %2640 }
 0xccd   :  { %6730 = vtanh.f32 %v8003_v9  ;;  %v8008_v58 = vadd.f32 %v2641_v47, %v2610_v7 }
 0xcce   :  { %v2927_v27 = vpop.permute.xlu1 %2926 }
 0xccf   :  { %6732 = vtanh.f32 %v8008_v58  ;;  %v8013_v51 = vadd.f32 %v2927_v27, %v2895_v6 }
 0xcd0   :  { %v2925_v26 = vpop.permute.xlu0 %2924 }
 0xcd1   :  { %6734 = vtanh.f32 %v8013_v51  ;;  %v8018_v8 = vadd.f32 %v2925_v26, %v2894_v30 }
 0xcd2   :  { %v6723_v38 = vpop.eup %6722 }
 0xcd3   :  { %2946 = vrot.lane.b32.xlu1 %v6723_v38, %s7009_s26  ;;  %6736 = vtanh.f32 %v8018_v8 }
 0xcd4   :  { %v6725_v34 = vpop.eup %6724 }
 0xcd5   :  { %2944 = vrot.lane.b32.xlu0 %v6725_v34, %s7009_s26 }
 0xcd6   :  { %v6727_v31 = vpop.eup %6726 }
 0xcd7   :  { %2662 = vrot.lane.b32.xlu1 %v6727_v31, %s7009_s26 }
 0xcd8   :  { %v6729_v54 = vpop.eup %6728 }
 0xcd9   :  { %2660 = vrot.lane.b32.xlu0 %v6729_v54, %s7009_s26 }
 0xcda   :  { %v6731_v32 = vpop.eup %6730 }
 0xcdb   :  { %2666 = vrot.lane.b32.xlu1 %v6731_v32, %s7009_s26 }
 0xcdc   :  { %v6733_v42 = vpop.eup %6732 }
 0xcdd   :  { %2664 = vrot.lane.b32.xlu0 %v6733_v42, %s7009_s26 }
 0xcde   :  { %v6735_v29 = vpop.eup %6734 }
 0xcdf   :  { %2950 = vrot.lane.b32.xlu1 %v6735_v29, %s7009_s26  ;;  %v8080_v29 = vld [vmem:[#allocation11 + $0x8] sm:$0xff] }
 0xce0   :  { %v6737_v49 = vpop.eup %6736 }
 0xce1   :  { %2948 = vrot.lane.b32.xlu0 %v6737_v49, %s7009_s26 }
 0xd45   :  { %v2947_v22 = vpop.permute.xlu1 %2946 }
 0xd46   :  { %v8030_v15 = vmul.f32 %v7949_v60, %v2947_v22  ;;  %v8083_v22 = vld [vmem:[#allocation9 + $0x18] sm:$0xff] }
 0xd47   :  { %v2945_v7 = vpop.permute.xlu0 %2944 }
 0xd48   :  { %9268 = vst [vmem:[#allocation23_spill] sm:$0xff] %v8030_v15  ;;  %3329 = vrot.lane.b32.xlu1 %v8030_v15, %s7010_s27  ;;  %v8035_v47 = vmul.f32 %v7952_v39, %v2945_v7 }
 0xd49   :  { %v2663_v6 = vpop.permute.xlu1 %2662 }
 0xd4a   :  { %9269 = vst [vmem:[#allocation24_spill] sm:$0xff] %v8035_v47  ;;  %v8038_v27 = vmul.f32 %v7956_v40, %v2663_v6  ;;  %3327 = vrot.lane.b32.xlu0 %v8035_v47, %s7010_s27  ;;  %v8087_v6 = vld [vmem:[#allocation9 + $0x10] sm:$0xff] }
 0xd4b   :  { %v2661_v30 = vpop.permute.xlu0 %2660 }
 0xd4c   :  { %9270 = vst [vmem:[#allocation25_spill] sm:$0xff] %v8038_v27  ;;  %v8043_v26 = vmul.f32 %v7960_v41, %v2661_v30  ;;  %3045 = vrot.lane.b32.xlu1 %v8038_v27, %s7010_s27  ;;  %v8090_v30 = vld [vmem:[#allocation11] sm:$0xff] }
 0xd4d   :  { %v2667_v60 = vpop.permute.xlu1 %2666 }
 0xd4e   :  { %9271 = vst [vmem:[#allocation26_spill] sm:$0xff] %v8043_v26  ;;  %v8048_v38 = vmul.f32 %v7964_v20, %v2667_v60  ;;  %3043 = vrot.lane.b32.xlu0 %v8043_v26, %s7010_s27  ;;  %v8097_v60 = vld [vmem:[#allocation9 + $0x8] sm:$0xff] }
 0xd4f   :  { %v2665_v39 = vpop.permute.xlu0 %2664 }
 0xd50   :  { %9272 = vst [vmem:[#allocation27_spill] sm:$0xff] %v8048_v38  ;;  %v8053_v40 = vmul.f32 %v7968_v33, %v2665_v39  ;;  %3049 = vrot.lane.b32.xlu1 %v8048_v38, %s7010_s27 }
 0xd51   :  { %v2951_v34 = vpop.permute.xlu1 %2950 }
 0xd52   :  { %9273 = vst [vmem:[#allocation28_spill] sm:$0xff] %v8053_v40  ;;  %v8058_v41 = vmul.f32 %v7972_v25, %v2951_v34  ;;  %3047 = vrot.lane.b32.xlu0 %v8053_v40, %s7010_s27  ;;  %v8071_v25 = vld [vmem:[#allocation11 + $0x18] sm:$0xff] }
 0xd53   :  { %v2949_v31 = vpop.permute.xlu0 %2948 }
 0xd54   :  { %9274 = vst [vmem:[#allocation29_spill] sm:$0xff] %v8058_v41  ;;  %v8063_v20 = vmul.f32 %v7976_v44, %v2949_v31  ;;  %3333 = vrot.lane.b32.xlu1 %v8058_v41, %s7010_s27  ;;  %v8074_v44 = vld [vmem:[#allocation11 + $0x10] sm:$0xff]  ;;  %v8103_v31 = vld [vmem:[#allocation9] sm:$0xff] }
 0xd56   :  { %9275 = vst [vmem:[#allocation30_spill] sm:$0xff] %v8063_v20  ;;  %3331 = vrot.lane.b32.xlu0 %v8063_v20, %s7010_s27 }
 0xdba   :  { %v3330_v33 = vpop.permute.xlu1 %3329 }
 0xdbc   :  { %v3328_v54 = vpop.permute.xlu0 %3327 }
 0xdbd   :  { %6130 = vmatprep.mubr.msk.f32.mxu1 %vm100_vm0, %v3328_v54 }
 0xdbe   :  { %v3046_v32 = vpop.permute.xlu1 %3045  ;;  %6131 = vmatmul.mubr.msk.f32.vlgmr.msra.gmra.mxu1 %vm100_vm0, %v3330_v33  ;;  %v5801_v33 = vld [vmem:[%s9207_s1 + $0x20] sm:$0xff]  }
 0xdbf   :  { %6151 = vmatpush3.msra.mxu1 %v8071_v25  ;;  %v5743_v54 = vunpack.c.h.bf16 %v5801_v33 }
 0xdc0   :  { %v3044_v42 = vpop.permute.xlu0 %3043  ;;  %6152 = vmatprep.subr.mxu1 %v8074_v44 }
 0xdc1   :  { %6116 = vmatprep.mubr.msk.f32.mxu0 %vm100_vm0, %v3044_v42  ;;  %6153 = vmatpush3.msra.mxu1 %v8074_v44  ;;  %v5742_v42 = vunpack.c.l.bf16 %v5801_v33  ;;  %v8128_v33 = vld [vmem:[%s9210_s4] ss:$0 sm:$0xff] }
 0xdc2   :  { %6117 = vmatmul.mubr.msk.f32.vlgmr.msra.gmra.mxu0 %vm100_vm0, %v3046_v32  ;;  %6154 = vmatprep.subr.mxu1 %v8080_v29  ;;  %v3050_v49 = vpop.permute.xlu1 %3049  ;;  %v5799_v32 = vld [vmem:[%s9206_s0 + $0x50] sm:$0xff]  }
 0xdc3   :  { %6137 = vmatpush3.msra.mxu0 %v8083_v22  ;;  %6155 = vmatpush3.msra.mxu1 %v8080_v29  ;;  %v5734_v38 = vunpack.c.l.bf16 %v5799_v32 }
 0xdc4   :  { %v3048_v7 = vpop.permute.xlu0 %3047  ;;  %6138 = vmatprep.subr.mxu0 %v8087_v6  ;;  %6156 = vmatprep.subr.mxu1 %v8090_v30 }
 0xdc5   :  { %6119 = vmatprep.mubr.msk.f32.mxu0 %vm100_vm0, %v3048_v7  ;;  %6139 = vmatpush3.msra.mxu0 %v8087_v6 }
 0xdc6   :  { %6120 = vmatmul.mubr.msk.f32.gmra.mxu0 %vm100_vm0, %v3050_v49  ;;  %6157 = vmatpush3.msra.mxu1 %v8090_v30  ;;  %v3334_v34 = vpop.permute.xlu1 %3333  ;;  %v8118_v49 = vld [vmem:[%s9211_s5] ss:$0 sm:$0xff] }
 0xdc7   :  { %6140 = vmatprep.subr.mxu0 %v8097_v60  ;;  %6178 = vmatprep.subr.mxu1 %v8071_v25  ;;  %v3320_v7 = vadd.f32 %v8118_v49, %v5743_v54  ;;  %v3319_v41 = vadd.f32 %v8118_v49, %v5742_v42  ;;  %v5802_v54 = vld [vmem:[%s9207_s1 + $0x28] sm:$0xff]   ;;  %v3035_v42 = vadd.f32 %v8128_v33, %v5734_v38 }
 0xdc8   :  { %v3332_v39 = vpop.permute.xlu0 %3331  ;;  %6141 = vmatpush3.msra.mxu0 %v8097_v60  ;;  %v5747_v4 = vunpack.c.h.bf16 %v5802_v54  ;;  %v5746_v53 = vunpack.c.l.bf16 %v5802_v54 }
 0xdc9   :  { %6133 = vmatprep.mubr.msk.f32.mxu1 %vm100_vm0, %v3332_v39  ;;  %6142 = vmatprep.subr.mxu0 %v8103_v31  ;;  %v5735_v39 = vunpack.c.h.bf16 %v5799_v32 }
 0xdca   :  { %6134 = vmatmul.mubr.msk.f32.gmra.mxu1 %vm100_vm0, %v3334_v34  ;;  %6143 = vmatpush3.msra.mxu0 %v8103_v31  ;;  %v5800_v34 = vld [vmem:[%s9206_s0 + $0x58] sm:$0xff]   ;;  %v3322_v11 = vadd.f32 %v8118_v49, %v5747_v4 }
 0xdcb   :  { %6164 = vmatprep.subr.mxu0 %v8083_v22  ;;  %v3036_v40 = vadd.f32 %v8128_v33, %v5735_v39  ;;  %v5739_v26 = vunpack.c.h.bf16 %v5800_v34  ;;  %v5738_v32 = vunpack.c.l.bf16 %v5800_v34 }
 0xdcd   :  { %v3037_v39 = vadd.f32 %v8128_v33, %v5738_v32 }
 0xe7e   :  { %v6132_v20 = vpop.f32.mrf.mxu1 }
 0xe7f   :  { %v3429_v27 = vadd.f32 %v6132_v20, %v3320_v7  ;;  %v3038_v7 = vadd.f32 %v8128_v33, %v5739_v26 }
 0xe80   :  { %v3409_v15 = vpop.f32.mrf.mxu1 }
 0xe81   :  { %6738 = vtanh.f32 %v3429_v27  ;;  %v3428_v47 = vadd.f32 %v3409_v15, %v3319_v41  ;;  %v3321_v41 = vadd.f32 %v8118_v49, %v5746_v53 }
 0xe82   :  { %v6118_v2 = vpop.f32.mrf.mxu0 }
 0xe83   :  { %v3145_v20 = vadd.f32 %v6118_v2, %v3036_v40  ;;  %6740 = vtanh.f32 %v3428_v47 }
 0xe84   :  { %v3125_v50 = vpop.f32.mrf.mxu0 }
 0xe85   :  { %v3144_v1 = vadd.f32 %v3125_v50, %v3035_v42  ;;  %6742 = vtanh.f32 %v3145_v20 }
 0xe86   :  { %v6121_v28 = vpop.f32.mrf.mxu0 }
 0xe87   :  { %v3147_v24 = vadd.f32 %v6121_v28, %v3038_v7  ;;  %6744 = vtanh.f32 %v3144_v1  ;;  %v5551_v7 = vmul.f32 -1.442695, %v3429_v27 }
 0xe88   :  { %v3135_v15 = vpop.f32.mrf.mxu0 }
 0xe89   :  { %v3146_v38 = vadd.f32 %v3135_v15, %v3037_v39  ;;  %6746 = vtanh.f32 %v3147_v24  ;;  %v5550_v39 = vmul.f32 -1.442695, %v3428_v47  ;;  %v5531_v15 = vmul.f32 -1.442695, %v3145_v20 }
 0xe8a   :  { %v6135_v2 = vpop.f32.mrf.mxu1 }
 0xe8b   :  { %v3431_v26 = vadd.f32 %v6135_v2, %v3322_v11  ;;  %6748 = vtanh.f32 %v3146_v38  ;;  %v5533_v2 = vmul.f32 -1.442695, %v3147_v24 }
 0xe8c   :  { %v3419_v40 = vpop.f32.mrf.mxu1 }
 0xe8d   :  { %v3430_v34 = vadd.f32 %v3419_v40, %v3321_v41  ;;  %6750 = vtanh.f32 %v3431_v26  ;;  %v5530_v41 = vmul.f32 -1.442695, %v3144_v1  ;;  %v5532_v40 = vmul.f32 -1.442695, %v3146_v38 }
 0xe8e   :  { %v6739_v50 = vpop.eup %6738 }
 0xe8f   :  { %3470 = vrot.lane.b32.xlu1 %v6739_v50, %s7009_s26  ;;  %6752 = vtanh.f32 %v3430_v34  ;;  %v5553_v50 = vmul.f32 -1.442695, %v3431_v26 }
 0xe90   :  { %v6741_v54 = vpop.eup %6740  ;;  %6754 = vpow2.f32 %v5551_v7 }
 0xe91   :  { %3468 = vrot.lane.b32.xlu0 %v6741_v54, %s7009_s26  ;;  %6756 = vpow2.f32 %v5550_v39  ;;  %v5552_v54 = vmul.f32 -1.442695, %v3430_v34 }
 0xe92   :  { %v6743_v28 = vpop.eup %6742  ;;  %6758 = vpow2.f32 %v5531_v15 }
 0xe93   :  { %3186 = vrot.lane.b32.xlu1 %v6743_v28, %s7009_s26  ;;  %6760 = vpow2.f32 %v5530_v41 }
 0xe94   :  { %v6745_v4 = vpop.eup %6744  ;;  %6762 = vpow2.f32 %v5533_v2 }
 0xe95   :  { %3184 = vrot.lane.b32.xlu0 %v6745_v4, %s7009_s26  ;;  %6764 = vpow2.f32 %v5532_v40 }
 0xe96   :  { %v6747_v53 = vpop.eup %6746  ;;  %6766 = vpow2.f32 %v5553_v50 }
 0xe97   :  { %3190 = vrot.lane.b32.xlu1 %v6747_v53, %s7009_s26  ;;  %6768 = vpow2.f32 %v5552_v54 }
 0xe98   :  { %v6749_v11 = vpop.eup %6748 }
 0xe99   :  { %3188 = vrot.lane.b32.xlu0 %v6749_v11, %s7009_s26 }
 0xe9a   :  { %v6751_v42 = vpop.eup %6750 }
 0xe9b   :  { %3474 = vrot.lane.b32.xlu1 %v6751_v42, %s7009_s26 }
 0xe9c   :  { %v6753_v32 = vpop.eup %6752 }
 0xe9d   :  { %3472 = vrot.lane.b32.xlu0 %v6753_v32, %s7009_s26  ;;  %v6755_v28 = vpop.eup %6754 }
 0xe9e   :  { %v6757_v4 = vpop.eup %6756  ;;  %v3445_v53 = vadd.f32 1.0, %v6755_v28 }
 0xe9f   :  { %v6759_v11 = vpop.eup %6758  ;;  %v3444_v27 = vadd.f32 1.0, %v6757_v4 }
 0xea0   :  { %v6761_v47 = vpop.eup %6760  ;;  %6770 = vrcp.f32 %v3445_v53  ;;  %v3161_v20 = vadd.f32 1.0, %v6759_v11 }
 0xea1   :  { %v6763_v42 = vpop.eup %6762  ;;  %6772 = vrcp.f32 %v3444_v27  ;;  %v3160_v1 = vadd.f32 1.0, %v6761_v47 }
 0xea2   :  { %v6765_v24 = vpop.eup %6764  ;;  %6774 = vrcp.f32 %v3161_v20  ;;  %v3163_v38 = vadd.f32 1.0, %v6763_v42 }
 0xea3   :  { %v6767_v32 = vpop.eup %6766  ;;  %6776 = vrcp.f32 %v3160_v1  ;;  %v3162_v26 = vadd.f32 1.0, %v6765_v24 }
 0xea4   :  { %v6769_v34 = vpop.eup %6768  ;;  %6778 = vrcp.f32 %v3163_v38  ;;  %v3447_v7 = vadd.f32 1.0, %v6767_v32 }
 0xea5   :  { %6780 = vrcp.f32 %v3162_v26  ;;  %v3446_v39 = vadd.f32 1.0, %v6769_v34 }
 0xea6   :  { %6782 = vrcp.f32 %v3447_v7 }
 0xea7   :  { %6784 = vrcp.f32 %v3446_v39 }
 0xead   :  { %v8147_v15 = vpop.eup %6770 }
 0xeae   :  { %v8150_v40 = vpop.eup %6772 }
 0xeaf   :  { %v8154_v28 = vpop.eup %6774 }
 0xeb0   :  { %v8158_v11 = vpop.eup %6776 }
 0xeb1   :  { %v8162_v20 = vpop.eup %6778 }
 0xeb2   :  { %v8166_v24 = vpop.eup %6780 }
 0xeb3   :  { %v8170_v26 = vpop.eup %6782 }
 0xeb4   :  { %v8174_v39 = vpop.eup %6784 }
 0xf01   :  { %v3471_v41 = vpop.permute.xlu1 %3470 }
 0xf02   :  { %v3481_v2 = vmul.f32 %v8147_v15, %v3471_v41 }
 0xf03   :  { %v3469_v50 = vpop.permute.xlu0 %3468 }
 0xf04   :  { %3490 = vrot.lane.b32.xlu1 %v3481_v2, %s7009_s26  ;;  %v3480_v54 = vmul.f32 %v8150_v40, %v3469_v50  ;;  %v3461_v50 = vmul.f32 %v8147_v15, %v7983_v36  ;;  %v3176_v36 = vmul.f32 %v8158_v11, %v7998_v21 }
 0xf05   :  { %v3187_v4 = vpop.permute.xlu1 %3186 }
 0xf06   :  { %v3197_v53 = vmul.f32 %v8154_v28, %v3187_v4  ;;  %3488 = vrot.lane.b32.xlu0 %v3480_v54, %s7009_s26 }
 0xf07   :  { %v3185_v27 = vpop.permute.xlu0 %3184 }
 0xf08   :  { %v3196_v47 = vmul.f32 %v8158_v11, %v3185_v27  ;;  %3206 = vrot.lane.b32.xlu1 %v3197_v53, %s7009_s26  ;;  %v3460_v53 = vmul.f32 %v8150_v40, %v7988_v46 }
 0xf09   :  { %v3191_v42 = vpop.permute.xlu1 %3190 }
 0xf0a   :  { %v3199_v1 = vmul.f32 %v8162_v20, %v3191_v42  ;;  %3204 = vrot.lane.b32.xlu0 %v3196_v47, %s7009_s26  ;;  %v3177_v42 = vmul.f32 %v8154_v28, %v7993_v43 }
 0xf0b   :  { %v3189_v38 = vpop.permute.xlu0 %3188 }
 0xf0c   :  { %v3198_v32 = vmul.f32 %v8166_v24, %v3189_v38  ;;  %3210 = vrot.lane.b32.xlu1 %v3199_v1, %s7009_s26 }
 0xf0d   :  { %v3475_v34 = vpop.permute.xlu1 %3474 }
 0xf0e   :  { %v3483_v7 = vmul.f32 %v8170_v26, %v3475_v34  ;;  %3208 = vrot.lane.b32.xlu0 %v3198_v32, %s7009_s26  ;;  %v3179_v34 = vmul.f32 %v8162_v20, %v8003_v9 }
 0xf0f   :  { %v3473_v41 = vpop.permute.xlu0 %3472 }
 0xf10   :  { %v3482_v2 = vmul.f32 %v8174_v39, %v3473_v41  ;;  %3494 = vrot.lane.b32.xlu1 %v3483_v7, %s7009_s26  ;;  %v3178_v41 = vmul.f32 %v8166_v24, %v8008_v58 }
 0xf12   :  { %3492 = vrot.lane.b32.xlu0 %v3482_v2, %s7009_s26 }
 0xf76   :  { %v3491_v54 = vpop.permute.xlu1 %3490 }
 0xf77   :  { %v8181_v4 = vadd.f32 %v3491_v54, %v3461_v50  ;;  %v3463_v50 = vmul.f32 %v8170_v26, %v8013_v51 }
 0xf78   :  { %v3489_v27 = vpop.permute.xlu0 %3488 }
 0xf79   :  { %6786 = vtanh.f32 %v8181_v4  ;;  %v8186_v47 = vadd.f32 %v3489_v27, %v3460_v53  ;;  %v3462_v53 = vmul.f32 %v8174_v39, %v8018_v8 }
 0xf7a   :  { %v3207_v1 = vpop.permute.xlu1 %3206 }
 0xf7b   :  { %6788 = vtanh.f32 %v8186_v47  ;;  %v8191_v38 = vadd.f32 %v3207_v1, %v3177_v42 }
 0xf7c   :  { %v3205_v32 = vpop.permute.xlu0 %3204 }
 0xf7d   :  { %6790 = vtanh.f32 %v8191_v38  ;;  %v8196_v46 = vadd.f32 %v3205_v32, %v3176_v36 }
 0xf7e   :  { %v3211_v7 = vpop.permute.xlu1 %3210 }
 0xf7f   :  { %6792 = vtanh.f32 %v8196_v46  ;;  %v8201_v43 = vadd.f32 %v3211_v7, %v3179_v34 }
 0xf80   :  { %v3209_v2 = vpop.permute.xlu0 %3208 }
 0xf81   :  { %6794 = vtanh.f32 %v8201_v43  ;;  %v8206_v21 = vadd.f32 %v3209_v2, %v3178_v41 }
 0xf82   :  { %v3495_v54 = vpop.permute.xlu1 %3494 }
 0xf83   :  { %6796 = vtanh.f32 %v8206_v21  ;;  %v8211_v9 = vadd.f32 %v3495_v54, %v3463_v50 }
 0xf84   :  { %v3493_v27 = vpop.permute.xlu0 %3492 }
 0xf85   :  { %6798 = vtanh.f32 %v8211_v9  ;;  %v8216_v58 = vadd.f32 %v3493_v27, %v3462_v53 }
 0xf86   :  { %v6787_v42 = vpop.eup %6786 }
 0xf87   :  { %3514 = vrot.lane.b32.xlu1 %v6787_v42, %s7009_s26  ;;  %6800 = vtanh.f32 %v8216_v58 }
 0xf88   :  { %v6789_v1 = vpop.eup %6788 }
 0xf89   :  { %3512 = vrot.lane.b32.xlu0 %v6789_v1, %s7009_s26 }
 0xf8a   :  { %v6791_v51 = vpop.eup %6790 }
 0xf8b   :  { %3230 = vrot.lane.b32.xlu1 %v6791_v51, %s7009_s26 }
 0xf8c   :  { %v6793_v36 = vpop.eup %6792 }
 0xf8d   :  { %3228 = vrot.lane.b32.xlu0 %v6793_v36, %s7009_s26 }
 0xf8e   :  { %v6795_v8 = vpop.eup %6794 }
 0xf8f   :  { %3234 = vrot.lane.b32.xlu1 %v6795_v8, %s7009_s26 }
 0xf90   :  { %v6797_v32 = vpop.eup %6796 }
 0xf91   :  { %3232 = vrot.lane.b32.xlu0 %v6797_v32, %s7009_s26 }
 0xf92   :  { %v6799_v34 = vpop.eup %6798 }
 0xf93   :  { %3518 = vrot.lane.b32.xlu1 %v6799_v34, %s7009_s26 }
 0xf94   :  { %v6801_v7 = vpop.eup %6800 }
 0xf95   :  { %3516 = vrot.lane.b32.xlu0 %v6801_v7, %s7009_s26 }
 0xff9   :  { %v3515_v41 = vpop.permute.xlu1 %3514 }
 0xffa   :  { %v8228_v2 = vmul.f32 %v8147_v15, %v3515_v41 }
 0xffb   :  { %v3513_v50 = vpop.permute.xlu0 %3512 }
 0xffc   :  { %9276 = vst [vmem:[#allocation31_spill] sm:$0xff] %v8228_v2  ;;  %3897 = vrot.lane.b32.xlu1 %v8228_v2, %s7010_s27  ;;  %v8233_v54 = vmul.f32 %v8150_v40, %v3513_v50  ;;  %v5804_v50 = vld [vmem:[%s9206_s0 + $0x68] sm:$0xff]  }
 0xffd   :  { %v3231_v53 = vpop.permute.xlu1 %3230 }
 0xffe   :  { %9277 = vst [vmem:[#allocation32_spill] sm:$0xff] %v8233_v54  ;;  %v8236_v27 = vmul.f32 %v8154_v28, %v3231_v53  ;;  %3895 = vrot.lane.b32.xlu0 %v8233_v54, %s7010_s27 }
 0xfff   :  { %v3229_v42 = vpop.permute.xlu0 %3228 }
0x1000   :  { %9278 = vst [vmem:[#allocation33_spill] sm:$0xff] %v8236_v27  ;;  %v8241_v1 = vmul.f32 %v8158_v11, %v3229_v42  ;;  %3613 = vrot.lane.b32.xlu1 %v8236_v27, %s7010_s27 }
0x1001   :  { %v3235_v15 = vpop.permute.xlu1 %3234 }
0x1002   :  { %9279 = vst [vmem:[#allocation34_spill] sm:$0xff] %v8241_v1  ;;  %v8246_v51 = vmul.f32 %v8162_v20, %v3235_v15  ;;  %3611 = vrot.lane.b32.xlu0 %v8241_v1, %s7010_s27 }
0x1003   :  { %v3233_v40 = vpop.permute.xlu0 %3232 }
0x1004   :  { %9280 = vst [vmem:[#allocation35_spill] sm:$0xff] %v8246_v51  ;;  %v8251_v28 = vmul.f32 %v8166_v24, %v3233_v40  ;;  %3617 = vrot.lane.b32.xlu1 %v8246_v51, %s7010_s27 }
0x1005   :  { %v3519_v36 = vpop.permute.xlu1 %3518 }
0x1006   :  { %9281 = vst [vmem:[#allocation36_spill] sm:$0xff] %v8251_v28  ;;  %v8256_v11 = vmul.f32 %v8170_v26, %v3519_v36  ;;  %3615 = vrot.lane.b32.xlu0 %v8251_v28, %s7010_s27  ;;  %v5755_v36 = vunpack.c.h.bf16 %v5804_v50  ;;  %v6959_v28 = vld [vmem:[%s9210_s4] ss:$0 sm:$0xff] }
0x1007   :  { %v3517_v8 = vpop.permute.xlu0 %3516 }
0x1008   :  { %9282 = vst [vmem:[#allocation37_spill] sm:$0xff] %v8256_v11  ;;  %v8261_v20 = vmul.f32 %v8174_v39, %v3517_v8  ;;  %3901 = vrot.lane.b32.xlu1 %v8256_v11, %s7010_s27 }
0x100a   :  { %9283 = vst [vmem:[#allocation38_spill] sm:$0xff] %v8261_v20  ;;  %3899 = vrot.lane.b32.xlu0 %v8261_v20, %s7010_s27 }
0x106e   :  { %v3898_v24 = vpop.permute.xlu1 %3897 }
0x1070   :  { %v3896_v32 = vpop.permute.xlu0 %3895 }
0x1071   :  { %6158 = vmatprep.mubr.msk.f32.mxu1 %vm100_vm0, %v3896_v32 }
0x1072   :  { %v3614_v34 = vpop.permute.xlu1 %3613  ;;  %6159 = vmatmul.mubr.msk.f32.vlgmr.msra.gmra.mxu1 %vm100_vm0, %v3898_v24  ;;  %v5806_v24 = vld [vmem:[%s9207_s1 + $0x18] sm:$0xff]  }
0x1073   :  { %6179 = vmatpush3.msra.mxu1 %v8071_v25 }
0x1074   :  { %v3612_v26 = vpop.permute.xlu0 %3611  ;;  %6180 = vmatprep.subr.mxu1 %v8074_v44 }
0x1075   :  { %6144 = vmatprep.mubr.msk.f32.mxu0 %vm100_vm0, %v3612_v26  ;;  %6181 = vmatpush3.msra.mxu1 %v8074_v44  ;;  %v5754_v26 = vunpack.c.l.bf16 %v5804_v50 }
0x1076   :  { %6145 = vmatmul.mubr.msk.f32.vlgmr.msra.gmra.mxu0 %vm100_vm0, %v3614_v34  ;;  %6182 = vmatprep.subr.mxu1 %v8080_v29  ;;  %v3618_v39 = vpop.permute.xlu1 %3617 }
0x1077   :  { %6165 = vmatpush3.msra.mxu0 %v8083_v22  ;;  %6183 = vmatpush3.msra.mxu1 %v8080_v29  ;;  %v5805_v29 = vld [vmem:[%s9207_s1 + $0x10] sm:$0xff]  }
0x1078   :  { %v3616_v7 = vpop.permute.xlu0 %3615  ;;  %6166 = vmatprep.subr.mxu0 %v8087_v6  ;;  %6184 = vmatprep.subr.mxu1 %v8090_v30  ;;  %v5759_v22 = vunpack.c.h.bf16 %v5805_v29 }
0x1079   :  { %6147 = vmatprep.mubr.msk.f32.mxu0 %vm100_vm0, %v3616_v7  ;;  %6167 = vmatpush3.msra.mxu0 %v8087_v6  ;;  %v5803_v6 = vld [vmem:[%s9206_s0 + $0x60] sm:$0xff]  }
0x107a   :  { %6148 = vmatmul.mubr.msk.f32.gmra.mxu0 %vm100_vm0, %v3618_v39  ;;  %6185 = vmatpush3.msra.mxu1 %v8090_v30  ;;  %v3902_v44 = vpop.permute.xlu1 %3901  ;;  %v5758_v30 = vunpack.c.l.bf16 %v5805_v29  ;;  %v5751_v41 = vunpack.c.h.bf16 %v5803_v6 }
0x107b   :  { %6168 = vmatprep.subr.mxu0 %v8097_v60 }
0x107c   :  { %v3900_v25 = vpop.permute.xlu0 %3899  ;;  %6169 = vmatpush3.msra.mxu0 %v8097_v60  ;;  %v3888_v60 = vadd.f32 %v8118_v49, %v5759_v22  ;;  %v3887_v53 = vadd.f32 %v8118_v49, %v5758_v30  ;;  %v3604_v40 = vadd.f32 %v8128_v33, %v5751_v41  ;;  %v5762_v30 = vunpack.c.l.bf16 %v5806_v24 }
0x107d   :  { %6161 = vmatprep.mubr.msk.f32.mxu1 %vm100_vm0, %v3900_v25  ;;  %6170 = vmatprep.subr.mxu0 %v8103_v31  ;;  %v3606_v25 = vadd.f32 %v8128_v33, %v5755_v36 }
0x107e   :  { %6162 = vmatmul.mubr.msk.f32.gmra.mxu1 %vm100_vm0, %v3902_v44  ;;  %6171 = vmatpush3.msra.mxu0 %v8103_v31  ;;  %v5750_v31 = vunpack.c.l.bf16 %v5803_v6  ;;  %v5763_v44 = vunpack.c.h.bf16 %v5806_v24  ;;  %v3605_v6 = vadd.f32 %v8128_v33, %v5754_v26  ;;  %v3889_v50 = vadd.f32 %v8118_v49, %v5762_v30 }
0x1080   :  { %v3603_v34 = vadd.f32 %v8128_v33, %v5750_v31 }
0x1132   :  { %v6160_v42 = vpop.f32.mrf.mxu1 }
0x1133   :  { %v3997_v15 = vadd.f32 %v6160_v42, %v3888_v60  ;;  %v3890_v42 = vadd.f32 %v8118_v49, %v5763_v44 }
0x1134   :  { %v3977_v8 = vpop.f32.mrf.mxu1 }
0x1135   :  { %6802 = vtanh.f32 %v3997_v15  ;;  %v3996_v32 = vadd.f32 %v3977_v8, %v3887_v53 }
0x1136   :  { %v6146_v39 = vpop.f32.mrf.mxu0 }
0x1137   :  { %v3713_v7 = vadd.f32 %v6146_v39, %v3604_v40  ;;  %6804 = vtanh.f32 %v3996_v32  ;;  %v5590_v30 = vmul.f32 -1.442695, %v3996_v32 }
0x1138   :  { %v3693_v29 = vpop.f32.mrf.mxu0 }
0x1139   :  { %v3712_v22 = vadd.f32 %v3693_v29, %v3603_v34  ;;  %6806 = vtanh.f32 %v3713_v7 }
0x113a   :  { %v6149_v60 = vpop.f32.mrf.mxu0 }
0x113b   :  { %v3715_v41 = vadd.f32 %v6149_v60, %v3606_v25  ;;  %6808 = vtanh.f32 %v3712_v22  ;;  %v5571_v60 = vmul.f32 -1.442695, %v3713_v7 }
0x113c   :  { %v3703_v53 = vpop.f32.mrf.mxu0 }
0x113d   :  { %v3714_v31 = vadd.f32 %v3703_v53, %v3605_v6  ;;  %6810 = vtanh.f32 %v3715_v41  ;;  %v5591_v6 = vmul.f32 -1.442695, %v3997_v15  ;;  %v5573_v53 = vmul.f32 -1.442695, %v3715_v41 }
0x113e   :  { %v6163_v40 = vpop.f32.mrf.mxu1 }
0x113f   :  { %v3999_v36 = vadd.f32 %v6163_v40, %v3890_v42  ;;  %6812 = vtanh.f32 %v3714_v31  ;;  %v5570_v42 = vmul.f32 -1.442695, %v3712_v22 }
0x1140   :  { %v3987_v8 = vpop.f32.mrf.mxu1 }
0x1141   :  { %v3998_v39 = vadd.f32 %v3987_v8, %v3889_v50  ;;  %6814 = vtanh.f32 %v3999_v36  ;;  %v5572_v50 = vmul.f32 -1.442695, %v3714_v31  ;;  %v5593_v40 = vmul.f32 -1.442695, %v3999_v36 }
0x1142   :  { %v6803_v34 = vpop.eup %6802 }
0x1143   :  { %4038 = vrot.lane.b32.xlu1 %v6803_v34, %s7009_s26  ;;  %6816 = vtanh.f32 %v3998_v39  ;;  %v5592_v8 = vmul.f32 -1.442695, %v3998_v39 }
0x1144   :  { %v6805_v33 = vpop.eup %6804  ;;  %6818 = vpow2.f32 %v5591_v6 }
0x1145   :  { %4036 = vrot.lane.b32.xlu0 %v6805_v33, %s7009_s26  ;;  %6820 = vpow2.f32 %v5590_v30 }
0x1146   :  { %v6807_v24 = vpop.eup %6806  ;;  %6822 = vpow2.f32 %v5571_v60 }
0x1147   :  { %3754 = vrot.lane.b32.xlu1 %v6807_v24, %s7009_s26  ;;  %6824 = vpow2.f32 %v5570_v42 }
0x1148   :  { %v6809_v26 = vpop.eup %6808  ;;  %6826 = vpow2.f32 %v5573_v53 }
0x1149   :  { %3752 = vrot.lane.b32.xlu0 %v6809_v26, %s7009_s26  ;;  %6828 = vpow2.f32 %v5572_v50 }
0x114a   :  { %v6811_v49 = vpop.eup %6810  ;;  %6830 = vpow2.f32 %v5593_v40 }
0x114b   :  { %3758 = vrot.lane.b32.xlu1 %v6811_v49, %s7009_s26  ;;  %6832 = vpow2.f32 %v5592_v8 }
0x114c   :  { %v6813_v25 = vpop.eup %6812 }
0x114d   :  { %3756 = vrot.lane.b32.xlu0 %v6813_v25, %s7009_s26 }
0x114e   :  { %v6815_v44 = vpop.eup %6814 }
0x114f   :  { %4042 = vrot.lane.b32.xlu1 %v6815_v44, %s7009_s26 }
0x1150   :  { %v6817_v29 = vpop.eup %6816 }
0x1151   :  { %4040 = vrot.lane.b32.xlu0 %v6817_v29, %s7009_s26  ;;  %v6819_v34 = vpop.eup %6818 }
0x1152   :  { %v6821_v33 = vpop.eup %6820  ;;  %v4013_v24 = vadd.f32 1.0, %v6819_v34 }
0x1153   :  { %v6823_v26 = vpop.eup %6822  ;;  %v4012_v15 = vadd.f32 1.0, %v6821_v33 }
0x1154   :  { %v6825_v32 = vpop.eup %6824  ;;  %6834 = vrcp.f32 %v4013_v24  ;;  %v3729_v7 = vadd.f32 1.0, %v6823_v26 }
0x1155   :  { %v6827_v49 = vpop.eup %6826  ;;  %6836 = vrcp.f32 %v4012_v15  ;;  %v3728_v22 = vadd.f32 1.0, %v6825_v32 }
0x1156   :  { %v6829_v41 = vpop.eup %6828  ;;  %6838 = vrcp.f32 %v3729_v7  ;;  %v3731_v31 = vadd.f32 1.0, %v6827_v49 }
0x1157   :  { %v6831_v25 = vpop.eup %6830  ;;  %6840 = vrcp.f32 %v3728_v22  ;;  %v3730_v36 = vadd.f32 1.0, %v6829_v41 }
0x1158   :  { %v6833_v39 = vpop.eup %6832  ;;  %6842 = vrcp.f32 %v3731_v31  ;;  %v4015_v44 = vadd.f32 1.0, %v6831_v25 }
0x1159   :  { %6844 = vrcp.f32 %v3730_v36  ;;  %v4014_v29 = vadd.f32 1.0, %v6833_v39 }
0x115a   :  { %6846 = vrcp.f32 %v4015_v44 }
0x115b   :  { %6848 = vrcp.f32 %v4014_v29 }
0x1161   :  { %v8317_v6 = vpop.eup %6834 }
0x1162   :  { %v8320_v42 = vpop.eup %6836 }
0x1163   :  { %v8324_v40 = vpop.eup %6838 }
0x1164   :  { %v8328_v33 = vpop.eup %6840 }
0x1165   :  { %v8332_v15 = vpop.eup %6842 }
0x1166   :  { %v8336_v49 = vpop.eup %6844 }
0x1167   :  { %v8340_v31 = vpop.eup %6846 }
0x1168   :  { %v8344_v39 = vpop.eup %6848 }
0x11b5   :  { %v4039_v30 = vpop.permute.xlu1 %4038 }
0x11b6   :  { %v4049_v60 = vmul.f32 %v8317_v6, %v4039_v30  ;;  %v4029_v30 = vmul.f32 %v8317_v6, %v8181_v4  ;;  %v3744_v4 = vmul.f32 %v8328_v33, %v8196_v46 }
0x11b7   :  { %v4037_v53 = vpop.permute.xlu0 %4036 }
0x11b8   :  { %4058 = vrot.lane.b32.xlu1 %v4049_v60, %s7009_s26  ;;  %v4048_v50 = vmul.f32 %v8320_v42, %v4037_v53 }
0x11b9   :  { %v3755_v8 = vpop.permute.xlu1 %3754 }
0x11ba   :  { %v3765_v34 = vmul.f32 %v8324_v40, %v3755_v8  ;;  %4056 = vrot.lane.b32.xlu0 %v4048_v50, %s7009_s26  ;;  %v4028_v50 = vmul.f32 %v8320_v42, %v8186_v47 }
0x11bb   :  { %v3753_v24 = vpop.permute.xlu0 %3752 }
0x11bc   :  { %v3764_v26 = vmul.f32 %v8328_v33, %v3753_v24  ;;  %3774 = vrot.lane.b32.xlu1 %v3765_v34, %s7009_s26  ;;  %v3745_v24 = vmul.f32 %v8324_v40, %v8191_v38 }
0x11bd   :  { %v3759_v32 = vpop.permute.xlu1 %3758 }
0x11be   :  { %v3767_v7 = vmul.f32 %v8332_v15, %v3759_v32  ;;  %3772 = vrot.lane.b32.xlu0 %v3764_v26, %s7009_s26 }
0x11bf   :  { %v3757_v22 = vpop.permute.xlu0 %3756 }
0x11c0   :  { %v3766_v41 = vmul.f32 %v8336_v49, %v3757_v22  ;;  %3778 = vrot.lane.b32.xlu1 %v3767_v7, %s7009_s26  ;;  %v3747_v22 = vmul.f32 %v8332_v15, %v8201_v43 }
0x11c1   :  { %v4043_v25 = vpop.permute.xlu1 %4042 }
0x11c2   :  { %v4051_v36 = vmul.f32 %v8340_v31, %v4043_v25  ;;  %3776 = vrot.lane.b32.xlu0 %v3766_v41, %s7009_s26  ;;  %v3746_v25 = vmul.f32 %v8336_v49, %v8206_v21 }
0x11c3   :  { %v4041_v44 = vpop.permute.xlu0 %4040 }
0x11c4   :  { %v4050_v29 = vmul.f32 %v8344_v39, %v4041_v44  ;;  %4062 = vrot.lane.b32.xlu1 %v4051_v36, %s7009_s26  ;;  %v4031_v44 = vmul.f32 %v8340_v31, %v8211_v9 }
0x11c6   :  { %4060 = vrot.lane.b32.xlu0 %v4050_v29, %s7009_s26 }
0x122a   :  { %v4059_v60 = vpop.permute.xlu1 %4058 }
0x122b   :  { %v8351_v53 = vadd.f32 %v4059_v60, %v4029_v30  ;;  %v4030_v30 = vmul.f32 %v8344_v39, %v8216_v58 }
0x122c   :  { %v4057_v8 = vpop.permute.xlu0 %4056 }
0x122d   :  { %6850 = vtanh.f32 %v8351_v53  ;;  %v8356_v34 = vadd.f32 %v4057_v8, %v4028_v50 }
0x122e   :  { %v3775_v26 = vpop.permute.xlu1 %3774 }
0x122f   :  { %9284 = vst [vmem:[#allocation39_spill] sm:$0xff] %v8356_v34  ;;  %6852 = vtanh.f32 %v8356_v34  ;;  %v8361_v32 = vadd.f32 %v3775_v26, %v3745_v24  ;;  %v7011_v24 = vmov 0  }
0x1230   :  { %v3773_v7 = vpop.permute.xlu0 %3772  ;;  %6262 = vset.pattern.permute.xlu0 %v7011_v24  ;;  %6256 = vset.pattern.permute.xlu1 %v7011_v24  ;;  %v8440_v24 = vld [vmem:[%s9212_s6 + $0x18] sm:$0xff] }
0x1231   :  { %9285 = vst [vmem:[#allocation40_spill] sm:$0xff] %v8361_v32  ;;  %6854 = vtanh.f32 %v8361_v32  ;;  %v8366_v47 = vadd.f32 %v3773_v7, %v3744_v4  ;;  %vm5357_vm6 = vcmp.gt.s32.totalorder %v8440_v24, 7  ;;  %vm5336_vm8 = vcmp.gt.s32.totalorder %v8440_v24, 0 }
0x1232   :  { %v3779_v41 = vpop.permute.xlu1 %3778  ;;  %vm5377_vm14 = vcmp.gt.s32.totalorder %v8440_v24, 1 }
0x1233   :  { %9286 = vst [vmem:[#allocation41_spill] sm:$0xff] %v8366_v47  ;;  %6856 = vtanh.f32 %v8366_v47  ;;  %v8371_v38 = vadd.f32 %v3779_v41, %v3747_v22 }
0x1234   :  { %v3777_v36 = vpop.permute.xlu0 %3776 }
0x1235   :  { %9287 = vst [vmem:[#allocation42_spill] sm:$0xff] %v8371_v38  ;;  %6858 = vtanh.f32 %v8371_v38  ;;  %v8376_v46 = vadd.f32 %v3777_v36, %v3746_v25 }
0x1236   :  { %v4063_v29 = vpop.permute.xlu1 %4062 }
0x1237   :  { %9288 = vst [vmem:[#allocation43_spill] sm:$0xff] %v8376_v46  ;;  %6860 = vtanh.f32 %v8376_v46  ;;  %v8381_v43 = vadd.f32 %v4063_v29, %v4031_v44 }
0x1238   :  { %v4061_v60 = vpop.permute.xlu0 %4060 }
0x1239   :  { %9289 = vst [vmem:[#allocation44_spill] sm:$0xff] %v8381_v43  ;;  %6862 = vtanh.f32 %v8381_v43  ;;  %v8386_v21 = vadd.f32 %v4061_v60, %v4030_v30 }
0x123a   :  { %v6851_v50 = vpop.eup %6850 }
0x123b   :  { %9290 = vst [vmem:[#allocation45_spill] sm:$0xff] %v8386_v21  ;;  %4082 = vrot.lane.b32.xlu1 %v6851_v50, %s7009_s26  ;;  %6864 = vtanh.f32 %v8386_v21  ;;  %v8418_v50 = vld [vmem:[%s9212_s6 + $0x8] sm:$0xff] }
0x123c   :  { %v6853_v8 = vpop.eup %6852  ;;  %vm5355_vm2 = vcmp.gt.s32.totalorder %v8418_v50, 7  ;;  %vm5334_vm4 = vcmp.gt.s32.totalorder %v8418_v50, 0  ;;  %vm5395_vm10 = vcmp.gt.s32.totalorder %v8418_v50, 6  ;;  %vm5375_vm12 = vcmp.gt.s32.totalorder %v8418_v50, 1 }
0x123d   :  { %4080 = vrot.lane.b32.xlu0 %v6853_v8, %s7009_s26 }
0x123e   :  { %v6855_v9 = vpop.eup %6854 }
0x123f   :  { %3798 = vrot.lane.b32.xlu1 %v6855_v9, %s7009_s26 }
0x1240   :  { %v6857_v26 = vpop.eup %6856 }
0x1241   :  { %3796 = vrot.lane.b32.xlu0 %v6857_v26, %s7009_s26 }
0x1242   :  { %v6859_v58 = vpop.eup %6858 }
0x1243   :  { %3802 = vrot.lane.b32.xlu1 %v6859_v58, %s7009_s26  ;;  %v9297_v58 = vmov 0.0  }
0x1244   :  { %v6861_v4 = vpop.eup %6860 }
0x1245   :  { %3800 = vrot.lane.b32.xlu0 %v6861_v4, %s7009_s26 }
0x1246   :  { %v6863_v7 = vpop.eup %6862 }
0x1247   :  { %4086 = vrot.lane.b32.xlu1 %v6863_v7, %s7009_s26  ;;  %v5359_v7 = vsel %vm5355_vm2, 1.0, %v9297_v58 }
0x1248   :  { %v6865_v22 = vpop.eup %6864 }
0x1249   :  { %4084 = vrot.lane.b32.xlu0 %v6865_v22, %s7009_s26 }
0x12ad   :  { %v4083_v41 = vpop.permute.xlu1 %4082 }
0x12ae   :  { %v8398_v25 = vmul.f32 %v8317_v6, %v4083_v41  ;;  %v8413_v6 = vld [vmem:[%s9212_s6] sm:$0xff] }
0x12af   :  { %v4081_v36 = vpop.permute.xlu0 %4080  ;;  %vm5354_vm1 = vcmp.gt.s32.totalorder %v8413_v6, 7  ;;  %vm5333_vm3 = vcmp.gt.s32.totalorder %v8413_v6, 0  ;;  %vm5394_vm9 = vcmp.gt.s32.totalorder %v8413_v6, 6  ;;  %vm5374_vm11 = vcmp.gt.s32.totalorder %v8413_v6, 1 }
0x12b0   :  { %9291 = vst [vmem:[#allocation46_spill] sm:$0xff] %v8398_v25  ;;  %4463 = vrot.lane.b32.xlu1 %v8398_v25, %s7010_s27  ;;  %v8403_v44 = vmul.f32 %v8320_v42, %v4081_v36  ;;  %v5358_v4 = vsel %vm5354_vm1, 1.0, %v9297_v58  ;;  %v5337_v41 = vsel %vm5333_vm3, 1.0, %v9297_v58  ;;  %v5338_v36 = vsel %vm5334_vm4, 1.0, %v9297_v58 }
0x12b1   :  { %v3799_v29 = vpop.permute.xlu1 %3798  ;;  %vm5397_vm1 = vcmp.gt.s32.totalorder %v8440_v24, 6  ;;  %vm5434_vm2 = vcmp.gt.s32.totalorder %v8413_v6, 5  ;;  %vm5435_vm3 = vcmp.gt.s32.totalorder %v8418_v50, 5  ;;  %vm5414_vm4 = vcmp.gt.s32.totalorder %v8413_v6, 2 }
0x12b2   :  { %9292 = vst [vmem:[#allocation47_spill] sm:$0xff] %v8403_v44  ;;  %v8406_v30 = vmul.f32 %v8324_v40, %v3799_v29  ;;  %4461 = vrot.lane.b32.xlu0 %v8403_v44, %s7010_s27 }
0x12b3   :  { %v3797_v60 = vpop.permute.xlu0 %3796 }
0x12b4   :  { %9293 = vst [vmem:[#allocation48_spill] sm:$0xff] %v8406_v30  ;;  %v8421_v42 = vmul.f32 %v8328_v33, %v3797_v60  ;;  %4181 = vrot.lane.b32.xlu1 %v8406_v30, %s7010_s27  ;;  %v8435_v33 = vld [vmem:[%s9212_s6 + $0x10] sm:$0xff]  ;;  %v5418_v30 = vsel %vm5414_vm4, 1.0, %v9297_v58 }
0x12b5   :  { %v3803_v40 = vpop.permute.xlu1 %3802  ;;  %vm5356_vm5 = vcmp.gt.s32.totalorder %v8435_v33, 7  ;;  %vm5335_vm7 = vcmp.gt.s32.totalorder %v8435_v33, 0  ;;  %vm5376_vm13 = vcmp.gt.s32.totalorder %v8435_v33, 1  ;;  %vm5396_vm15 = vcmp.gt.s32.totalorder %v8435_v33, 6 }
0x12b6   :  { %9294 = vst [vmem:[#allocation49_spill] sm:$0xff] %v8421_v42  ;;  %v8426_v8 = vmul.f32 %v8332_v15, %v3803_v40  ;;  %4179 = vrot.lane.b32.xlu0 %v8421_v42, %s7010_s27  ;;  %v5360_v60 = vsel %vm5356_vm5, 1.0, %v9297_v58  ;;  %v5361_v40 = vsel %vm5357_vm6, 1.0, %v9297_v58  ;;  %vm5415_vm5 = vcmp.gt.s32.totalorder %v8418_v50, 2 }
0x12b7   :  { %v3801_v9 = vpop.permute.xlu0 %3800  ;;  %vm5416_vm6 = vcmp.gt.s32.totalorder %v8435_v33, 2 }
0x12b8   :  { %9295 = vst [vmem:[#allocation50_spill] sm:$0xff] %v8426_v8  ;;  %v8443_v15 = vmul.f32 %v8336_v49, %v3801_v9  ;;  %4185 = vrot.lane.b32.xlu1 %v8426_v8, %s7010_s27  ;;  %v8473_v9 = vpack.i.bf16 %v5338_v36, %v5337_v41  ;;  %v5378_v36 = vsel %vm5374_vm11, 1.0, %v9297_v58  ;;  %v5400_v8 = vsel %vm5396_vm15, 1.0, %v9297_v58 }
0x12b9   :  { %v4087_v26 = vpop.permute.xlu1 %4086  ;;  %vm5475_vm11 = vcmp.gt.s32.totalorder %v8418_v50, 4  ;;  %vm5457_vm15 = vcmp.gt.s32.totalorder %v8440_v24, 3 }
0x12ba   :  { %9296 = vst [vmem:[#allocation51_spill] sm:$0xff] %v8443_v15  ;;  %v8452_v22 = vmul.f32 %v8340_v31, %v4087_v26  ;;  %4183 = vrot.lane.b32.xlu0 %v8443_v15, %s7010_s27  ;;  %v8465_v31 = vpack.i.bf16 %v5359_v7, %v5358_v4  ;;  %v5340_v26 = vsel %vm5336_vm8, 1.0, %v9297_v58  ;;  %v8480_v4 = vpack.i.bf16 %v5361_v40, %v5360_v60 }
0x12bb   :  { %v4085_v49 = vpop.permute.xlu0 %4084  ;;  %v5398_v7 = vsel %vm5394_vm9, 1.0, %v9297_v58  ;;  %v5379_v60 = vsel %vm5375_vm12, 1.0, %v9297_v58  ;;  %vm5436_vm8 = vcmp.gt.s32.totalorder %v8435_v33, 5  ;;  %vm5437_vm9 = vcmp.gt.s32.totalorder %v8440_v24, 5 }
0x12bc   :  { %9298 = vst [vmem:[#allocation52_spill] sm:$0xff] %v8452_v22  ;;  %v8461_v29 = vmul.f32 %v8344_v39, %v4085_v49  ;;  %4467 = vrot.lane.b32.xlu1 %v8452_v22, %s7010_s27  ;;  %v5339_v39 = vsel %vm5335_vm7, 1.0, %v9297_v58  ;;  %v5399_v49 = vsel %vm5395_vm10, 1.0, %v9297_v58  ;;  %v5380_v22 = vsel %vm5376_vm13, 1.0, %v9297_v58 }
0x12bd   :  { %v8487_v41 = vpack.i.bf16 %v5340_v26, %v5339_v39  ;;  %v8494_v40 = vpack.i.bf16 %v5399_v49, %v5398_v7  ;;  %v5381_v39 = vsel %vm5377_vm14, 1.0, %v9297_v58  ;;  %v8501_v26 = vpack.i.bf16 %v5379_v60, %v5378_v36 }
0x12be   :  { %9299 = vst [vmem:[#allocation53_spill] sm:$0xff] %v8461_v29  ;;  %4465 = vrot.lane.b32.xlu0 %v8461_v29, %s7010_s27  ;;  %v5401_v7 = vsel %vm5397_vm1, 1.0, %v9297_v58  ;;  %v8508_v49 = vpack.i.bf16 %v5381_v39, %v5380_v22  ;;  %v5438_v29 = vsel %vm5434_vm2, 1.0, %v9297_v58  ;;  %v5439_v36 = vsel %vm5435_vm3, 1.0, %v9297_v58 }
0x12bf   :  { %v8515_v60 = vpack.i.bf16 %v5401_v7, %v5400_v8  ;;  %vm5417_vm7 = vcmp.gt.s32.totalorder %v8440_v24, 2  ;;  %v5419_v22 = vsel %vm5415_vm5, 1.0, %v9297_v58  ;;  %v8522_v39 = vpack.i.bf16 %v5439_v36, %v5438_v29 }
0x12c0   :  { %6258 = vperm.xlu1 %6256, %v8465_v31   ;;  %v5420_v15 = vsel %vm5416_vm6, 1.0, %v9297_v58  ;;  %v5421_v8 = vsel %vm5417_vm7, 1.0, %v9297_v58  ;;  %v8529_v7 = vpack.i.bf16 %v5419_v22, %v5418_v30  ;;  %vm5474_vm10 = vcmp.gt.s32.totalorder %v8413_v6, 4 }
0x12c1   :  { %v5440_v25 = vsel %vm5436_vm8, 1.0, %v9297_v58  ;;  %v5441_v29 = vsel %vm5437_vm9, 1.0, %v9297_v58  ;;  %v8536_v36 = vpack.i.bf16 %v5421_v8, %v5420_v15  ;;  %vm5454_vm12 = vcmp.gt.s32.totalorder %v8413_v6, 3 }
0x12c2   :  { %6264 = vperm.xlu0 %6262, %v8473_v9   ;;  %vm5455_vm13 = vcmp.gt.s32.totalorder %v8418_v50, 3  ;;  %v5478_v42 = vsel %vm5474_vm10, 1.0, %v9297_v58  ;;  %v5479_v30 = vsel %vm5475_vm11, 1.0, %v9297_v58  ;;  %v8543_v22 = vpack.i.bf16 %v5441_v29, %v5440_v25 }
0x12c3   :  { %vm5456_vm14 = vcmp.gt.s32.totalorder %v8435_v33, 3  ;;  %v5458_v11 = vsel %vm5454_vm12, 1.0, %v9297_v58  ;;  %v5459_v15 = vsel %vm5455_vm13, 1.0, %v9297_v58  ;;  %v8550_v6 = vpack.i.bf16 %v5479_v30, %v5478_v42 }
0x12c4   :  { %6274 = vperm.xlu1 %6256, %v8480_v4   ;;  %vm5476_vm1 = vcmp.gt.s32.totalorder %v8435_v33, 4  ;;  %vm5477_vm2 = vcmp.gt.s32.totalorder %v8440_v24, 4  ;;  %v5460_v50 = vsel %vm5456_vm14, 1.0, %v9297_v58  ;;  %v5461_v25 = vsel %vm5457_vm15, 1.0, %v9297_v58 }
0x12c5   :  { %v8557_v8 = vpack.i.bf16 %v5459_v15, %v5458_v11  ;;  %v5480_v29 = vsel %vm5476_vm1, 1.0, %v9297_v58  ;;  %v5481_v44 = vsel %vm5477_vm2, 1.0, %v9297_v58  ;;  %v8562_v42 = vpack.i.bf16 %v5461_v25, %v5460_v50 }
0x12c6   :  { %6269 = vperm.xlu0 %6262, %v8487_v41   ;;  %v8565_v33 = vpack.i.bf16 %v5481_v44, %v5480_v29  ;;  %v5773_v29 = vld [vmem:[%s9207_s1] sm:$0xff]   ;;  %vm5309_vm3 = vcmask 7168  }
0x12c8   :  { %6279 = vperm.xlu1 %6256, %v8494_v40  }
0x12ca   :  { %6284 = vperm.xlu0 %6262, %v8501_v26  }
0x12cc   :  { %6289 = vperm.xlu1 %6256, %v8508_v49  }
0x12ce   :  { %6294 = vperm.xlu0 %6262, %v8515_v60  }
0x12d0   :  { %6299 = vperm.xlu1 %6256, %v8522_v39  }
0x12d2   :  { %6304 = vperm.xlu0 %6262, %v8529_v7  }
0x12d4   :  { %6309 = vperm.xlu1 %6256, %v8536_v36  }
0x12d6   :  { %6314 = vperm.xlu0 %6262, %v8543_v22  }
0x12d8   :  { %6319 = vperm.xlu1 %6256, %v8550_v6  }
0x12da   :  { %6324 = vperm.xlu0 %6262, %v8557_v8  }
0x12dc   :  { %6329 = vperm.xlu1 %6256, %v8562_v42  }
0x12de   :  { %6334 = vperm.xlu0 %6262, %v8565_v33  }
0x1322   :  { %v4464_v24 = vpop.permute.xlu1 %4463 }
0x1324   :  { %v4462_v30 = vpop.permute.xlu0 %4461 }
0x1325   :  { %6186 = vmatprep.mubr.msk.f32.mxu1 %vm100_vm0, %v4462_v30  ;;  %v5807_v30 = vld [vmem:[%s9206_s0 + $0x70] sm:$0xff]  }
0x1326   :  { %v4182_v11 = vpop.permute.xlu1 %4181  ;;  %6187 = vmatmul.mubr.msk.f32.vlgmr.msra.gmra.mxu1 %vm100_vm0, %v4464_v24  ;;  %v5775_v24 = vunpack.c.h.bf16 %v5773_v29  ;;  %v5766_v51 = vunpack.c.l.bf16 %v5807_v30 }
0x1328   :  { %v4180_v58 = vpop.permute.xlu0 %4179 }
0x1329   :  { %6172 = vmatprep.mubr.msk.f32.mxu0 %vm100_vm0, %v4180_v58  ;;  %v6958_v58 = vld [vmem:[%s9211_s5] ss:$0 sm:$0xff] }
0x132a   :  { %6173 = vmatmul.mubr.msk.f32.vlgmr.msra.gmra.mxu0 %vm100_vm0, %v4182_v11  ;;  %v4186_v15 = vpop.permute.xlu1 %4185  ;;  %v5774_v11 = vunpack.c.l.bf16 %v5773_v29 }
0x132c   :  { %v4184_v50 = vpop.permute.xlu0 %4183 }
0x132d   :  { %6175 = vmatprep.mubr.msk.f32.mxu0 %vm100_vm0, %v4184_v50  ;;  %v5767_v50 = vunpack.c.h.bf16 %v5807_v30 }
0x132e   :  { %6176 = vmatmul.mubr.msk.f32.gmra.mxu0 %vm100_vm0, %v4186_v15  ;;  %v4468_v25 = vpop.permute.xlu1 %4467  ;;  %v4454_v15 = vadd.f32 %v6958_v58, %v5775_v24  ;;  %v5809_v24 = vld [vmem:[%s9207_s1 + $0x8] sm:$0xff]  }
0x132f   :  { %v4172_v29 = vadd.f32 %v6959_v28, %v5767_v50  ;;  %v5779_v43 = vunpack.c.h.bf16 %v5809_v24  ;;  %v5778_v47 = vunpack.c.l.bf16 %v5809_v24 }
0x1330   :  { %v4466_v44 = vpop.permute.xlu0 %4465 }
0x1331   :  { %6189 = vmatprep.mubr.msk.f32.mxu1 %vm100_vm0, %v4466_v44  ;;  %v5808_v44 = vld [vmem:[%s9206_s0 + $0x78] sm:$0xff]  }
0x1332   :  { %6190 = vmatmul.mubr.msk.f32.gmra.mxu1 %vm100_vm0, %v4468_v25  ;;  %v4453_v25 = vadd.f32 %v6958_v58, %v5774_v11  ;;  %v5771_v2 = vunpack.c.h.bf16 %v5808_v44  ;;  %v4171_v11 = vadd.f32 %v6959_v28, %v5766_v51  ;;  %v5770_v30 = vunpack.c.l.bf16 %v5808_v44 }
0x1334   :  { %v4173_v38 = vadd.f32 %v6959_v28, %v5770_v30 }
0x13e6   :  { %v6188_v20 = vpop.f32.mrf.mxu1 }
0x13e7   :  { %v8589_v27 = vadd.f32 %v6188_v20, %v4454_v15  ;;  %v4174_v15 = vadd.f32 %v6959_v28, %v5771_v2  ;;  %v4455_v2 = vadd.f32 %v6958_v58, %v5778_v47 }
0x13e8   :  { %v4543_v1 = vpop.f32.mrf.mxu1 }
0x13e9   :  { %6866 = vtanh.f32 %v8589_v27  ;;  %v8598_v54 = vadd.f32 %v4543_v1, %v4453_v25  ;;  %v4456_v1 = vadd.f32 %v6958_v58, %v5779_v43 }
0x13ea   :  { %v6174_v21 = vpop.f32.mrf.mxu0 }
0x13eb   :  { %v8600_v20 = vadd.f32 %v6174_v21, %v4172_v29  ;;  %6868 = vtanh.f32 %v8598_v54 }
0x13ec   :  { %v4261_v50 = vpop.f32.mrf.mxu0 }
0x13ed   :  { %v8603_v46 = vadd.f32 %v4261_v50, %v4171_v11  ;;  %6870 = vtanh.f32 %v8600_v20 }
0x13ee   :  { %v6177_v32 = vpop.f32.mrf.mxu0 }
0x13ef   :  { %v8606_v34 = vadd.f32 %v6177_v32, %v4174_v15  ;;  %6872 = vtanh.f32 %v8603_v46  ;;  %v6259_v15 = vpop.permute.xlu1 %6258 }
0x13f0   :  { %v4271_v51 = vpop.f32.mrf.mxu0  ;;  %v6260_v50 = vunpack.i.l.bf16 %v6259_v15 }
0x13f1   :  { %v8609_v21 = vadd.f32 %v4271_v51, %v4173_v38  ;;  %6874 = vtanh.f32 %v8606_v34  ;;  %v6261_v51 = vunpack.i.h.bf16 %v6259_v15 }
0x13f2   :  { %v6191_v44 = vpop.f32.mrf.mxu1 }
0x13f3   :  { %v8612_v25 = vadd.f32 %v6191_v44, %v4456_v1  ;;  %6876 = vtanh.f32 %v8609_v21  ;;  %v6265_v1 = vpop.permute.xlu0 %6264 }
0x13f4   :  { %v4553_v28 = vpop.f32.mrf.mxu1 }
0x13f5   :  { %v8615_v29 = vadd.f32 %v4553_v28, %v4455_v2  ;;  %6878 = vtanh.f32 %v8612_v25  ;;  %v5613_v2 = vmul.f32 -1.442695, %v8606_v34 }
0x13f6   :  { %v6867_v24 = vpop.eup %6866 }
0x13f7   :  { %4604 = vrot.lane.b32.xlu1 %v6867_v24, %s7009_s26  ;;  %6880 = vtanh.f32 %v8615_v29  ;;  %v5628_v28 = vmul.f32 -1.442695, %v8615_v29 }
0x13f8   :  { %v6869_v32 = vpop.eup %6868 }
0x13f9   :  { %4602 = vrot.lane.b32.xlu0 %v6869_v32, %s7009_s26 }
0x13fa   :  { %v6871_v47 = vpop.eup %6870 }
0x13fb   :  { %4322 = vrot.lane.b32.xlu1 %v6871_v47, %s7009_s26 }
0x13fc   :  { %v6873_v38 = vpop.eup %6872 }
0x13fd   :  { %4320 = vrot.lane.b32.xlu0 %v6873_v38, %s7009_s26 }
0x13fe   :  { %v6875_v43 = vpop.eup %6874 }
0x13ff   :  { %4326 = vrot.lane.b32.xlu1 %v6875_v43, %s7009_s26 }
0x1400   :  { %v6877_v58 = vpop.eup %6876 }
0x1401   :  { %4324 = vrot.lane.b32.xlu0 %v6877_v58, %s7009_s26 }
0x1402   :  { %v6879_v11 = vpop.eup %6878 }
0x1403   :  { %4608 = vrot.lane.b32.xlu1 %v6879_v11, %s7009_s26 }
0x1404   :  { %v6881_v30 = vpop.eup %6880 }
0x1405   :  { %4606 = vrot.lane.b32.xlu0 %v6881_v30, %s7009_s26 }
0x1407   :  { %6339 = vperm.xlu1 %6256, %v8557_v8   ;;  %v6266_v8 = vunpack.i.l.bf16 %v6265_v1 }
0x1409   :  { %6344 = vperm.xlu0 %6262, %v8550_v6   ;;  %v725_v6 = vmul.f32 %v6260_v50, %v7329_v14 }
0x140b   :  { %6349 = vperm.xlu1 %6256, %v8565_v33  }
0x140d   :  { %6354 = vperm.xlu0 %6262, %v8562_v42   ;;  %v726_v42 = vmul.f32 %v6261_v51, %v7316_v62 }
0x140f   :  { %6359 = vperm.xlu1 %6256, %v8529_v7   ;;  %v427_v7 = vmul.f32 %v6266_v8, %v7336_v52 }
0x1411   :  { %6364 = vperm.xlu0 %6262, %v8522_v39   ;;  %v6267_v39 = vunpack.i.h.bf16 %v6265_v1 }
0x1413   :  { %6369 = vperm.xlu1 %6256, %v8543_v22   ;;  %v428_v22 = vmul.f32 %v6267_v39, %v7321_v0  ;;  %v8653_v0 = vpop.permute.xlu1 %6274 }
0x1415   :  { %6374 = vperm.xlu0 %6262, %v8536_v36   ;;  %v6270_v36 = vpop.permute.xlu0 %6269 }
0x1416   :  { %v6271_v14 = vunpack.i.l.bf16 %v6270_v36  ;;  %v6272_v62 = vunpack.i.h.bf16 %v6270_v36 }
0x1417   :  { %6379 = vperm.xlu1 %6256, %v8501_v26   ;;  %v5627_v26 = vmul.f32 -1.442695, %v8589_v27  ;;  %v5629_v27 = vmul.f32 -1.442695, %v8612_v25 }
0x1418   :  { %v430_v52 = vmul.f32 %v6272_v62, %v7326_v13  ;;  %v5610_v13 = vmul.f32 -1.442695, %v8603_v46 }
0x1419   :  { %6384 = vperm.xlu0 %6262, %v8494_v40   ;;  %v429_v40 = vmul.f32 %v6271_v14, %v7341_v48  ;;  %6882 = vpow2.f32 %v5627_v26  ;;  %v5611_v48 = vmul.f32 -1.442695, %v8600_v20  ;;  %v6276_v26 = vunpack.i.l.bf16 %v8653_v0 }
0x141b   :  { %733 = vrot.lane.b32.xlu1 %v725_v6, %s7010_s27 }
0x141d   :  { %735 = vrot.lane.b32.xlu0 %v726_v42, %s7010_s27 }
0x141f   :  { %435 = vrot.lane.b32.xlu1 %v427_v7, %s7010_s27 }
0x1421   :  { %6389 = vperm.xlu0 %6262, %v8515_v60   ;;  %v8656_v60 = vpop.permute.xlu1 %6279 }
0x1423   :  { %437 = vrot.lane.b32.xlu1 %v428_v22, %s7010_s27 }
0x1425   :  { %6394 = vperm.xlu0 %6262, %v8508_v49   ;;  %v5626_v49 = vmul.f32 -1.442695, %v8598_v54  ;;  %v8662_v33 = vpop.permute.xlu1 %6289  ;;  %v5612_v54 = vmul.f32 -1.442695, %v8609_v21 }
0x1426   :  { %v6883_v20 = vpop.eup %6882 }
0x1427   :  { %6399 = vperm.xlu1 %6256, %v8473_v9   ;;  %v8660_v9 = vpop.permute.xlu0 %6284  ;;  %6884 = vpow2.f32 %v5626_v49  ;;  %v4579_v32 = vadd.f32 1.0, %v6883_v20 }
0x1428   :  { %6886 = vpow2.f32 %v5611_v48 }
0x1429   :  { %439 = vrot.lane.b32.xlu0 %v429_v40, %s7010_s27  ;;  %6888 = vpow2.f32 %v5610_v13  ;;  %v8669_v44 = vpop.permute.xlu1 %6299 }
0x142a   :  { %6890 = vpow2.f32 %v5613_v2 }
0x142b   :  { %6404 = vperm.xlu1 %6256, %v8465_v31   ;;  %v8665_v31 = vpop.permute.xlu0 %6294  ;;  %6892 = vpow2.f32 %v5629_v27 }
0x142c   :  { %6894 = vpow2.f32 %v5612_v54  ;;  %v727_v54 = vmul.f32 %v6276_v26, %v7349_v18 }
0x142d   :  { %441 = vrot.lane.b32.xlu0 %v430_v52, %s7010_s27  ;;  %v8675_v47 = vpop.permute.xlu1 %6309  ;;  %6896 = vpow2.f32 %v5628_v28 }
0x142e   :  { %6898 = vrcp.f32 %v4579_v32 }
0x142f   :  { %v8673_v24 = vpop.permute.xlu0 %6304 }
0x1431   :  { %v8679_v21 = vpop.permute.xlu1 %6319 }
0x1433   :  { %v8677_v38 = vpop.permute.xlu0 %6314 }
0x1434   :  { %v6885_v46 = vpop.eup %6884 }
0x1435   :  { %v6887_v34 = vpop.eup %6886  ;;  %v4578_v25 = vadd.f32 1.0, %v6885_v46  ;;  %v8683_v51 = vpop.permute.xlu1 %6329 }
0x1436   :  { %v4297_v43 = vadd.f32 1.0, %v6887_v34  ;;  %v6889_v58 = vpop.eup %6888 }
0x1437   :  { %6900 = vrcp.f32 %v4578_v25  ;;  %v6891_v11 = vpop.eup %6890  ;;  %v4296_v29 = vadd.f32 1.0, %v6889_v58  ;;  %v8681_v15 = vpop.permute.xlu0 %6324 }
0x1438   :  { %6902 = vrcp.f32 %v4297_v43  ;;  %v6893_v30 = vpop.eup %6892  ;;  %v4299_v50 = vadd.f32 1.0, %v6891_v11 }
0x1439   :  { %v6895_v1 = vpop.eup %6894  ;;  %6904 = vrcp.f32 %v4296_v29  ;;  %v4581_v6 = vadd.f32 1.0, %v6893_v30  ;;  %v6277_v30 = vunpack.i.h.bf16 %v8653_v0 }
0x143a   :  { %v6897_v8 = vpop.eup %6896  ;;  %6906 = vrcp.f32 %v4299_v50  ;;  %v4298_v39 = vadd.f32 1.0, %v6895_v1  ;;  %v6281_v50 = vunpack.i.l.bf16 %v8656_v60 }
0x143b   :  { %v8685_v42 = vpop.permute.xlu0 %6334  ;;  %v8687_v7 = vpop.eup %6898  ;;  %6908 = vrcp.f32 %v4581_v6  ;;  %v4580_v36 = vadd.f32 1.0, %v6897_v8  ;;  %v728_v8 = vmul.f32 %v6277_v30, %v7346_v17  ;;  %v6287_v17 = vunpack.i.h.bf16 %v8660_v9  ;;  %v689_v30 = vld [vmem:[#allocation7 + $0x8] sm:$0xff] }
0x143c   :  { %6910 = vrcp.f32 %v4298_v39  ;;  %v6282_v39 = vunpack.i.h.bf16 %v8656_v60  ;;  %v6297_v60 = vunpack.i.h.bf16 %v8665_v31 }
0x143d   :  { %6912 = vrcp.f32 %v4580_v36  ;;  %v1293_v36 = vmul.f32 %v6281_v50, %v7493_v45 }
0x143e   :  { %v1294_v0 = vmul.f32 %v6282_v39, %v7488_v63  ;;  %v1010_v63 = vmul.f32 %v6287_v17, %v7496_v16  ;;  %v6322_v39 = vunpack.i.h.bf16 %v8679_v21  ;;  %v391_v17 = vld [vmem:[#allocation4 + $0x8] sm:$0xff] }
0x1444   :  { %v8691_v40 = vpop.eup %6900 }
0x1445   :  { %v8693_v52 = vpop.eup %6902 }
0x1446   :  { %v8700_v27 = vpop.eup %6904 }
0x1447   :  { %v8705_v46 = vpop.eup %6906 }
0x1448   :  { %v8708_v34 = vpop.eup %6908 }
0x1449   :  { %v8712_v29 = vpop.eup %6910 }
0x144a   :  { %v8716_v18 = vpop.eup %6912 }
0x1469   :  { %v4605_v22 = vpop.permute.xlu1 %4604 }
0x146a   :  { %v4615_v14 = vmul.f32 %v8687_v7, %v4605_v22  ;;  %v6286_v22 = vunpack.i.l.bf16 %v8660_v9  ;;  %v6302_v9 = vunpack.i.h.bf16 %v8669_v44 }
0x146b   :  { %v4603_v62 = vpop.permute.xlu0 %4602 }
0x146c   :  { %4624 = vrot.lane.b32.xlu0 %v4615_v14, %s7009_s26  ;;  %v4614_v49 = vmul.f32 %v8691_v40, %v4603_v62  ;;  %v1009_v45 = vmul.f32 %v6286_v22, %v7501_v19  ;;  %v1862_v16 = vmul.f32 %v6302_v9, %v7686_v59  ;;  %v9300_v9 = vld [vmem:[#allocation17_spill] sm:$0xff] }
0x146d   :  { %v4323_v48 = vpop.permute.xlu1 %4322 }
0x146e   :  { %v4333_v13 = vmul.f32 %v8693_v52, %v4323_v48  ;;  %v1296_v48 = vmul.f32 %v6297_v60, %v7516_v12 }
0x146f   :  { %v4321_v2 = vpop.permute.xlu0 %4320 }
0x1470   :  { %4622 = vrot.lane.b32.xlu0 %v4614_v49, %s7009_s26  ;;  %4342 = vrot.lane.b32.xlu1 %v4333_v13, %s7009_s26  ;;  %v4332_v28 = vmul.f32 %v8700_v27, %v4321_v2 }
0x1471   :  { %v4327_v20 = vpop.permute.xlu1 %4326 }
0x1472   :  { %v4335_v43 = vmul.f32 %v8705_v46, %v4327_v20 }
0x1473   :  { %v4325_v32 = vpop.permute.xlu0 %4324 }
0x1474   :  { %737 = vrot.lane.b32.xlu0 %v727_v54, %s7010_s27  ;;  %4340 = vrot.lane.b32.xlu1 %v4332_v28, %s7009_s26  ;;  %v4334_v1 = vmul.f32 %v8712_v29, %v4325_v32  ;;  %v6307_v54 = vunpack.i.h.bf16 %v8673_v24  ;;  %v6296_v32 = vunpack.i.l.bf16 %v8665_v31  ;;  %v6317_v31 = vunpack.i.h.bf16 %v8677_v38 }
0x1475   :  { %v4609_v25 = vpop.permute.xlu1 %4608 }
0x1476   :  { %v4617_v58 = vmul.f32 %v8708_v34, %v4609_v25 }
0x1477   :  { %v4607_v11 = vpop.permute.xlu0 %4606 }
0x1478   :  { %4628 = vrot.lane.b32.xlu0 %v4617_v58, %s7009_s26  ;;  %4346 = vrot.lane.b32.xlu1 %v4335_v43, %s7009_s26  ;;  %v4616_v6 = vmul.f32 %v8716_v18, %v4607_v11  ;;  %v688_v43 = vld [vmem:[#allocation7] sm:$0xff]  ;;  %v1295_v58 = vmul.f32 %v6296_v32, %v7521_v57  ;;  %v6301_v11 = vunpack.i.l.bf16 %v8669_v44  ;;  %v6306_v44 = vunpack.i.l.bf16 %v8673_v24 }
0x1479   :  { %v6311_v24 = vunpack.i.l.bf16 %v8675_v47  ;;  %v6321_v32 = vunpack.i.l.bf16 %v8679_v21  ;;  %v9305_v21 = vld [vmem:[#allocation18_spill] sm:$0xff] }
0x147a   :  { %v1861_v57 = vmul.f32 %v6301_v11, %v7691_v23  ;;  %v1577_v23 = vmul.f32 %v6306_v44, %v7699_v3  ;;  %v6316_v3 = vunpack.i.l.bf16 %v8677_v38  ;;  %v393_v38 = vld [vmem:[#allocation4 + $0x18] sm:$0xff]  ;;  %v9303_v11 = vld [vmem:[#allocation16_spill] sm:$0xff] }
0x147c   :  { %4626 = vrot.lane.b32.xlu0 %v4616_v6, %s7009_s26  ;;  %4344 = vrot.lane.b32.xlu1 %v4334_v1, %s7009_s26  ;;  %v390_v6 = vld [vmem:[#allocation4] sm:$0xff] }
0x1480   :  { %739 = vrot.lane.b32.xlu0 %v728_v8, %s7010_s27  ;;  %1301 = vrot.lane.b32.xlu1 %v1293_v36, %s7010_s27 }
0x1482   :  { %v8731_v14 = vpop.permute.xlu1 %6339 }
0x1484   :  { %v8733_v62 = vpop.permute.xlu0 %6344  ;;  %6409 = vperm.xlu0 %6262, %v8480_v4   ;;  %1303 = vrot.lane.b32.xlu1 %v1294_v0, %s7010_s27  ;;  %v6291_v4 = vunpack.i.l.bf16 %v8662_v33 }
0x1486   :  { %v8740_v26 = vpop.permute.xlu1 %6349  ;;  %v1011_v2 = vmul.f32 %v6291_v4, %v7511_v61  ;;  %v6312_v61 = vunpack.i.h.bf16 %v8675_v47 }
0x1488   :  { %v8742_v49 = vpop.permute.xlu0 %6354  ;;  %6414 = vperm.xlu0 %6262, %v8487_v41   ;;  %1017 = vrot.lane.b32.xlu1 %v1009_v45, %s7010_s27  ;;  %v6292_v41 = vunpack.i.h.bf16 %v8662_v33  ;;  %v1578_v33 = vmul.f32 %v6307_v54, %v7694_v5  ;;  %v6327_v45 = vunpack.i.h.bf16 %v8681_v15  ;;  %v9301_v54 = vld [vmem:[#allocation15_spill] sm:$0xff] }
0x148a   :  { %v8750_v13 = vpop.permute.xlu1 %6359  ;;  %v1012_v28 = vmul.f32 %v6292_v41, %v7506_v10  ;;  %v1580_v10 = vmul.f32 %v6312_v61, %v7704_v35  ;;  %v1864_v35 = vmul.f32 %v6317_v31, %v7714_v55  ;;  %v2430_v55 = vmul.f32 %v6322_v39, %v7858_v37  ;;  %v392_v41 = vld [vmem:[#allocation4 + $0x10] sm:$0xff] }
0x148b   :  { %v2146_v47 = vmul.f32 %v6327_v45, %v9300_v9  ;;  %v6332_v37 = vunpack.i.h.bf16 %v8683_v51  ;;  %v6326_v31 = vunpack.i.l.bf16 %v8681_v15  ;;  %v9307_v15 = vld [vmem:[#allocation22_spill] sm:$0xff]  ;;  %v4595_v39 = vmul.f32 %v8687_v7, %v8351_v53  ;;  %v690_v53 = vld [vmem:[#allocation7 + $0x10] sm:$0xff] }
0x148c   :  { %v8752_v19 = vpop.permute.xlu0 %6364  ;;  %1307 = vrot.lane.b32.xlu0 %v1296_v48, %s7010_s27  ;;  %1019 = vrot.lane.b32.xlu1 %v1010_v63, %s7010_s27  ;;  %v1579_v48 = vmul.f32 %v6311_v24, %v7709_v56  ;;  %v6337_v56 = vunpack.i.h.bf16 %v8685_v42  ;;  %v9309_v24 = vld [vmem:[#allocation40_spill] sm:$0xff] }
0x148e   :  { %v8760_v20 = vpop.permute.xlu1 %6369 }
0x1490   :  { %v8762_v12 = vpop.permute.xlu0 %6374  ;;  %1871 = vrot.lane.b32.xlu0 %v1862_v16, %s7010_s27  ;;  %1021 = vrot.lane.b32.xlu1 %v1011_v2, %s7010_s27 }
0x1492   :  { %v8770_v25 = vpop.permute.xlu1 %6379 }
0x1494   :  { %v8772_v59 = vpop.permute.xlu0 %6384  ;;  %1587 = vrot.lane.b32.xlu0 %v1578_v33, %s7010_s27  ;;  %1023 = vrot.lane.b32.xlu1 %v1012_v28, %s7010_s27  ;;  %v1863_v28 = vmul.f32 %v6316_v3, %v9301_v54  ;;  %v9302_v33 = vld [vmem:[#allocation19_spill] sm:$0xff]  ;;  %v9311_v54 = vld [vmem:[#allocation42_spill] sm:$0xff] }
0x1495   :  { %v2148_v61 = vmul.f32 %v6332_v37, %v9302_v33 }
0x1496   :  { %v734_v5 = vpop.permute.xlu1 %733 }
0x1497   :  { %v745_v50 = vadd.f32 %v734_v5, %v688_v43  ;;  %v9304_v5 = vld [vmem:[#allocation21_spill] sm:$0xff] }
0x1498   :  { %v736_v1 = vpop.permute.xlu0 %735  ;;  %1591 = vrot.lane.b32.xlu0 %v1580_v10, %s7010_s27  ;;  %1305 = vrot.lane.b32.xlu1 %v1295_v58, %s7010_s27  ;;  %v2429_v10 = vmul.f32 %v6321_v32, %v9303_v11 }
0x1499   :  { %749 = vst.msk [vmem:[#allocation7] sm:$0xff] %vm100_vm0, %v745_v50  ;;  %v746_v8 = vadd.f32 %v736_v1, %v689_v30  ;;  %v2432_v30 = vmul.f32 %v6337_v56, %v9304_v5  ;;  %v2145_v50 = vmul.f32 %v6326_v31, %v9305_v21  ;;  %v6331_v1 = vunpack.i.l.bf16 %v8683_v51  ;;  %v691_v5 = vld [vmem:[#allocation7 + $0x18] sm:$0xff] }
0x149a   :  { %v436_v36 = vpop.permute.xlu1 %435  ;;  %v6341_v31 = vunpack.i.l.bf16 %v8731_v14  ;;  %v6342_v21 = vunpack.i.h.bf16 %v8731_v14  ;;  %v9315_v14 = vld [vmem:[#allocation24_spill] sm:$0xff] }
0x149b   :  { %750 = vst.msk [vmem:[#allocation7 + $0x8] sm:$0xff] %vm100_vm0, %v746_v8  ;;  %v447_v0 = vadd.f32 %v436_v36, %v390_v6  ;;  %v9306_v6 = vld [vmem:[#allocation20_spill] sm:$0xff] }
0x149c   :  { %v8788_v22 = vpop.permute.xlu0 %6389  ;;  %1875 = vrot.lane.b32.xlu0 %v1864_v35, %s7010_s27  ;;  %1869 = vrot.lane.b32.xlu1 %v1861_v57, %s7010_s27  ;;  %v2147_v8 = vmul.f32 %v6331_v1, %v9306_v6  ;;  %v6336_v57 = vunpack.i.l.bf16 %v8685_v42 }
0x149d   :  { %451 = vst.msk [vmem:[#allocation4] sm:$0xff] %vm100_vm0, %v447_v0 }
0x149e   :  { %v438_v60 = vpop.permute.xlu1 %437  ;;  %v2431_v44 = vmul.f32 %v6336_v57, %v9307_v15  ;;  %v9314_v15 = vld [vmem:[#allocation45_spill] sm:$0xff] }
0x149f   :  { %v448_v63 = vadd.f32 %v438_v60, %v391_v17  ;;  %v9308_v17 = vld [vmem:[#allocation39_spill] sm:$0xff] }
0x14a0   :  { %v8797_v4 = vpop.permute.xlu0 %6394  ;;  %2439 = vrot.lane.b32.xlu0 %v2430_v55, %s7010_s27  ;;  %1585 = vrot.lane.b32.xlu1 %v1577_v23, %s7010_s27  ;;  %v4594_v42 = vmul.f32 %v8691_v40, %v9308_v17  ;;  %v4313_v55 = vmul.f32 %v8693_v52, %v9309_v24  ;;  %v2997_v17 = vmul.f32 %v6341_v31, %v9315_v14 }
0x14a1   :  { %452 = vst.msk [vmem:[#allocation4 + $0x8] sm:$0xff] %vm100_vm0, %v448_v63 }
0x14a2   :  { %v8829_v35 = vpop.permute.xlu1 %6399 }
0x14a4   :  { %2155 = vrot.lane.b32.xlu0 %v2146_v47, %s7010_s27  ;;  %v440_v2 = vpop.permute.xlu0 %439  ;;  %1589 = vrot.lane.b32.xlu1 %v1579_v48, %s7010_s27  ;;  %v9310_v47 = vld [vmem:[#allocation41_spill] sm:$0xff] }
0x14a5   :  { %v449_v16 = vadd.f32 %v440_v2, %v392_v41  ;;  %v4312_v37 = vmul.f32 %v8700_v27, %v9310_v47 }
0x14a6   :  { %v8833_v0 = vpop.permute.xlu1 %6404 }
0x14a7   :  { %453 = vst.msk [vmem:[#allocation4 + $0x10] sm:$0xff] %vm100_vm0, %v449_v16 }
0x14a8   :  { %2159 = vrot.lane.b32.xlu0 %v2148_v61, %s7010_s27  ;;  %v442_v43 = vpop.permute.xlu0 %441  ;;  %1873 = vrot.lane.b32.xlu1 %v1863_v28, %s7010_s27  ;;  %v4315_v28 = vmul.f32 %v8705_v46, %v9311_v54  ;;  %v9312_v61 = vld [vmem:[#allocation43_spill] sm:$0xff] }
0x14a9   :  { %v450_v58 = vadd.f32 %v442_v43, %v393_v38  ;;  %v4314_v56 = vmul.f32 %v8712_v29, %v9312_v61 }
0x14ab   :  { %454 = vst.msk [vmem:[#allocation4 + $0x18] sm:$0xff] %vm100_vm0, %v450_v58  ;;  %v9313_v58 = vld [vmem:[#allocation44_spill] sm:$0xff] }
0x14ac   :  { %2443 = vrot.lane.b32.xlu0 %v2432_v30, %s7010_s27  ;;  %2437 = vrot.lane.b32.xlu1 %v2429_v10, %s7010_s27  ;;  %v4597_v11 = vmul.f32 %v8708_v34, %v9313_v58  ;;  %v6351_v58 = vunpack.i.l.bf16 %v8740_v26 }
0x14b0   :  { %2153 = vrot.lane.b32.xlu1 %v2145_v50, %s7010_s27 }
0x14b4   :  { %2157 = vrot.lane.b32.xlu1 %v2147_v8, %s7010_s27  ;;  %v1256_v8 = vld [vmem:[#allocation7] sm:$0xff] }
0x14b8   :  { %2441 = vrot.lane.b32.xlu1 %v2431_v44, %s7010_s27  ;;  %v4596_v44 = vmul.f32 %v8716_v18, %v9314_v15  ;;  %v975_v15 = vld [vmem:[#allocation4 + $0x18] sm:$0xff] }
0x14de   :  { %v4625_v36 = vpop.permute.xlu0 %4624 }
0x14df   :  { %v8835_v51 = vadd.f32 %v4625_v36, %v4595_v39 }
0x14e1   :  { %6914 = vtanh.f32 %v8835_v51 }
0x14e2   :  { %v4623_v23 = vpop.permute.xlu0 %4622  ;;  %v4343_v60 = vpop.permute.xlu1 %4342 }
0x14e3   :  { %v8842_v45 = vadd.f32 %v4623_v23, %v4594_v42  ;;  %v8844_v63 = vadd.f32 %v4343_v60, %v4313_v55  ;;  %v9316_v42 = vld [vmem:[#allocation23_spill] sm:$0xff] }
0x14e4   :  { %v2998_v23 = vmul.f32 %v6342_v21, %v9316_v42  ;;  %v1257_v55 = vld [vmem:[#allocation7 + $0x8] sm:$0xff]  ;;  %v6347_v21 = vunpack.i.h.bf16 %v8733_v62  ;;  %v9319_v42 = vld [vmem:[#allocation25_spill] sm:$0xff] }
0x14e5   :  { %6916 = vtanh.f32 %v8842_v45 }
0x14e6   :  { %6918 = vtanh.f32 %v8844_v63  ;;  %v738_v48 = vpop.permute.xlu0 %737  ;;  %v4341_v9 = vpop.permute.xlu1 %4340 }
0x14e7   :  { %v747_v3 = vadd.f32 %v738_v48, %v690_v53  ;;  %v8851_v41 = vadd.f32 %v4341_v9, %v4312_v37 }
0x14e9   :  { %751 = vst.msk [vmem:[#allocation7 + $0x10] sm:$0xff] %vm100_vm0, %v747_v3  ;;  %6920 = vtanh.f32 %v8851_v41  ;;  %v972_v3 = vld [vmem:[#allocation4] sm:$0xff] }
0x14ea   :  { %v4629_v2 = vpop.permute.xlu0 %4628  ;;  %v4347_v16 = vpop.permute.xlu1 %4346 }
0x14eb   :  { %v8856_v33 = vadd.f32 %v4347_v16, %v4315_v28  ;;  %v8867_v50 = vadd.f32 %v4629_v2, %v4597_v11  ;;  %v6346_v2 = vunpack.i.l.bf16 %v8733_v62  ;;  %v973_v16 = vld [vmem:[#allocation4 + $0x8] sm:$0xff]  ;;  %v974_v11 = vld [vmem:[#allocation4 + $0x10] sm:$0xff]  ;;  %v6352_v62 = vunpack.i.h.bf16 %v8740_v26 }
0x14ed   :  { %6922 = vtanh.f32 %v8856_v33 }
0x14ee   :  { %v6915_v32 = vpop.eup %6914  ;;  %v4627_v38 = vpop.permute.xlu0 %4626 }
0x14ef   :  { %v4345_v43 = vpop.permute.xlu1 %4344  ;;  %4648 = vrot.lane.b32.xlu1 %v6915_v32, %s7009_s26  ;;  %v8878_v24 = vadd.f32 %v4627_v38, %v4596_v44  ;;  %v9317_v38 = vld [vmem:[#allocation26_spill] sm:$0xff] }
0x14f0   :  { %v8863_v10 = vadd.f32 %v4345_v43, %v4314_v56  ;;  %v2713_v43 = vmul.f32 %v6346_v2, %v9317_v38 }
0x14f2   :  { %v6917_v30 = vpop.eup %6916  ;;  %6924 = vtanh.f32 %v8863_v10  ;;  %v740_v6 = vpop.permute.xlu0 %739 }
0x14f3   :  { %v6919_v1 = vpop.eup %6918  ;;  %v1302_v57 = vpop.permute.xlu1 %1301  ;;  %4646 = vrot.lane.b32.xlu1 %v6917_v30, %s7009_s26  ;;  %v748_v39 = vadd.f32 %v740_v6, %v691_v5  ;;  %6926 = vtanh.f32 %v8867_v50  ;;  %v9318_v6 = vld [vmem:[#allocation28_spill] sm:$0xff] }
0x14f4   :  { %v1313_v36 = vadd.f32 %v1302_v57, %v1256_v8  ;;  %4366 = vrot.lane.b32.xlu0 %v6919_v1, %s7009_s26  ;;  %6928 = vtanh.f32 %v8878_v24  ;;  %v2715_v8 = vmul.f32 %v6351_v58, %v9318_v6  ;;  %v6356_v57 = vunpack.i.l.bf16 %v8742_v49  ;;  %v9324_v6 = vld [vmem:[#allocation34_spill] sm:$0xff] }
0x14f5   :  { %752 = vst.msk [vmem:[#allocation7 + $0x18] sm:$0xff] %vm100_vm0, %v748_v39 }
0x14f6   :  { %1317 = vst.msk [vmem:[#allocation7] sm:$0xff] %vm100_vm0, %v1313_v36  ;;  %v6921_v48 = vpop.eup %6920 }
0x14f7   :  { %v1304_v60 = vpop.permute.xlu1 %1303  ;;  %3005 = vrot.lane.b32.xlu1 %v2997_v17, %s7010_s27 }
0x14f8   :  { %v1314_v53 = vadd.f32 %v1304_v60, %v1257_v55  ;;  %3007 = vrot.lane.b32.xlu0 %v2998_v23, %s7010_s27  ;;  %v2714_v23 = vmul.f32 %v6347_v21, %v9319_v42  ;;  %v9320_v55 = vld [vmem:[#allocation30_spill] sm:$0xff]  ;;  %v9323_v21 = vld [vmem:[#allocation29_spill] sm:$0xff]  ;;  %v9325_v42 = vld [vmem:[#allocation31_spill] sm:$0xff] }
0x14f9   :  { %v2999_v60 = vmul.f32 %v6356_v57, %v9320_v55  ;;  %v6371_v57 = vunpack.i.l.bf16 %v8760_v20 }
0x14fa   :  { %1318 = vst.msk [vmem:[#allocation7 + $0x8] sm:$0xff] %vm100_vm0, %v1314_v53  ;;  %v6923_v37 = vpop.eup %6922  ;;  %v6361_v53 = vunpack.i.l.bf16 %v8750_v13 }
0x14fb   :  { %v1018_v9 = vpop.permute.xlu1 %1017 }
0x14fc   :  { %v1029_v47 = vadd.f32 %v1018_v9, %v972_v3  ;;  %4364 = vrot.lane.b32.xlu0 %v6921_v48, %s7009_s26  ;;  %v1259_v36 = vld [vmem:[#allocation7 + $0x18] sm:$0xff]  ;;  %v1258_v48 = vld [vmem:[#allocation7 + $0x10] sm:$0xff] }
0x14fd   :  { %v1824_v38 = vld [vmem:[#allocation7] sm:$0xff] }
0x14fe   :  { %1033 = vst.msk [vmem:[#allocation4] sm:$0xff] %vm100_vm0, %v1029_v47 }
0x14ff   :  { %v1020_v54 = vpop.permute.xlu1 %1019  ;;  %v6925_v28 = vpop.eup %6924 }
0x1500   :  { %v1030_v32 = vadd.f32 %v1020_v54, %v973_v16  ;;  %v8889_v61 = vpop.permute.xlu0 %6409  ;;  %4370 = vrot.lane.b32.xlu0 %v6923_v37, %s7009_s26  ;;  %4368 = vrot.lane.b32.xlu1 %v6925_v28, %s7009_s26  ;;  %v6927_v56 = vpop.eup %6926  ;;  %v9321_v16 = vld [vmem:[#allocation27_spill] sm:$0xff]  ;;  %v6357_v54 = vunpack.i.h.bf16 %v8742_v49  ;;  %v9322_v28 = vld [vmem:[#allocation32_spill] sm:$0xff] }
0x1501   :  { %v6929_v1 = vpop.eup %6928  ;;  %v1825_v37 = vld [vmem:[#allocation7 + $0x8] sm:$0xff]  ;;  %v2716_v26 = vmul.f32 %v6352_v62, %v9321_v16  ;;  %v6372_v16 = vunpack.i.h.bf16 %v8760_v20 }
0x1502   :  { %1034 = vst.msk [vmem:[#allocation4 + $0x8] sm:$0xff] %vm100_vm0, %v1030_v32  ;;  %v3565_v32 = vmul.f32 %v6361_v53, %v9322_v28  ;;  %v3000_v49 = vmul.f32 %v6357_v54, %v9323_v21  ;;  %v9326_v62 = vld [vmem:[#allocation36_spill] sm:$0xff]  ;;  %v6381_v28 = vunpack.i.l.bf16 %v8770_v25  ;;  %v9330_v21 = vld [vmem:[#allocation47_spill] sm:$0xff] }
0x1503   :  { %v1022_v31 = vpop.permute.xlu1 %1021  ;;  %v3283_v55 = vmul.f32 %v6371_v57, %v9326_v62 }
0x1504   :  { %v1031_v5 = vadd.f32 %v1022_v31, %v974_v11  ;;  %v8896_v30 = vpop.permute.xlu0 %6414  ;;  %4652 = vrot.lane.b32.xlu0 %v6927_v56, %s7009_s26  ;;  %2721 = vrot.lane.b32.xlu1 %v2713_v43, %s7010_s27  ;;  %v6366_v56 = vunpack.i.l.bf16 %v8752_v19 }
0x1506   :  { %1035 = vst.msk [vmem:[#allocation4 + $0x10] sm:$0xff] %vm100_vm0, %v1031_v5 }
0x1507   :  { %v1024_v44 = vpop.permute.xlu1 %1023 }
0x1508   :  { %v1032_v39 = vadd.f32 %v1024_v44, %v975_v15  ;;  %v1308_v14 = vpop.permute.xlu0 %1307  ;;  %4650 = vrot.lane.b32.xlu0 %v6929_v1, %s7009_s26  ;;  %2725 = vrot.lane.b32.xlu1 %v2715_v8, %s7010_s27  ;;  %v6362_v1 = vunpack.i.h.bf16 %v8750_v13  ;;  %v3281_v8 = vmul.f32 %v6366_v56, %v9324_v6  ;;  %v1540_v15 = vld [vmem:[#allocation4] sm:$0xff] }
0x1509   :  { %v1316_v17 = vadd.f32 %v1308_v14, %v1259_v36  ;;  %v1541_v31 = vld [vmem:[#allocation4 + $0x8] sm:$0xff] }
0x150a   :  { %1036 = vst.msk [vmem:[#allocation4 + $0x18] sm:$0xff] %vm100_vm0, %v1032_v39  ;;  %v3566_v13 = vmul.f32 %v6362_v1, %v9325_v42  ;;  %v6386_v1 = vunpack.i.l.bf16 %v8772_v59 }
0x150b   :  { %1320 = vst.msk [vmem:[#allocation7 + $0x18] sm:$0xff] %vm100_vm0, %v1316_v17  ;;  %v1306_v3 = vpop.permute.xlu1 %1305 }
0x150c   :  { %v1315_v9 = vadd.f32 %v1306_v3, %v1258_v48  ;;  %v1872_v47 = vpop.permute.xlu0 %1871  ;;  %2723 = vrot.lane.b32.xlu0 %v2714_v23, %s7010_s27  ;;  %3009 = vrot.lane.b32.xlu1 %v2999_v60, %s7010_s27  ;;  %v6367_v23 = vunpack.i.h.bf16 %v8752_v19  ;;  %v6376_v60 = vunpack.i.l.bf16 %v8762_v12 }
0x150d   :  { %v1882_v2 = vadd.f32 %v1872_v47, %v1825_v37  ;;  %v1542_v53 = vld [vmem:[#allocation4 + $0x10] sm:$0xff] }
0x150e   :  { %1319 = vst.msk [vmem:[#allocation7 + $0x10] sm:$0xff] %vm100_vm0, %v1315_v9 }
0x150f   :  { %1886 = vst.msk [vmem:[#allocation7 + $0x8] sm:$0xff] %vm100_vm0, %v1882_v2  ;;  %v1870_v43 = vpop.permute.xlu1 %1869  ;;  %v9327_v2 = vld [vmem:[#allocation33_spill] sm:$0xff] }
0x1510   :  { %v1881_v58 = vadd.f32 %v1870_v43, %v1824_v38  ;;  %v1588_v11 = vpop.permute.xlu0 %1587  ;;  %2727 = vrot.lane.b32.xlu0 %v2716_v26, %s7010_s27  ;;  %3573 = vrot.lane.b32.xlu1 %v3565_v32, %s7010_s27  ;;  %v3282_v19 = vmul.f32 %v6367_v23, %v9327_v2  ;;  %v9328_v26 = vld [vmem:[#allocation38_spill] sm:$0xff]  ;;  %v6396_v2 = vunpack.i.l.bf16 %v8797_v4 }
0x1511   :  { %v1598_v5 = vadd.f32 %v1588_v11, %v1541_v31  ;;  %v1543_v14 = vld [vmem:[#allocation4 + $0x18] sm:$0xff]  ;;  %v3567_v54 = vmul.f32 %v6376_v60, %v9328_v26  ;;  %v9329_v31 = vld [vmem:[#allocation35_spill] sm:$0xff] }
0x1512   :  { %1885 = vst.msk [vmem:[#allocation7] sm:$0xff] %vm100_vm0, %v1881_v58  ;;  %v1827_v9 = vld [vmem:[#allocation7 + $0x18] sm:$0xff]  ;;  %v3284_v20 = vmul.f32 %v6372_v16, %v9329_v31 }
0x1513   :  { %1602 = vst.msk [vmem:[#allocation4 + $0x8] sm:$0xff] %vm100_vm0, %v1598_v5  ;;  %v1586_v44 = vpop.permute.xlu1 %1585  ;;  %v6377_v5 = vunpack.i.h.bf16 %v8762_v12 }
0x1514   :  { %v1597_v39 = vadd.f32 %v1586_v44, %v1540_v15  ;;  %v1592_v36 = vpop.permute.xlu0 %1591  ;;  %3011 = vrot.lane.b32.xlu0 %v3000_v49, %s7010_s27  ;;  %3289 = vrot.lane.b32.xlu1 %v3281_v8, %s7010_s27  ;;  %v4133_v49 = vmul.f32 %v6381_v28, %v9330_v21 }
0x1515   :  { %v1600_v17 = vadd.f32 %v1592_v36, %v1543_v14  ;;  %v1826_v32 = vld [vmem:[#allocation7 + $0x10] sm:$0xff]  ;;  %v6382_v14 = vunpack.i.h.bf16 %v8770_v25 }
0x1516   :  { %1601 = vst.msk [vmem:[#allocation4] sm:$0xff] %vm100_vm0, %v1597_v39  ;;  %v2393_v58 = vld [vmem:[#allocation7 + $0x8] sm:$0xff]  ;;  %v9331_v36 = vld [vmem:[#allocation37_spill] sm:$0xff] }
0x1517   :  { %1604 = vst.msk [vmem:[#allocation4 + $0x18] sm:$0xff] %vm100_vm0, %v1600_v17  ;;  %v1590_v48 = vpop.permute.xlu1 %1589  ;;  %v3568_v12 = vmul.f32 %v6377_v5, %v9331_v36  ;;  %v9332_v17 = vld [vmem:[#allocation49_spill] sm:$0xff]  ;;  %v9337_v5 = vld [vmem:[#allocation50_spill] sm:$0xff] }
0x1518   :  { %v1599_v3 = vadd.f32 %v1590_v48, %v1542_v53  ;;  %v1876_v47 = vpop.permute.xlu0 %1875  ;;  %3575 = vrot.lane.b32.xlu0 %v3566_v13, %s7010_s27  ;;  %3293 = vrot.lane.b32.xlu1 %v3283_v55, %s7010_s27  ;;  %v3849_v42 = vmul.f32 %v6386_v1, %v9332_v17  ;;  %v6391_v13 = vunpack.i.l.bf16 %v8788_v22  ;;  %v9338_v1 = vld [vmem:[#allocation52_spill] sm:$0xff] }
0x1519   :  { %v1884_v37 = vadd.f32 %v1876_v47, %v1827_v9  ;;  %v2392_v6 = vld [vmem:[#allocation7] sm:$0xff]  ;;  %v6387_v9 = vunpack.i.h.bf16 %v8772_v59 }
0x151a   :  { %1603 = vst.msk [vmem:[#allocation4 + $0x10] sm:$0xff] %vm100_vm0, %v1599_v3  ;;  %v2109_v44 = vld [vmem:[#allocation4 + $0x8] sm:$0xff]  ;;  %v9333_v3 = vld [vmem:[#allocation46_spill] sm:$0xff] }
0x151b   :  { %1888 = vst.msk [vmem:[#allocation7 + $0x18] sm:$0xff] %vm100_vm0, %v1884_v37  ;;  %v1874_v56 = vpop.permute.xlu1 %1873  ;;  %v4134_v25 = vmul.f32 %v6382_v14, %v9333_v3  ;;  %v9334_v47 = vld [vmem:[#allocation51_spill] sm:$0xff]  ;;  %v6401_v14 = vunpack.i.l.bf16 %v8829_v35 }
0x151c   :  { %v1883_v38 = vadd.f32 %v1874_v56, %v1826_v32  ;;  %v2440_v43 = vpop.permute.xlu0 %2439  ;;  %3291 = vrot.lane.b32.xlu0 %v3282_v19, %s7010_s27  ;;  %3577 = vrot.lane.b32.xlu1 %v3567_v54, %s7010_s27  ;;  %v3851_v37 = vmul.f32 %v6391_v13, %v9334_v47  ;;  %v9335_v56 = vld [vmem:[#allocation48_spill] sm:$0xff]  ;;  %v6407_v13 = vunpack.i.h.bf16 %v8833_v0 }
0x151d   :  { %v2450_v11 = vadd.f32 %v2440_v43, %v2393_v58  ;;  %v2108_v23 = vld [vmem:[#allocation4] sm:$0xff]  ;;  %v3850_v59 = vmul.f32 %v6387_v9, %v9335_v56  ;;  %v9336_v43 = vld [vmem:[#allocation53_spill] sm:$0xff] }
0x151e   :  { %1887 = vst.msk [vmem:[#allocation7 + $0x10] sm:$0xff] %vm100_vm0, %v1883_v38  ;;  %v2111_v53 = vld [vmem:[#allocation4 + $0x18] sm:$0xff]  ;;  %v6392_v38 = vunpack.i.h.bf16 %v8788_v22  ;;  %v4135_v58 = vmul.f32 %v6396_v2, %v9336_v43  ;;  %v4810_v22 = vld [vmem:[%s9213_s7] sm:$0xff]  ;;  %v4852_v9 = vld [vmem:[%s9214_s8 + $0x10] sm:$0xff] }
0x151f   :  { %2454 = vst.msk [vmem:[#allocation7 + $0x8] sm:$0xff] %vm100_vm0, %v2450_v11  ;;  %v2438_v8 = vpop.permute.xlu1 %2437 }
0x1520   :  { %v2449_v57 = vadd.f32 %v2438_v8, %v2392_v6  ;;  %v2156_v15 = vpop.permute.xlu0 %2155  ;;  %3295 = vrot.lane.b32.xlu0 %v3284_v20, %s7010_s27  ;;  %4141 = vrot.lane.b32.xlu1 %v4133_v49, %s7010_s27  ;;  %v3852_v21 = vmul.f32 %v6392_v38, %v9337_v5  ;;  %v6397_v49 = vunpack.i.h.bf16 %v8797_v4  ;;  %v4811_v8 = vld [vmem:[%s9213_s7 + $0x8] sm:$0xff]  ;;  %v4857_v4 = vld [vmem:[%s9214_s8 + $0x38] sm:$0xff] }
0x1521   :  { %v2166_v39 = vadd.f32 %v2156_v15, %v2109_v44  ;;  %v2110_v19 = vld [vmem:[#allocation4 + $0x10] sm:$0xff]  ;;  %6192 = vmatprep.subr.mxu0 %v4857_v4  ;;  %v6402_v44 = vunpack.i.h.bf16 %v8829_v35  ;;  %v4854_v35 = vld [vmem:[%s9214_s8 + $0x20] sm:$0xff]  ;;  %v9053_v38 = vld [vmem:[%s9214_s8 + $0x78] sm:$0xff] }
0x1522   :  { %2453 = vst.msk [vmem:[#allocation7] sm:$0xff] %vm100_vm0, %v2449_v57  ;;  %v2395_v54 = vld [vmem:[#allocation7 + $0x18] sm:$0xff]  ;;  %v4136_v6 = vmul.f32 %v6397_v49, %v9338_v1  ;;  %v4856_v57 = vld [vmem:[%s9214_s8 + $0x30] sm:$0xff]  ;;  %6193 = vmatpush3.msra.mxu0 %v4857_v4  ;;  %v6416_v49 = vunpack.i.l.bf16 %v8896_v30 }
0x1523   :  { %2170 = vst.msk [vmem:[#allocation4 + $0x8] sm:$0xff] %vm100_vm0, %v2166_v39  ;;  %v2154_v62 = vpop.permute.xlu1 %2153  ;;  %6194 = vmatprep.subr.mxu0 %v4856_v57 }
0x1524   :  { %v2165_v55 = vadd.f32 %v2154_v62, %v2108_v23  ;;  %v2160_v60 = vpop.permute.xlu0 %2159  ;;  %3579 = vrot.lane.b32.xlu0 %v3568_v12, %s7010_s27  ;;  %3857 = vrot.lane.b32.xlu1 %v3849_v42, %s7010_s27 }
0x1525   :  { %v2168_v48 = vadd.f32 %v2160_v60, %v2111_v53  ;;  %v2394_v11 = vld [vmem:[#allocation7 + $0x10] sm:$0xff]  ;;  %6195 = vmatpush3.msra.mxu0 %v4856_v57 }
0x1526   :  { %2169 = vst.msk [vmem:[#allocation4] sm:$0xff] %vm100_vm0, %v2165_v55 }
0x1527   :  { %2172 = vst.msk [vmem:[#allocation4 + $0x18] sm:$0xff] %vm100_vm0, %v2168_v48  ;;  %v2158_v16 = vpop.permute.xlu1 %2157  ;;  %v2961_v48 = vld [vmem:[#allocation7 + $0x8] sm:$0xff] }
0x1528   :  { %v2167_v26 = vadd.f32 %v2158_v16, %v2110_v19  ;;  %v2444_v28 = vpop.permute.xlu0 %2443  ;;  %4143 = vrot.lane.b32.xlu0 %v4134_v25, %s7010_s27  ;;  %3861 = vrot.lane.b32.xlu1 %v3851_v37, %s7010_s27  ;;  %v4853_v25 = vld [vmem:[%s9214_s8 + $0x18] sm:$0xff]  ;;  %v6406_v37 = vunpack.i.l.bf16 %v8833_v0  ;;  %v4851_v19 = vld [vmem:[%s9214_s8 + $0x8] sm:$0xff]  ;;  %v6412_v0 = vunpack.i.h.bf16 %v8889_v61 }
0x1529   :  { %v2452_v32 = vadd.f32 %v2444_v28, %v2395_v54  ;;  %v2960_v55 = vld [vmem:[#allocation7] sm:$0xff]  ;;  %6203 = vmatprep.subr.mxu1 %v4853_v25 }
0x152a   :  { %2171 = vst.msk [vmem:[#allocation4 + $0x10] sm:$0xff] %vm100_vm0, %v2167_v26  ;;  %6204 = vmatpush3.msra.mxu1 %v4853_v25  ;;  %v4850_v16 = vld [vmem:[%s9214_s8] sm:$0xff] }
0x152b   :  { %2456 = vst.msk [vmem:[#allocation7 + $0x18] sm:$0xff] %vm100_vm0, %v2452_v32  ;;  %v2442_v31 = vpop.permute.xlu1 %2441  ;;  %6205 = vmatprep.subr.mxu1 %v4852_v9  ;;  %v6411_v32 = vunpack.i.l.bf16 %v8889_v61 }
0x152c   :  { %v2451_v20 = vadd.f32 %v2442_v31, %v2394_v11  ;;  %3859 = vrot.lane.b32.xlu0 %v3850_v59, %s7010_s27  ;;  %4145 = vrot.lane.b32.xlu1 %v4135_v58, %s7010_s27  ;;  %v9048_v59 = vld [vmem:[%s9214_s8 + $0x58] sm:$0xff] }
0x152d   :  { %6206 = vmatpush3.msra.mxu1 %v4852_v9  ;;  %v2676_v11 = vld [vmem:[#allocation4] sm:$0xff] }
0x152e   :  { %2455 = vst.msk [vmem:[#allocation7 + $0x10] sm:$0xff] %vm100_vm0, %v2451_v20  ;;  %6207 = vmatprep.subr.mxu1 %v4851_v19 }
0x152f   :  { %6208 = vmatpush3.msra.mxu1 %v4851_v19 }
0x1530   :  { %3863 = vrot.lane.b32.xlu0 %v3852_v21, %s7010_s27  ;;  %4820 = vperm.xlu1 %6256, %v4810_v22  }
0x1531   :  { %6209 = vmatprep.subr.mxu1 %v4850_v16  ;;  %v2678_v1 = vld [vmem:[#allocation4 + $0x10] sm:$0xff] }
0x1532   :  { %6210 = vmatpush3.msra.mxu1 %v4850_v16 }
0x1533   :  { %6225 = vmatprep.subr.mxu1 %v9053_v38 }
0x1534   :  { %4147 = vrot.lane.b32.xlu0 %v4136_v6, %s7010_s27 }
0x1538   :  { %4825 = vperm.xlu0 %6262, %v4811_v8   ;;  %v4813_v8 = vld [vmem:[%s9213_s7 + $0x18] sm:$0xff] }
0x1561   :  { %v4649_v15 = vpop.permute.xlu1 %4648 }
0x1562   :  { %v8997_v39 = vmul.f32 %v8687_v7, %v4649_v15  ;;  %v4855_v7 = vld [vmem:[%s9214_s8 + $0x28] sm:$0xff] }
0x1563   :  { %6196 = vmatprep.subr.mxu0 %v4855_v7  ;;  %v2677_v15 = vld [vmem:[#allocation4 + $0x8] sm:$0xff] }
0x1564   :  { %v4700_v36 = vmul.f32 %v6402_v44, %v8997_v39  ;;  %6197 = vmatpush3.msra.mxu0 %v4855_v7 }
0x1565   :  { %v4647_v12 = vpop.permute.xlu1 %4646  ;;  %6198 = vmatprep.subr.mxu0 %v4854_v35 }
0x1566   :  { %v4367_v17 = vpop.permute.xlu0 %4366  ;;  %v9002_v42 = vmul.f32 %v8691_v40, %v4647_v12  ;;  %4709 = vrot.lane.b32.xlu0 %v4700_v36, %s7010_s27  ;;  %6199 = vmatpush3.msra.mxu0 %v4854_v35  ;;  %v4812_v12 = vld [vmem:[%s9213_s7 + $0x10] sm:$0xff]  ;;  %s7012_s7 = smov 96  }
0x1567   :  { %v9007_v23 = vmul.f32 %v8693_v52, %v4367_v17  ;;  %6214 = vmatprep.subr.mxu0 %v9048_v59  ;;  %v2679_v17 = vld [vmem:[#allocation4 + $0x18] sm:$0xff] }
0x1568   :  { %v4699_v62 = vmul.f32 %v6401_v14, %v9002_v42 }
0x1569   :  { %v4418_v40 = vmul.f32 %v6407_v13, %v9007_v23  ;;  %v3006_v60 = vpop.permute.xlu1 %3005 }
0x156a   :  { %v3008_v53 = vpop.permute.xlu0 %3007  ;;  %v3017_v52 = vadd.f32 %v3006_v60, %v2960_v55  ;;  %4707 = vrot.lane.b32.xlu1 %v4699_v62, %s7010_s27 }
0x156b   :  { %v3018_v3 = vadd.f32 %v3008_v53, %v2961_v48  ;;  %4427 = vrot.lane.b32.xlu0 %v4418_v40, %s7010_s27  ;;  %v2963_v40 = vld [vmem:[#allocation7 + $0x18] sm:$0xff] }
0x156c   :  { %3021 = vst.msk [vmem:[#allocation7] sm:$0xff] %vm100_vm0, %v3017_v52 }
0x156d   :  { %3022 = vst.msk [vmem:[#allocation7 + $0x8] sm:$0xff] %vm100_vm0, %v3018_v3 }
0x156e   :  { %v4365_v47 = vpop.permute.xlu0 %4364 }
0x156f   :  { %v9029_v2 = vmul.f32 %v8700_v27, %v4365_v47 }
0x1571   :  { %v4417_v26 = vmul.f32 %v6406_v37, %v9029_v2 }
0x1572   :  { %v4371_v54 = vpop.permute.xlu0 %4370  ;;  %v4369_v28 = vpop.permute.xlu1 %4368 }
0x1573   :  { %v4379_v27 = vmul.f32 %v8705_v46, %v4371_v54  ;;  %4425 = vrot.lane.b32.xlu1 %v4417_v26, %s7010_s27  ;;  %v9043_v56 = vmul.f32 %v8712_v29, %v4369_v28  ;;  %v6417_v29 = vunpack.i.h.bf16 %v8896_v30  ;;  %v2962_v30 = vld [vmem:[#allocation7 + $0x10] sm:$0xff]  ;;  %v3528_v7 = vld [vmem:[#allocation7] sm:$0xff] }
0x1574   :  { %v3529_v3 = vld [vmem:[#allocation7 + $0x8] sm:$0xff] }
0x1575   :  { %v4420_v46 = vmul.f32 %v6412_v0, %v4379_v27  ;;  %v4419_v61 = vmul.f32 %v6411_v32, %v9043_v56 }
0x1576   :  { %v4653_v43 = vpop.permute.xlu0 %4652  ;;  %v2722_v31 = vpop.permute.xlu1 %2721 }
0x1577   :  { %v9060_v58 = vmul.f32 %v8708_v34, %v4653_v43  ;;  %4431 = vrot.lane.b32.xlu0 %v4420_v46, %s7010_s27  ;;  %v2733_v20 = vadd.f32 %v2722_v31, %v2676_v11  ;;  %4429 = vrot.lane.b32.xlu1 %v4419_v61, %s7010_s27 }
0x1579   :  { %v4702_v5 = vmul.f32 %v6417_v29, %v9060_v58  ;;  %2737 = vst.msk [vmem:[#allocation4] sm:$0xff] %vm100_vm0, %v2733_v20 }
0x157a   :  { %v4651_v21 = vpop.permute.xlu0 %4650  ;;  %v2726_v34 = vpop.permute.xlu1 %2725 }
0x157b   :  { %v9068_v22 = vmul.f32 %v8716_v18, %v4651_v21  ;;  %4713 = vrot.lane.b32.xlu0 %v4702_v5, %s7010_s27  ;;  %v2735_v6 = vadd.f32 %v2726_v34, %v2678_v1 }
0x157d   :  { %v4701_v4 = vmul.f32 %v6416_v49, %v9068_v22  ;;  %2739 = vst.msk [vmem:[#allocation4 + $0x10] sm:$0xff] %vm100_vm0, %v2735_v6 }
0x157e   :  { %v2724_v57 = vpop.permute.xlu0 %2723  ;;  %v3010_v36 = vpop.permute.xlu1 %3009 }
0x157f   :  { %v2734_v44 = vadd.f32 %v2724_v57, %v2677_v15  ;;  %4835 = vperm.xlu0 %6262, %v4813_v8   ;;  %4711 = vrot.lane.b32.xlu1 %v4701_v4, %s7010_s27  ;;  %v3019_v18 = vadd.f32 %v3010_v36, %v2962_v30 }
0x1580   :  { %v3244_v53 = vld [vmem:[#allocation4] sm:$0xff] }
0x1581   :  { %2738 = vst.msk [vmem:[#allocation4 + $0x8] sm:$0xff] %vm100_vm0, %v2734_v44  ;;  %3023 = vst.msk [vmem:[#allocation7 + $0x10] sm:$0xff] %vm100_vm0, %v3019_v18 }
0x1582   :  { %v2728_v14 = vpop.permute.xlu0 %2727  ;;  %v3574_v62 = vpop.permute.xlu1 %3573 }
0x1583   :  { %v2736_v13 = vadd.f32 %v2728_v14, %v2679_v17  ;;  %4733 = vrot.lane.b32.xlu0 %v9007_v23, %s7010_s27  ;;  %4830 = vperm.xlu1 %6256, %v4812_v12   ;;  %v3585_v35 = vadd.f32 %v3574_v62, %v3528_v7 }
0x1584   :  { %v3246_v9 = vld [vmem:[#allocation4 + $0x10] sm:$0xff] }
0x1585   :  { %2740 = vst.msk [vmem:[#allocation4 + $0x18] sm:$0xff] %vm100_vm0, %v2736_v13  ;;  %3589 = vst.msk [vmem:[#allocation7] sm:$0xff] %vm100_vm0, %v3585_v35 }
0x1586   :  { %v3012_v55 = vpop.permute.xlu0 %3011  ;;  %v3290_v48 = vpop.permute.xlu1 %3289 }
0x1587   :  { %v3020_v60 = vadd.f32 %v3012_v55, %v2963_v40  ;;  %4737 = vrot.lane.b32.xlu0 %v4379_v27, %s7010_s27  ;;  %4731 = vrot.lane.b32.xlu1 %v9029_v2, %s7010_s27  ;;  %v3301_v52 = vadd.f32 %v3290_v48, %v3244_v53 }
0x1588   :  { %v3245_v19 = vld [vmem:[#allocation4 + $0x8] sm:$0xff]  ;;  %v3530_v26 = vld [vmem:[#allocation7 + $0x10] sm:$0xff] }
0x1589   :  { %3024 = vst.msk [vmem:[#allocation7 + $0x18] sm:$0xff] %vm100_vm0, %v3020_v60  ;;  %3305 = vst.msk [vmem:[#allocation4] sm:$0xff] %vm100_vm0, %v3301_v52 }
0x158a   :  { %v3576_v23 = vpop.permute.xlu0 %3575  ;;  %v3294_v47 = vpop.permute.xlu1 %3293 }
0x158b   :  { %v3586_v25 = vadd.f32 %v3576_v23, %v3529_v3  ;;  %4753 = vrot.lane.b32.xlu0 %v8844_v63, %s7012_s7  ;;  %4735 = vrot.lane.b32.xlu1 %v9043_v56, %s7010_s27  ;;  %v3303_v37 = vadd.f32 %v3294_v47, %v3246_v9  ;;  %v4860_v23 = vld [vmem:[%s9214_s8 + $0x50] sm:$0xff] }
0x158c   :  { %v3247_v27 = vld [vmem:[#allocation4 + $0x18] sm:$0xff]  ;;  %v4096_v32 = vld [vmem:[#allocation7] sm:$0xff] }
0x158d   :  { %3590 = vst.msk [vmem:[#allocation7 + $0x8] sm:$0xff] %vm100_vm0, %v3586_v25  ;;  %3307 = vst.msk [vmem:[#allocation4 + $0x10] sm:$0xff] %vm100_vm0, %v3303_v37  ;;  %v4859_v37 = vld [vmem:[%s9214_s8 + $0x48] sm:$0xff] }
0x158e   :  { %v3292_v2 = vpop.permute.xlu0 %3291  ;;  %v3578_v54 = vpop.permute.xlu1 %3577 }
0x158f   :  { %v3302_v16 = vadd.f32 %v3292_v2, %v3245_v19  ;;  %4757 = vrot.lane.b32.xlu0 %v8856_v33, %s7012_s7  ;;  %4751 = vrot.lane.b32.xlu1 %v8851_v41, %s7012_s7  ;;  %v3587_v63 = vadd.f32 %v3578_v54, %v3530_v26 }
0x1590   :  { %v3531_v41 = vld [vmem:[#allocation7 + $0x18] sm:$0xff]  ;;  %v3812_v43 = vld [vmem:[#allocation4] sm:$0xff] }
0x1591   :  { %3306 = vst.msk [vmem:[#allocation4 + $0x8] sm:$0xff] %vm100_vm0, %v3302_v16  ;;  %3591 = vst.msk [vmem:[#allocation7 + $0x10] sm:$0xff] %vm100_vm0, %v3587_v63  ;;  %v4858_v16 = vld [vmem:[%s9214_s8 + $0x40] sm:$0xff] }
0x1592   :  { %v3296_v0 = vpop.permute.xlu0 %3295  ;;  %v4142_v56 = vpop.permute.xlu1 %4141 }
0x1593   :  { %v3304_v28 = vadd.f32 %v3296_v0, %v3247_v27  ;;  %4773 = vrot.lane.b32.xlu0 %v8997_v39, %s7010_s27  ;;  %4755 = vrot.lane.b32.xlu1 %v8863_v10, %s7012_s7  ;;  %v4153_v33 = vadd.f32 %v4142_v56, %v4096_v32  ;;  %v4864_v56 = vld [vmem:[%s9214_s8 + $0x70] sm:$0xff] }
0x1594   :  { %v4097_v11 = vld [vmem:[#allocation7 + $0x8] sm:$0xff]  ;;  %v3814_v20 = vld [vmem:[#allocation4 + $0x10] sm:$0xff] }
0x1595   :  { %3308 = vst.msk [vmem:[#allocation4 + $0x18] sm:$0xff] %vm100_vm0, %v3304_v28  ;;  %4157 = vst.msk [vmem:[#allocation7] sm:$0xff] %vm100_vm0, %v4153_v33  ;;  %v4863_v33 = vld [vmem:[%s9214_s8 + $0x68] sm:$0xff] }
0x1596   :  { %v3580_v46 = vpop.permute.xlu0 %3579  ;;  %v3858_v29 = vpop.permute.xlu1 %3857 }
0x1597   :  { %v3588_v61 = vadd.f32 %v3580_v46, %v3531_v41  ;;  %4777 = vrot.lane.b32.xlu0 %v9060_v58, %s7010_s27  ;;  %4771 = vrot.lane.b32.xlu1 %v9002_v42, %s7010_s27  ;;  %v3869_v39 = vadd.f32 %v3858_v29, %v3812_v43  ;;  %v4862_v41 = vld [vmem:[%s9214_s8 + $0x60] sm:$0xff] }
0x1598   :  { %v3813_v21 = vld [vmem:[#allocation4 + $0x8] sm:$0xff]  ;;  %v4098_v1 = vld [vmem:[#allocation7 + $0x10] sm:$0xff] }
0x1599   :  { %3592 = vst.msk [vmem:[#allocation7 + $0x18] sm:$0xff] %vm100_vm0, %v3588_v61  ;;  %3873 = vst.msk [vmem:[#allocation4] sm:$0xff] %vm100_vm0, %v3869_v39 }
0x159a   :  { %v4144_v10 = vpop.permute.xlu0 %4143  ;;  %v3862_v5 = vpop.permute.xlu1 %3861 }
0x159b   :  { %v4154_v31 = vadd.f32 %v4144_v10, %v4097_v11  ;;  %4793 = vrot.lane.b32.xlu0 %v8835_v51, %s7012_s7  ;;  %4775 = vrot.lane.b32.xlu1 %v9068_v22, %s7010_s27  ;;  %v3871_v58 = vadd.f32 %v3862_v5, %v3814_v20 }
0x159c   :  { %v3815_v6 = vld [vmem:[#allocation4 + $0x18] sm:$0xff]  ;;  %v4662_v18 = vld [vmem:[#allocation7] sm:$0xff] }
0x159d   :  { %4158 = vst.msk [vmem:[#allocation7 + $0x8] sm:$0xff] %vm100_vm0, %v4154_v31  ;;  %3875 = vst.msk [vmem:[#allocation4 + $0x10] sm:$0xff] %vm100_vm0, %v3871_v58 }
0x159e   :  { %v3860_v42 = vpop.permute.xlu0 %3859  ;;  %v4146_v34 = vpop.permute.xlu1 %4145 }
0x159f   :  { %v3870_v49 = vadd.f32 %v3860_v42, %v3813_v21  ;;  %4797 = vrot.lane.b32.xlu0 %v8867_v50, %s7012_s7  ;;  %4791 = vrot.lane.b32.xlu1 %v8842_v45, %s7012_s7  ;;  %v4155_v51 = vadd.f32 %v4146_v34, %v4098_v1 }
0x15a0   :  { %v4099_v4 = vld [vmem:[#allocation7 + $0x18] sm:$0xff]  ;;  %v4380_v7 = vld [vmem:[#allocation4] sm:$0xff] }
0x15a1   :  { %3874 = vst.msk [vmem:[#allocation4 + $0x8] sm:$0xff] %vm100_vm0, %v3870_v49  ;;  %4159 = vst.msk [vmem:[#allocation7 + $0x10] sm:$0xff] %vm100_vm0, %v4155_v51 }
0x15a2   :  { %v3864_v22 = vpop.permute.xlu0 %3863 }
0x15a3   :  { %v3872_v8 = vadd.f32 %v3864_v22, %v3815_v6  ;;  %4795 = vrot.lane.b32.xlu1 %v8878_v24, %s7012_s7 }
0x15a4   :  { %v4663_v44 = vld [vmem:[#allocation7 + $0x8] sm:$0xff]  ;;  %v4382_v25 = vld [vmem:[#allocation4 + $0x10] sm:$0xff] }
0x15a5   :  { %3876 = vst.msk [vmem:[#allocation4 + $0x18] sm:$0xff] %vm100_vm0, %v3872_v8 }
0x15a6   :  { %v4148_v57 = vpop.permute.xlu0 %4147 }
0x15a7   :  { %v4156_v15 = vadd.f32 %v4148_v57, %v4099_v4 }
0x15a8   :  { %v4381_v14 = vld [vmem:[#allocation4 + $0x8] sm:$0xff]  ;;  %v4664_v0 = vld [vmem:[#allocation7 + $0x10] sm:$0xff] }
0x15a9   :  { %4160 = vst.msk [vmem:[#allocation7 + $0x18] sm:$0xff] %vm100_vm0, %v4156_v15 }
0x15ab   :  { %v4821_v45 = vpop.permute.xlu1 %4820 }
0x15ac   :  { %v4383_v48 = vld [vmem:[#allocation4 + $0x18] sm:$0xff] }
0x15b0   :  { %v4665_v2 = vld [vmem:[#allocation7 + $0x18] sm:$0xff] }
0x15b3   :  { %v4826_v50 = vpop.permute.xlu0 %4825 }
0x15d8   :  { %v4710_v30 = vpop.permute.xlu0 %4709 }
0x15d9   :  { %v4720_v36 = vadd.f32 %v4710_v30, %v4663_v44  ;;  %v5208_v44 = vld [vmem:[%s9216_s10 + $0x18] sm:$0xff]  ;;  %v5207_v30 = vld [vmem:[%s9216_s10 + $0x10] sm:$0xff] }
0x15db   :  { %4724 = vst.msk [vmem:[#allocation7 + $0x8] sm:$0xff] %vm100_vm0, %v4720_v36  ;;  %v5206_v36 = vld [vmem:[%s9216_s10 + $0x8] sm:$0xff] }
0x15dc   :  { %v4708_v12 = vpop.permute.xlu1 %4707 }
0x15dd   :  { %v4428_v17 = vpop.permute.xlu0 %4427  ;;  %v4719_v13 = vadd.f32 %v4708_v12, %v4662_v18  ;;  %v5205_v18 = vld [vmem:[%s9216_s10] sm:$0xff] }
0x15de   :  { %v4438_v24 = vadd.f32 %v4428_v17, %v4381_v14 }
0x15df   :  { %4723 = vst.msk [vmem:[#allocation7] sm:$0xff] %vm100_vm0, %v4719_v13 }
0x15e0   :  { %4442 = vst.msk [vmem:[#allocation4 + $0x8] sm:$0xff] %vm100_vm0, %v4438_v24 }
0x15e2   :  { %v4843_v35 = vld [vmem:[#allocation7 + $0x8] sm:$0xff] }
0x15e3   :  { %v4847_v53 = vmul.f32 %v4843_v35, %v4826_v50 }
0x15e5   :  { %v4426_v62 = vpop.permute.xlu1 %4425 }
0x15e6   :  { %v4437_v40 = vadd.f32 %v4426_v62, %v4380_v7  ;;  %v4842_v55 = vld [vmem:[#allocation7] sm:$0xff] }
0x15e7   :  { %v4846_v60 = vmul.f32 %v4842_v55, %v4821_v45  ;;  %v4815_v54 = vld [vmem:[#allocation4 + $0x8] sm:$0xff] }
0x15e8   :  { %4441 = vst.msk [vmem:[#allocation4] sm:$0xff] %vm100_vm0, %v4437_v40  ;;  %v4839_v28 = vmul.f32 %v4826_v50, %v4815_v54 }
0x15e9   :  { %v4432_v52 = vpop.permute.xlu0 %4431  ;;  %6200 = vmatprep.mubr.msk.f32.mxu0 %vm100_vm0, %v4846_v60  ;;  %v4430_v9 = vpop.permute.xlu1 %4429 }
0x15ea   :  { %v4440_v3 = vadd.f32 %v4432_v52, %v4383_v48  ;;  %6201 = vmatmul.mubr.msk.f32.vlgmr.msra.gmra.mxu0 %vm100_vm0, %v4847_v53  ;;  %v4439_v47 = vadd.f32 %v4430_v9, %v4382_v25  ;;  %v5646_v53 = vld [vmem:[%s9215_s9] ss:$0 sm:$0xff] }
0x15eb   :  { %6215 = vmatpush3.msra.mxu0 %v9048_v59 }
0x15ec   :  { %4444 = vst.msk [vmem:[#allocation4 + $0x18] sm:$0xff] %vm100_vm0, %v4440_v3  ;;  %6216 = vmatprep.subr.mxu0 %v4860_v23  ;;  %4443 = vst.msk [vmem:[#allocation4 + $0x10] sm:$0xff] %vm100_vm0, %v4439_v47 }
0x15ed   :  { %v4714_v19 = vpop.permute.xlu0 %4713  ;;  %6217 = vmatpush3.msra.mxu0 %v4860_v23 }
0x15ee   :  { %v4722_v26 = vadd.f32 %v4714_v19, %v4665_v2  ;;  %6218 = vmatprep.subr.mxu0 %v4859_v37 }
0x15ef   :  { %v4814_v59 = vld [vmem:[#allocation4] sm:$0xff]  ;;  %6219 = vmatpush3.msra.mxu0 %v4859_v37 }
0x15f0   :  { %4726 = vst.msk [vmem:[#allocation7 + $0x18] sm:$0xff] %vm100_vm0, %v4722_v26  ;;  %v4838_v63 = vmul.f32 %v4821_v45, %v4814_v59  ;;  %6220 = vmatprep.subr.mxu0 %v4858_v16  ;;  %v5647_v37 = vld [vmem:[#allocation8] ss:$0 sm:$0xff] }
0x15f1   :  { %v4712_v27 = vpop.permute.xlu1 %4711  ;;  %6221 = vmatpush3.msra.mxu0 %v4858_v16 }
0x15f2   :  { %v4721_v32 = vadd.f32 %v4712_v27, %v4664_v0  ;;  %6211 = vmatprep.mubr.msk.f32.mxu1 %vm100_vm0, %v4838_v63  ;;  %6236 = vmatprep.subr.mxu0 %v5208_v44 }
0x15f3   :  { %6212 = vmatmul.mubr.msk.f32.vlgmr.msra.gmra.mxu1 %vm100_vm0, %v4839_v28  ;;  %v4816_v43 = vld [vmem:[#allocation4 + $0x10] sm:$0xff] }
0x15f4   :  { %4725 = vst.msk [vmem:[#allocation7 + $0x10] sm:$0xff] %vm100_vm0, %v4721_v32  ;;  %6226 = vmatpush3.msra.mxu1 %v9053_v38  ;;  %v4817_v38 = vld [vmem:[#allocation4 + $0x18] sm:$0xff] }
0x15f5   :  { %6227 = vmatprep.subr.mxu1 %v4864_v56 }
0x15f6   :  { %6228 = vmatpush3.msra.mxu1 %v4864_v56 }
0x15f7   :  { %6229 = vmatprep.subr.mxu1 %v4863_v33  ;;  %v4845_v10 = vld [vmem:[#allocation7 + $0x18] sm:$0xff] }
0x15f8   :  { %6230 = vmatpush3.msra.mxu1 %v4863_v33 }
0x15f9   :  { %6231 = vmatprep.subr.mxu1 %v4862_v41 }
0x15fa   :  { %v4836_v46 = vpop.permute.xlu0 %4835  ;;  %6232 = vmatpush3.msra.mxu1 %v4862_v41 }
0x15fb   :  { %v4844_v29 = vld [vmem:[#allocation7 + $0x10] sm:$0xff]  ;;  %v4841_v20 = vmul.f32 %v4836_v46, %v4817_v38  ;;  %v4849_v5 = vmul.f32 %v4845_v10, %v4836_v46 }
0x15fe   :  { %v4734_v61 = vpop.permute.xlu0 %4733  ;;  %v4831_v39 = vpop.permute.xlu1 %4830 }
0x15ff   :  { %4744 = vst.msk [vmem:[#allocation2 + $0x8] sm:$0xff] %vm100_vm0, %v4734_v61  ;;  %v4840_v11 = vmul.f32 %v4831_v39, %v4816_v43  ;;  %v4848_v31 = vmul.f32 %v4844_v29, %v4831_v39 }
0x1601   :  { %6222 = vmatprep.mubr.msk.f32.mxu0 %vm100_vm0, %v4840_v11  ;;  %6233 = vmatprep.mubr.msk.f32.mxu1 %vm100_vm0, %v4848_v31 }
0x1602   :  { %v4738_v58 = vpop.permute.xlu0 %4737  ;;  %6223 = vmatmul.mubr.msk.f32.vlgmr.msra.gmra.mxu0 %vm100_vm0, %v4841_v20  ;;  %6234 = vmatmul.mubr.msk.f32.vlgmr.msra.gmra.mxu1 %vm100_vm0, %v4849_v5  ;;  %v4732_v42 = vpop.permute.xlu1 %4731 }
0x1603   :  { %4746 = vst.msk [vmem:[#allocation2 + $0x18] sm:$0xff] %vm100_vm0, %v4738_v58  ;;  %4743 = vst.msk [vmem:[#allocation2] sm:$0xff] %vm100_vm0, %v4732_v42  ;;  %6237 = vmatpush3.msra.mxu0 %v5208_v44 }
0x1604   :  { %6238 = vmatprep.subr.mxu0 %v5207_v30 }
0x1605   :  { %6239 = vmatpush3.msra.mxu0 %v5207_v30 }
0x1606   :  { %v4754_v21 = vpop.permute.xlu0 %4753  ;;  %v4736_v49 = vpop.permute.xlu1 %4735  ;;  %6240 = vmatprep.subr.mxu0 %v5206_v36 }
0x1607   :  { %4764 = vst.msk [vmem:[#allocation3 + $0x8] sm:$0xff] %vm100_vm0, %v4754_v21  ;;  %4745 = vst.msk [vmem:[#allocation2 + $0x10] sm:$0xff] %vm100_vm0, %v4736_v49  ;;  %6241 = vmatpush3.msra.mxu0 %v5206_v36 }
0x1608   :  { %6242 = vmatprep.subr.mxu0 %v5205_v18 }
0x1609   :  { %6243 = vmatpush3.msra.mxu0 %v5205_v18 }
0x160a   :  { %v4758_v1 = vpop.permute.xlu0 %4757  ;;  %v4752_v34 = vpop.permute.xlu1 %4751 }
0x160b   :  { %4766 = vst.msk [vmem:[#allocation3 + $0x18] sm:$0xff] %vm100_vm0, %v4758_v1  ;;  %4763 = vst.msk [vmem:[#allocation3] sm:$0xff] %vm100_vm0, %v4752_v34 }
0x160e   :  { %v4774_v51 = vpop.permute.xlu0 %4773  ;;  %v4756_v22 = vpop.permute.xlu1 %4755 }
0x160f   :  { %4784 = vst.msk [vmem:[#allocation5 + $0x8] sm:$0xff] %vm100_vm0, %v4774_v51  ;;  %4765 = vst.msk [vmem:[#allocation3 + $0x10] sm:$0xff] %vm100_vm0, %v4756_v22 }
0x1612   :  { %v4778_v6 = vpop.permute.xlu0 %4777  ;;  %v4772_v8 = vpop.permute.xlu1 %4771 }
0x1613   :  { %4786 = vst.msk [vmem:[#allocation5 + $0x18] sm:$0xff] %vm100_vm0, %v4778_v6  ;;  %4783 = vst.msk [vmem:[#allocation5] sm:$0xff] %vm100_vm0, %v4772_v8 }
0x1616   :  { %v4794_v4 = vpop.permute.xlu0 %4793  ;;  %v4776_v57 = vpop.permute.xlu1 %4775 }
0x1617   :  { %4804 = vst.msk [vmem:[#allocation6 + $0x8] sm:$0xff] %vm100_vm0, %v4794_v4  ;;  %4785 = vst.msk [vmem:[#allocation5 + $0x10] sm:$0xff] %vm100_vm0, %v4776_v57 }
0x161a   :  { %v4798_v15 = vpop.permute.xlu0 %4797  ;;  %v4792_v50 = vpop.permute.xlu1 %4791 }
0x161b   :  { %4806 = vst.msk [vmem:[#allocation6 + $0x18] sm:$0xff] %vm100_vm0, %v4798_v15  ;;  %4803 = vst.msk [vmem:[#allocation6] sm:$0xff] %vm100_vm0, %v4792_v50 }
0x161e   :  { %v4796_v45 = vpop.permute.xlu1 %4795 }
0x161f   :  { %4805 = vst.msk [vmem:[#allocation6 + $0x10] sm:$0xff] %vm100_vm0, %v4796_v45 }
0x16aa   :  { %v6202_v12 = vpop.f32.mrf.mxu0 }
0x16ac   :  { %v4938_v17 = vpop.f32.mrf.mxu0 }
0x16b3   :  { %v6213_v14 = vpop.f32.mrf.mxu1 }
0x16b4   :  { %v5025_v24 = vadd.f32 %v6213_v14, %v6202_v12 }
0x16b5   :  { %v5019_v13 = vpop.f32.mrf.mxu1 }
0x16b6   :  { %v5020_v35 = vadd.f32 %v5019_v13, %v4938_v17 }
0x16c2   :  { %v6224_v7 = vpop.f32.mrf.mxu0  ;;  %v6235_v62 = vpop.f32.mrf.mxu1 }
0x16c3   :  { %v5110_v40 = vadd.f32 %v6224_v7, %v5025_v24 }
0x16c4   :  { %v5100_v55 = vpop.f32.mrf.mxu0  ;;  %v5183_v52 = vpop.f32.mrf.mxu1 }
0x16c5   :  { %v5193_v60 = vadd.f32 %v6235_v62, %v5110_v40  ;;  %v5109_v48 = vadd.f32 %v5100_v55, %v5020_v35 }
0x16c7   :  { %v5192_v23 = vadd.f32 %v5183_v52, %v5109_v48  ;;  %v5202_v3 = vadd.f32 %v5646_v53, %v5193_v60 }
0x16c9   :  { %v5201_v25 = vadd.f32 %v5646_v53, %v5192_v23  ;;  %v5204_v47 = vmax.f32 %v5202_v3, 0.0 }
0x16cb   :  { %v5203_v9 = vmax.f32 %v5201_v25, 0.0 }
0x16cd   :  { %6244 = vmatprep.mubr.msk.f32.mxu0 %vm100_vm0, %v5203_v9 }
0x16ce   :  { %6245 = vmatmul.mubr.msk.f32.vlgmr.msra.gmra.mxu0 %vm100_vm0, %v5204_v47 }
0x178e   :  { %v6246_v2 = vpop.f32.mrf.mxu0 }
0x178f   :  { %v5294_v19 = vadd.f32 %v6246_v2, %v5647_v37 }
0x1790   :  { %v5288_v16 = vpop.f32.mrf.mxu0 }
0x1791   :  { %v5651_v26 = vmul.f32 -1.442695, %v5294_v19  ;;  %v5289_v54 = vadd.f32 %v5647_v37, %v5288_v16 }
0x1793   :  { %6930 = vpow2.f32 %v5651_v26  ;;  %v5650_v59 = vmul.f32 -1.442695, %v5289_v54 }
0x1795   :  { %6932 = vpow2.f32 %v5650_v59 }
0x17a0   :  { %v6931_v63 = vpop.eup %6930 }
0x17a1   :  { %v5304_v0 = vadd.f32 1.0, %v6931_v63 }
0x17a2   :  { %v6933_v27 = vpop.eup %6932 }
0x17a3   :  { %6934 = vrcp.f32 %v5304_v0  ;;  %v5303_v28 = vadd.f32 1.0, %v6933_v27 }
0x17a5   :  { %6936 = vrcp.f32 %v5303_v28 }
0x17b0   :  { %v6935_v32 = vpop.eup %6934 }
0x17b1   :  { %5311 = vst.msk [vmem:[%s9218_s12 + $0x8] sm:$0xff] %vm5309_vm3, %v6935_v32 }
0x17b2   :  { %v6937_v56 = vpop.eup %6936 }
0x17b3   :  { %5310 = vst.msk [vmem:[%s9218_s12] sm:$0xff] %vm5309_vm3, %v6937_v56 }
0x17b4   :  { %5316 = vsyncpa [#allocation10], 1 }
0x17b5   :  { %5317 = vsyncpa [#allocation12], 1 }

</bundles_post_ra>
